<compile_context>
chip_gen: v5e
topology: v5e:2x2
jax: 0.10.0
libtpu: 0.0.40
codegen_flags: <defaults>
</compile_context>

<pallas_src>
import functools
import math

import jax
import jax.numpy as jnp
import numpy as np
from jax.experimental import pallas as pl
from jax.experimental.pallas import tpu as pltpu

# ----------------------------- configuration --------------------------------
B = 2            # batch
N_FEATURE = 4    # n_feature
SEQ_LEN = 16     # seq_len

CONFIG = dict(
    channels=32,
    nheads=4,
    freq_tier=2,
    res_layers=1,
    season_att="full",
    season_att_mask=False,
    s_enc_att="full",
    t_enc_att="full",
    enc_att_mask=False,
    corr_att="full",
    corr_att_mask=False,
    revin_affine=False,
    lma_affine=False,
    num_steps=50,
    diffusion_embedding_dim=32,
)

# ----------------------------- in-kernel math helpers -------------------------


def _mm(a, b):
    """bf16 x bf16 -> f32 matmul (MXU full rate on v6e/v7x)."""
    return jnp.dot(a.astype(jnp.bfloat16), b.astype(jnp.bfloat16),
                   preferred_element_type=jnp.float32)


def _mm_t(a, b):
    """a:(m,k), b:(n,k) -> (m,n) with rhs transposed, bf16 operands / f32 accumulation."""
    return jax.lax.dot_general(
        a.astype(jnp.bfloat16), b.astype(jnp.bfloat16),
        dimension_numbers=(((1,), (1,)), ((), ())),
        preferred_element_type=jnp.float32)


def _gelu(x):
    # TODO(synk): PyTorch nn.GELU default is exact erf; tanh approximation used (Mosaic-safe).
    c = math.sqrt(2.0 / math.pi)
    return 0.5 * x * (1.0 + jnp.tanh(c * (x + 0.044715 * x * x * x)))


def _silu(x):
    return x * pl.reciprocal(1.0 + jnp.exp(-x), approx=True)


def _layernorm(x, eps=1e-5):
    mu = jnp.mean(x, axis=-1, keepdims=True)
    xc = x - mu
    var = jnp.mean(xc * xc, axis=-1, keepdims=True)
    return xc * jax.lax.rsqrt(var + eps)


def _mlp(x, w1, b1, w2, b2):
    # Linear(C,4C) -> GELU -> Linear(4C,C); Dropout(0.1) is identity in eval mode.
    h = _gelu(_mm(x, w1) + b1)
    return _mm(h, w2) + b2


def _attn_core(q, k, v, wo, bo, nheads, mask):
    """Per-head softmax(QK^T/sqrt(Dh))V, with output projection accumulated per head
    (equivalent to concat(heads) @ Wo, avoids in-kernel concat)."""
    C = q.shape[-1]
    dh = C // nheads
    scale = 1.0 / math.sqrt(dh)
    acc = None
    for h in range(nheads):
        sl = slice(h * dh, (h + 1) * dh)
        s = _mm_t(q[:, sl], k[:, sl]) * scale                      # (Lq, Lk)
        if mask is not None:
            s = s + mask
        m = jnp.max(s, axis=-1, keepdims=True)
        p = jnp.exp(s - m)
        p = p * pl.reciprocal(jnp.sum(p, axis=-1, keepdims=True), approx=True)
        oh = _mm(p, v[:, sl])                                      # (Lq, Dh)
        contrib = _mm(oh, wo[sl, :])                               # (Lq, C)
        acc = contrib if acc is None else acc + contrib
    return acc + bo


def _mha_self(x, wqkv, bqkv, wo, bo, nheads, mask=None):
    # TODO(synk): SelfAttention source not provided; standard MHA, att `type` config ignored.
    C = x.shape[-1]
    qkv = _mm(x, wqkv) + bqkv                                      # (L, 3C)
    return _attn_core(qkv[:, :C], qkv[:, C:2 * C], qkv[:, 2 * C:], wo, bo, nheads, mask)


def _mha_cross(xq, xkv, wq, bq, wkv, bkv, wo, bo, nheads):
    # TODO(synk): CrossAttention source not provided; standard MHA (mask=False in CONFIG).
    C = xq.shape[-1]
    q = _mm(xq, wq) + bq
    kv = _mm(xkv, wkv) + bkv
    return _attn_core(q, kv[:, :C], kv[:, C:], wo, bo, nheads, None)


# ----------------------------- Pallas kernels --------------------------------


def _encoder_kernel(emb_ref, dw1_ref, db1_ref, dw2_ref, db2_ref,
                    x_ref, win_ref, bin_ref, wqkv_ref, bqkv_ref, wo_ref, bo_ref,
                    o_ref, *, nheads):
    # TODO(synk): DiffusionEmbedding / Season/Trend encoder sources not provided; CSDI-style
    #             sinusoidal + 2x SiLU projections, pointwise F->C proj + demb add + residual MHA.
    e = _silu(_mm(emb_ref[...], dw1_ref[...]) + db1_ref[...])      # (1, C)
    demb = _silu(_mm(e, dw2_ref[...]) + db2_ref[...])              # (1, C)
    h = _mm(x_ref[...], win_ref[...]) + bin_ref[...] + demb        # (L, C)
    h = h + _mha_self(h, wqkv_ref[...], bqkv_ref[...], wo_ref[...], bo_ref[...], nheads)
    o_ref[...] = h


def _trend_block_kernel(x_ref, w1_ref, b1_ref, w2_ref, b2_ref, w3_ref, b3_ref,
                        w4_ref, b4_ref, o_ref, *, res_layers):
    x = x_ref[...]                                                 # (C, L)
    mean = jnp.mean(x, axis=-1, keepdims=True)                     # RevIN 'norm' (affine=False)
    xc = x - mean
    var = jnp.mean(xc * xc, axis=-1, keepdims=True)
    stdev = jnp.sqrt(var + 1e-5)
    h = xc / stdev
    for r in range(res_layers):
        z = _gelu(_mm(h, w1_ref[r]) + b1_ref[r])                   # L  -> C
        z = _gelu(_mm(z, w2_ref[r]) + b2_ref[r])                   # C  -> 4C (lane dense)
        z = _gelu(_mm(z, w3_ref[r]) + b3_ref[r])                   # 4C -> C
        z = _mm(z, w4_ref[r]) + b4_ref[r]                          # C  -> L
        h = h + z
    o_ref[...] = h * stdev + mean                                  # RevIN 'denorm'


def _season_block_kernel(f_ref, mask_ref, wqkv_ref, bqkv_ref, wo_ref, bo_ref,
                         mw1_ref, mb1_ref, mw2_ref, mb2_ref, o_ref,
                         *, nheads, res_layers):
    # All Haar tiers are concatenated along rows; the additive block-diagonal mask keeps
    # attention strictly within each tier (LN/MLP are per-row and therefore tier-local anyway).
    f = f_ref[...]                                                 # (Ltot, C)
    mask = mask_ref[...]                                           # (Ltot, Ltot)
    for r in range(res_layers):
        f = f + _mha_self(f, wqkv_ref[r], bqkv_ref[r], wo_ref[r], bo_ref[r],
                          nheads, mask=mask)
        f = f + _mlp(_layernorm(f), mw1_ref[...], mb1_ref[...], mw2_ref[...], mb2_ref[...])
    o_ref[...] = f


def _corr_dec_kernel(trend_ref, season_ref,
                     tp_w, tp_b, sp_w, sp_b,
                     tq_w, tq_b, tkv_w, tkv_b, to_w, to_b,
                     sq_w, sq_b, skv_w, skv_b, so_w, so_b,
                     tm_w1, tm_b1, tm_w2, tm_b2,
                     sm_w1, sm_b1, sm_w2, sm_b2,
                     dt_w, dt_b, ds_w, ds_b,
                     yt_ref, ys_ref, *, nheads, channels):
    C = channels
    t = _gelu(_mm(trend_ref[...], tp_w[...]) + tp_b[...])          # (L, 2C)
    trend_h, trend_cond = t[:, :C], t[:, C:]
    s = _gelu(_mm(season_ref[...], sp_w[...]) + sp_b[...])
    season_h, season_cond = s[:, :C], s[:, C:]

    trend_h = trend_h + _mha_cross(trend_h, season_cond,
                                   tq_w[...], tq_b[...], tkv_w[...], tkv_b[...],
                                   to_w[...], to_b[...], nheads)
    trend_h = trend_h + _mlp(_layernorm(trend_h), tm_w1[...], tm_b1[...],
                             tm_w2[...], tm_b2[...])
    season_h = season_h + _mha_cross(season_h, trend_cond,
                                     sq_w[...], sq_b[...], skv_w[...], skv_b[...],
                                     so_w[...], so_b[...], nheads)
    season_h = season_h + _mlp(_layernorm(season_h), sm_w1[...], sm_b1[...],
                               sm_w2[...], sm_b2[...])

    # TODO(synk): Season/TrendDecoder sources not provided; pointwise C->F projection used.
    yt_ref[...] = _mm(trend_h, dt_w[...]) + dt_b[...]              # (L, F)
    ys_ref[...] = _mm(season_h, ds_w[...]) + ds_b[...]


# ----------------------------- pallas_call wrappers ---------------------------


def _wspec(arr):
    """Full-array block (weights / small constants), constant index map."""
    zeros = (0,) * arr.ndim
    return pl.BlockSpec(arr.shape, lambda *_: zeros)


def fused_encoders(p_diff, p_senc, p_tenc, season_bfl, trend_bfl, steps, nheads):
    """Season + Trend encoders (and the shared diffusion-embedding projections) in ONE call."""
    Bx, Fdim, L = season_bfl.shape
    C = p_senc["in"]["w"].shape[1]
    E = p_diff["proj1"]["w"].shape[0]

    emb = p_diff["table"][steps].reshape(Bx, 1, E)                              # (B,1,E)
    x = jnp.stack([season_bfl, trend_bfl], axis=0).transpose(0, 1, 3, 2)        # (2,B,L,F)

    win = jnp.stack([p_senc["in"]["w"], p_tenc["in"]["w"]])                     # (2,F,C)
    bin_ = jnp.stack([p_senc["in"]["b"], p_tenc["in"]["b"]])[:, None, :]        # (2,1,C)
    wqkv = jnp.stack([p_senc["att"]["wqkv"], p_tenc["att"]["wqkv"]])            # (2,C,3C)
    bqkv = jnp.stack([p_senc["att"]["bqkv"], p_tenc["att"]["bqkv"]])[:, None, :]
    wo = jnp.stack([p_senc["att"]["wo"], p_tenc["att"]["wo"]])
    bo = jnp.stack([p_senc["att"]["bo"], p_tenc["att"]["bo"]])[:, None, :]

    dw1 = p_diff["proj1"]["w"]
    db1 = p_diff["proj1"]["b"].reshape(1, C)
    dw2 = p_diff["proj2"]["w"]
    db2 = p_diff["proj2"]["b"].reshape(1, C)

    out = pl.pallas_call(
        functools.partial(_encoder_kernel, nheads=nheads),
        out_shape=jax.ShapeDtypeStruct((2, Bx, L, C), jnp.float32),
        grid=(2, Bx),
        in_specs=[
            pl.BlockSpec((None, 1, E), lambda e, b: (b, 0, 0)),                 # emb (per batch)
            _wspec(dw1), _wspec(db1), _wspec(dw2), _wspec(db2),                 # diff projections
            pl.BlockSpec((None, None, L, Fdim), lambda e, b: (e, b, 0, 0)),     # x
            pl.BlockSpec((None, Fdim, C), lambda e, b: (e, 0, 0)),              # win
            pl.BlockSpec((None, 1, C), lambda e, b: (e, 0, 0)),                 # bin
            pl.BlockSpec((None, C, 3 * C), lambda e, b: (e, 0, 0)),             # wqkv
            pl.BlockSpec((None, 1, 3 * C), lambda e, b: (e, 0, 0)),             # bqkv
            pl.BlockSpec((None, C, C), lambda e, b: (e, 0, 0)),                 # wo
            pl.BlockSpec((None, 1, C), lambda e, b: (e, 0, 0)),                 # bo
        ],
        out_specs=pl.BlockSpec((None, None, L, C), lambda e, b: (e, b, 0, 0)),
        compiler_params=pltpu.CompilerParams(
            dimension_semantics=("parallel", "parallel")),
    )(emb, dw1, db1, dw2, db2, x, win, bin_, wqkv, bqkv, wo, bo)

    season_enc = jnp.transpose(out[0], (0, 2, 1))                               # (B, C, L)
    trend_enc = jnp.transpose(out[1], (0, 2, 1))
    return season_enc, trend_enc


def trend_block_fwd(p_list, x_bcl):
    Bx, C, L = x_bcl.shape
    R = len(p_list)
    w1 = jnp.stack([m["l1"]["w"] for m in p_list])
    b1 = jnp.stack([m["l1"]["b"] for m in p_list])[:, None, :]
    w2 = jnp.stack([m["l2"]["w"] for m in p_list])
    b2 = jnp.stack([m["l2"]["b"] for m in p_list])[:, None, :]
    w3 = jnp.stack([m["l3"]["w"] for m in p_list])
    b3 = jnp.stack([m["l3"]["b"] for m in p_list])[:, None, :]
    w4 = jnp.stack([m["l4"]["w"] for m in p_list])
    b4 = jnp.stack([m["l4"]["b"] for m in p_list])[:, None, :]
    ws = [w1, b1, w2, b2, w3, b3, w4, b4]

    return pl.pallas_call(
        functools.partial(_trend_block_kernel, res_layers=R),
        out_shape=jax.ShapeDtypeStruct((Bx, C, L), jnp.float32),
        grid=(Bx,),
        in_specs=[pl.BlockSpec((None, C, L), lambda b: (b, 0, 0))]
                 + [_wspec(w) for w in ws],
        out_specs=pl.BlockSpec((None, C, L), lambda b: (b, 0, 0)),
        compiler_params=pltpu.CompilerParams(dimension_semantics=("parallel",)),
    )(x_bcl, *ws)


# --- WaveletModule (Haar DWT) -------------------------------------------------
# TODO(synk): WaveletModule source not provided; multilevel Haar DWT used for
#             decomposite / reconstructe (exact inverse pair). Strided split/merge stays in JAX.


def haar_decompose(x, levels):
    comps = []
    cur = x
    inv_sqrt2 = 1.0 / math.sqrt(2.0)
    for _ in range(levels):
        even = cur[..., 0::2]
        odd = cur[..., 1::2]
        comps.append((even - odd) * inv_sqrt2)   # detail
        cur = (even + odd) * inv_sqrt2           # approx
    comps.append(cur)
    return comps


def haar_reconstruct(comps):
    inv_sqrt2 = 1.0 / math.sqrt(2.0)
    cur = comps[-1]
    for detail in reversed(comps[:-1]):
        even = (cur + detail) * inv_sqrt2
        odd = (cur - detail) * inv_sqrt2
        cur = jnp.stack([even, odd], axis=-1).reshape(*even.shape[:-1], 2 * even.shape[-1])
    return cur


def season_block_fwd(p, x_bcl, nheads, freq_tier):
    Bx, C, _ = x_bcl.shape
    comps = haar_decompose(x_bcl, freq_tier)                       # list of (B, C, Lt)
    lens = [c.shape[-1] for c in comps]
    Ltot = sum(lens)
    f = jnp.transpose(jnp.concatenate(comps, axis=-1), (0, 2, 1))  # (B, Ltot, C)

    # block-diagonal additive mask -> attention restricted to its own tier
    tier_id = np.concatenate([np.full((l,), i) for i, l in enumerate(lens)])
    mask = jnp.asarray(
        np.where(tier_id[:, None] == tier_id[None, :], 0.0, -1e9).astype(np.float32))

    R = len(p["att_layers"])
    wqkv = jnp.stack([a["wqkv"] for a in p["att_layers"]])
    bqkv = jnp.stack([a["bqkv"] for a in p["att_layers"]])[:, None, :]
    wo = jnp.stack([a["wo"] for a in p["att_layers"]])
    bo = jnp.stack([a["bo"] for a in p["att_layers"]])[:, None, :]
    mw1 = p["mlp"]["l1"]["w"]
    mb1 = p["mlp"]["l1"]["b"].reshape(1, -1)
    mw2 = p["mlp"]["l2"]["w"]
    mb2 = p["mlp"]["l2"]["b"].reshape(1, -1)
    ws = [mask, wqkv, bqkv, wo, bo, mw1, mb1, mw2, mb2]

    out = pl.pallas_call(
        functools.partial(_season_block_kernel, nheads=nheads, res_layers=R),
        out_shape=jax.ShapeDtypeStruct((Bx, Ltot, C), jnp.float32),
        grid=(Bx,),
        in_specs=[pl.BlockSpec((None, Ltot, C), lambda b: (b, 0, 0))]
                 + [_wspec(w) for w in ws],
        out_specs=pl.BlockSpec((None, Ltot, C), lambda b: (b, 0, 0)),
        compiler_params=pltpu.CompilerParams(dimension_semantics=("parallel",)),
    )(f, *ws)

    out_bcl = jnp.transpose(out, (0, 2, 1))                        # (B, C, Ltot)
    outs, off = [], 0
    for l in lens:
        outs.append(out_bcl[:, :, off:off + l])
        off += l
    return haar_reconstruct(outs)


def corr_dec_fwd(p, p_sdec, p_tdec, trend_bcl, season_bcl, nheads, C):
    trend = jnp.transpose(trend_bcl, (0, 2, 1))                    # (B, L, C)
    season = jnp.transpose(season_bcl, (0, 2, 1))
    Bx, L, _ = trend.shape
    Fdim = p_sdec["w"].shape[1]

    def b2(v):
        return v.reshape(1, -1)

    ws = [
        p["trend_proj"]["w"], b2(p["trend_proj"]["b"]),
        p["season_proj"]["w"], b2(p["season_proj"]["b"]),
        p["crs_t"]["wq"], b2(p["crs_t"]["bq"]), p["crs_t"]["wkv"], b2(p["crs_t"]["bkv"]),
        p["crs_t"]["wo"], b2(p["crs_t"]["bo"]),
        p["crs_s"]["wq"], b2(p["crs_s"]["bq"]), p["crs_s"]["wkv"], b2(p["crs_s"]["bkv"]),
        p["crs_s"]["wo"], b2(p["crs_s"]["bo"]),
        p["trend_mlp"]["l1"]["w"], b2(p["trend_mlp"]["l1"]["b"]),
        p["trend_mlp"]["l2"]["w"], b2(p["trend_mlp"]["l2"]["b"]),
        p["season_mlp"]["l1"]["w"], b2(p["season_mlp"]["l1"]["b"]),
        p["season_mlp"]["l2"]["w"], b2(p["season_mlp"]["l2"]["b"]),
        p_tdec["w"], b2(p_tdec["b"]),
        p_sdec["w"], b2(p_sdec["b"]),
    ]

    yt, ys = pl.pallas_call(
        functools.partial(_corr_dec_kernel, nheads=nheads, channels=C),
        out_shape=(jax.ShapeDtypeStruct((Bx, L, Fdim), jnp.float32),
                   jax.ShapeDtypeStruct((Bx, L, Fdim), jnp.float32)),
        grid=(Bx,),
        in_specs=[pl.BlockSpec((None, L, C), lambda b: (b, 0, 0))] * 2
                 + [_wspec(w) for w in ws],
        out_specs=(pl.BlockSpec((None, L, Fdim), lambda b: (b, 0, 0)),
                   pl.BlockSpec((None, L, Fdim), lambda b: (b, 0, 0))),
        compiler_params=pltpu.CompilerParams(dimension_semantics=("parallel",)),
    )(trend, season, *ws)

    trend_dec = jnp.transpose(yt, (0, 2, 1))                       # (B, F, L)
    season_dec = jnp.transpose(ys, (0, 2, 1))
    return trend_dec, season_dec


# --- LearnableMovingAvg --------------------------------------------------------
# TODO(synk): LearnableMovingAvg source not provided; learnable (softmax-normalized)
#             per-feature moving-average kernel used; 'restore' = season + trend.


def lma_fwd(kernel_param, x, mode, trend=None):
    if mode == "deTrend":
        _, K = kernel_param.shape
        w = jax.nn.softmax(kernel_param, axis=-1)                  # (F, K)
        pad_l = (K - 1) // 2
        pad_r = K - 1 - pad_l
        xp = jnp.pad(x, ((0, 0), (0, 0), (pad_l, pad_r)), mode="edge")
        L = x.shape[-1]
        windows = jnp.stack([xp[..., j:j + L] for j in range(K)], axis=-1)  # (B,F,L,K)
        trend_out = jnp.einsum("bflk,fk->bfl", windows, w)
        season = x - trend_out
        return season, trend_out
    else:  # 'restore'
        return x + trend, trend


# ----------------------------- parameters -------------------------------------

_PARAM_KEY = [jax.random.PRNGKey(42)]


def _next_key():
    _PARAM_KEY[0], sub = jax.random.split(_PARAM_KEY[0])
    return sub


def init_params():
    C = CONFIG["channels"]
    E = CONFIG["diffusion_embedding_dim"]
    R = CONFIG["res_layers"]
    F = N_FEATURE
    L = SEQ_LEN

    def lin(i, o):
        w = jax.random.normal(_next_key(), (i, o), jnp.float32) * (1.0 / math.sqrt(i))
        return {"w": w, "b": jnp.zeros((o,), jnp.float32)}

    def self_attn():
        return {"wqkv": jax.random.normal(_next_key(), (C, 3 * C), jnp.float32) / math.sqrt(C),
                "bqkv": jnp.zeros((3 * C,), jnp.float32),
                "wo": jax.random.normal(_next_key(), (C, C), jnp.float32) / math.sqrt(C),
                "bo": jnp.zeros((C,), jnp.float32)}

    def cross_attn():
        return {"wq": jax.random.normal(_next_key(), (C, C), jnp.float32) / math.sqrt(C),
                "bq": jnp.zeros((C,), jnp.float32),
                "wkv": jax.random.normal(_next_key(), (C, 2 * C), jnp.float32) / math.sqrt(C),
                "bkv": jnp.zeros((2 * C,), jnp.float32),
                "wo": jax.random.normal(_next_key(), (C, C), jnp.float32) / math.sqrt(C),
                "bo": jnp.zeros((C,), jnp.float32)}

    def mlp():
        return {"l1": lin(C, 4 * C), "l2": lin(4 * C, C)}

    # sinusoidal embedding table (CSDI-style)
    steps_col = jnp.arange(CONFIG["num_steps"], dtype=jnp.float32)[:, None]
    freqs = 10.0 ** (jnp.arange(E // 2, dtype=jnp.float32)[None, :] * 4.0 / (E // 2 - 1))
    tab = steps_col * freqs
    table = jnp.concatenate([jnp.sin(tab), jnp.cos(tab)], axis=1)

    return {
        "diff": {"table": table, "proj1": lin(E, C), "proj2": lin(C, C)},
        "lma_kernel": jax.random.normal(_next_key(), (F, 5), jnp.float32) * 0.02,
        "s_enc": {"in": lin(F, C), "att": self_attn()},
        "t_enc": {"in": lin(F, C), "att": self_attn()},
        "s_dec": lin(C, F),
        "t_dec": lin(C, F),
        "trend_block": [
            {"l1": lin(L, C), "l2": lin(C, 4 * C), "l3": lin(4 * C, C), "l4": lin(C, L)}
            for _ in range(R)
        ],
        "season_block": {"att_layers": [self_attn() for _ in range(R)], "mlp": mlp()},
        "corr": {"trend_proj": lin(C, 2 * C), "season_proj": lin(C, 2 * C),
                 "crs_t": cross_attn(), "crs_s": cross_attn(),
                 "trend_mlp": mlp(), "season_mlp": mlp()},
    }


# ----------------------------- ScoreNetwork.forward ----------------------------


def score_network_forward(params, x, diffusion_step):
    C = CONFIG["channels"]
    H = CONFIG["nheads"]

    # De-trend
    season, trend = lma_fwd(params["lma_kernel"], x, "deTrend")                 # (B, F, L) each

    # Encoders (+ fused diffusion-embedding projection)  -- 1 pallas_call
    season_enc, trend_enc = fused_encoders(params["diff"], params["s_enc"], params["t_enc"],
                                           season, trend, diffusion_step, H)   # (B, C, L)

    # Trend Analysis -- 1 pallas_call
    trend_h = trend_block_fwd(params["trend_block"], trend_enc)                 # (B, C, L)

    # Season Analysis (all Haar tiers in one call) -- 1 pallas_call
    season_h = season_block_fwd(params["season_block"], season_enc, H,
                                CONFIG["freq_tier"])                            # (B, C, L)

    # Trend-Season Correlation + decoders -- 1 pallas_call
    trend_dec, season_dec = corr_dec_fwd(params["corr"], params["s_dec"], params["t_dec"],
                                         trend_h, season_h, H, C)               # (B, F, L) each

    # Restore
    y, _ = lma_fwd(params["lma_kernel"], season_dec, "restore", trend_dec)      # (B, F, L)
    return y


# ----------------------------------- main --------------------------------------

if __name__ == "__main__":
    key = jax.random.PRNGKey(0)
    kx, _ = jax.random.split(key)
    x = jax.random.normal(kx, (B, N_FEATURE, SEQ_LEN), jnp.float32)
    diffusion_step = jnp.array([3, 7], dtype=jnp.int32)

    params = init_params()

    fwd = jax.jit(score_network_forward)
    y = fwd(params, x, diffusion_step)
    y = jax.block_until_ready(y)

    assert y.shape == (B, N_FEATURE, SEQ_LEN), y.shape
    assert jnp.all(jnp.isfinite(y))
    print("KERNEL_OK")
</pallas_src>

<mosaic_0001>
module attributes {stable_mosaic.version = 11 : i64} {
  func.func @_season_block_kernel(%arg0: i32, %arg1: memref<1x16x32xf32, #tpu.memory_space<vmem>>, %arg2: memref<16x16xf32, #tpu.memory_space<vmem>>, %arg3: memref<1x32x96xf32, #tpu.memory_space<vmem>>, %arg4: memref<1x1x96xf32, #tpu.memory_space<vmem>>, %arg5: memref<1x32x32xf32, #tpu.memory_space<vmem>>, %arg6: memref<1x1x32xf32, #tpu.memory_space<vmem>>, %arg7: memref<32x128xf32, #tpu.memory_space<vmem>>, %arg8: memref<1x128xf32, #tpu.memory_space<vmem>>, %arg9: memref<128x32xf32, #tpu.memory_space<vmem>>, %arg10: memref<1x32xf32, #tpu.memory_space<vmem>>, %arg11: memref<1x16x32xf32, #tpu.memory_space<vmem>>) attributes {dimension_semantics = [#tpu.dimension_semantics<parallel>], iteration_bounds = array<i64: 2>, scalar_prefetch = 0 : i64, scratch_operands = 0 : i64, tpu.core_type = #tpu.core_type<tc>, window_params = [{transform_indices = @transform_0, window_bounds = array<i64: 1, 16, 32>}, {pipeline_mode = #tpu.pipeline_mode<synchronous>, transform_indices = @transform_1, window_bounds = array<i64: 16, 16>}, {pipeline_mode = #tpu.pipeline_mode<synchronous>, transform_indices = @transform_2, window_bounds = array<i64: 1, 32, 96>}, {pipeline_mode = #tpu.pipeline_mode<synchronous>, transform_indices = @transform_3, window_bounds = array<i64: 1, 1, 96>}, {pipeline_mode = #tpu.pipeline_mode<synchronous>, transform_indices = @transform_4, window_bounds = array<i64: 1, 32, 32>}, {pipeline_mode = #tpu.pipeline_mode<synchronous>, transform_indices = @transform_5, window_bounds = array<i64: 1, 1, 32>}, {pipeline_mode = #tpu.pipeline_mode<synchronous>, transform_indices = @transform_6, window_bounds = array<i64: 32, 128>}, {pipeline_mode = #tpu.pipeline_mode<synchronous>, transform_indices = @transform_7, window_bounds = array<i64: 1, 128>}, {pipeline_mode = #tpu.pipeline_mode<synchronous>, transform_indices = @transform_8, window_bounds = array<i64: 128, 32>}, {pipeline_mode = #tpu.pipeline_mode<synchronous>, transform_indices = @transform_9, window_bounds = array<i64: 1, 32>}, {transform_indices = @transform_10, window_bounds = array<i64: 1, 16, 32>}]} {
    %c0 = arith.constant 0 : index
    %c0_0 = arith.constant 0 : index
    %c0_1 = arith.constant 0 : index
    %0 = vector.load %arg1[%c0, %c0_0, %c0_1] : memref<1x16x32xf32, #tpu.memory_space<vmem>>, vector<1x16x32xf32>
    %1 = vector.shape_cast %0 : vector<1x16x32xf32> to vector<16x32xf32>
    %c0_2 = arith.constant 0 : index
    %c0_3 = arith.constant 0 : index
    %2 = vector.load %arg2[%c0_2, %c0_3] : memref<16x16xf32, #tpu.memory_space<vmem>>, vector<16x16xf32>
    %c0_4 = arith.constant 0 : index
    %c0_5 = arith.constant 0 : index
    %c0_6 = arith.constant 0 : index
    %3 = vector.load %arg3[%c0_4, %c0_5, %c0_6] : memref<1x32x96xf32, #tpu.memory_space<vmem>>, vector<1x32x96xf32>
    %4 = vector.shape_cast %3 : vector<1x32x96xf32> to vector<32x96xf32>
    %c0_7 = arith.constant 0 : index
    %c0_8 = arith.constant 0 : index
    %c0_9 = arith.constant 0 : index
    %5 = vector.load %arg4[%c0_7, %c0_8, %c0_9] : memref<1x1x96xf32, #tpu.memory_space<vmem>>, vector<1x1x96xf32>
    %6 = vector.shape_cast %5 : vector<1x1x96xf32> to vector<1x96xf32>
    %c0_10 = arith.constant 0 : index
    %c0_11 = arith.constant 0 : index
    %c0_12 = arith.constant 0 : index
    %7 = vector.load %arg5[%c0_10, %c0_11, %c0_12] : memref<1x32x32xf32, #tpu.memory_space<vmem>>, vector<1x32x32xf32>
    %8 = vector.shape_cast %7 : vector<1x32x32xf32> to vector<32x32xf32>
    %c0_13 = arith.constant 0 : index
    %c0_14 = arith.constant 0 : index
    %c0_15 = arith.constant 0 : index
    %9 = vector.load %arg6[%c0_13, %c0_14, %c0_15] : memref<1x1x32xf32, #tpu.memory_space<vmem>>, vector<1x1x32xf32>
    %10 = vector.shape_cast %9 : vector<1x1x32xf32> to vector<1x32xf32>
    %11 = arith.truncf %1 : vector<16x32xf32> to vector<16x32xbf16>
    %12 = arith.truncf %4 : vector<32x96xf32> to vector<32x96xbf16>
    %cst = arith.constant dense<0.000000e+00> : vector<16x96xf32>
    %13 = tpu.matmul %11, %12, %cst {dimension_numbers = #tpu.dot_dimension_numbers<[1], [0], [0], [1], [0, 0, 1, 1], [], []>} : vector<16x32xbf16>, vector<32x96xbf16>, vector<16x96xf32> -> vector<16x96xf32>
    %14 = vector.broadcast %6 : vector<1x96xf32> to vector<16x96xf32>
    %15 = arith.addf %13, %14 : vector<16x96xf32>
    %16 = vector.extract_strided_slice %15 {offsets = [0, 0], sizes = [16, 32], strides = [1, 1]} : vector<16x96xf32> to vector<16x32xf32>
    %17 = vector.extract_strided_slice %15 {offsets = [0, 32], sizes = [16, 32], strides = [1, 1]} : vector<16x96xf32> to vector<16x32xf32>
    %18 = vector.extract_strided_slice %15 {offsets = [0, 64], sizes = [16, 32], strides = [1, 1]} : vector<16x96xf32> to vector<16x32xf32>
    %19 = vector.extract_strided_slice %16 {offsets = [0, 0], sizes = [16, 8], strides = [1, 1]} : vector<16x32xf32> to vector<16x8xf32>
    %20 = vector.extract_strided_slice %17 {offsets = [0, 0], sizes = [16, 8], strides = [1, 1]} : vector<16x32xf32> to vector<16x8xf32>
    %21 = arith.truncf %19 : vector<16x8xf32> to vector<16x8xbf16>
    %22 = arith.truncf %20 : vector<16x8xf32> to vector<16x8xbf16>
    %cst_16 = arith.constant dense<0.000000e+00> : vector<16x16xf32>
    %23 = tpu.matmul %21, %22, %cst_16 {dimension_numbers = #tpu.dot_dimension_numbers<[1], [1], [0], [0], [0, 0, 1, 0], [], []>} : vector<16x8xbf16>, vector<16x8xbf16>, vector<16x16xf32> -> vector<16x16xf32>
    %cst_17 = arith.constant 0.353553385 : f32
    %24 = vector.broadcast %cst_17 : f32 to vector<16x16xf32>
    %25 = arith.mulf %23, %24 : vector<16x16xf32>
    %26 = arith.addf %25, %2 : vector<16x16xf32>
    %cst_18 = arith.constant dense<0xFF800000> : vector<16xf32>
    %27 = vector.multi_reduction <maximumf>, %26, %cst_18 [1] : vector<16x16xf32> to vector<16xf32>
    %28 = vector.shape_cast %27 : vector<16xf32> to vector<16x1xf32>
    %29 = vector.broadcast %28 : vector<16x1xf32> to vector<16x16xf32>
    %30 = arith.subf %26, %29 : vector<16x16xf32>
    %31 = math.exp %30 : vector<16x16xf32>
    %cst_19 = arith.constant dense<0.000000e+00> : vector<16xf32>
    %32 = vector.multi_reduction <add>, %31, %cst_19 [1] : vector<16x16xf32> to vector<16xf32>
    %33 = vector.shape_cast %32 : vector<16xf32> to vector<16x1xf32>
    %34 = tpu.reciprocal %33 {approx = true} : vector<16x1xf32> -> vector<16x1xf32>
    %35 = vector.broadcast %34 : vector<16x1xf32> to vector<16x16xf32>
    %36 = arith.mulf %31, %35 : vector<16x16xf32>
    %37 = vector.extract_strided_slice %18 {offsets = [0, 0], sizes = [16, 8], strides = [1, 1]} : vector<16x32xf32> to vector<16x8xf32>
    %38 = arith.truncf %36 : vector<16x16xf32> to vector<16x16xbf16>
    %39 = arith.truncf %37 : vector<16x8xf32> to vector<16x8xbf16>
    %cst_20 = arith.constant dense<0.000000e+00> : vector<16x8xf32>
    %40 = tpu.matmul %38, %39, %cst_20 {dimension_numbers = #tpu.dot_dimension_numbers<[1], [0], [0], [1], [0, 0, 1, 1], [], []>} : vector<16x16xbf16>, vector<16x8xbf16>, vector<16x8xf32> -> vector<16x8xf32>
    %41 = vector.extract_strided_slice %8 {offsets = [0, 0], sizes = [8, 32], strides = [1, 1]} : vector<32x32xf32> to vector<8x32xf32>
    %42 = arith.truncf %40 : vector<16x8xf32> to vector<16x8xbf16>
    %43 = arith.truncf %41 : vector<8x32xf32> to vector<8x32xbf16>
    %cst_21 = arith.constant dense<0.000000e+00> : vector<16x32xf32>
    %44 = tpu.matmul %42, %43, %cst_21 {dimension_numbers = #tpu.dot_dimension_numbers<[1], [0], [0], [1], [0, 0, 1, 1], [], []>} : vector<16x8xbf16>, vector<8x32xbf16>, vector<16x32xf32> -> vector<16x32xf32>
    %45 = vector.extract_strided_slice %16 {offsets = [0, 8], sizes = [16, 8], strides = [1, 1]} : vector<16x32xf32> to vector<16x8xf32>
    %46 = vector.extract_strided_slice %17 {offsets = [0, 8], sizes = [16, 8], strides = [1, 1]} : vector<16x32xf32> to vector<16x8xf32>
    %47 = arith.truncf %45 : vector<16x8xf32> to vector<16x8xbf16>
    %48 = arith.truncf %46 : vector<16x8xf32> to vector<16x8xbf16>
    %cst_22 = arith.constant dense<0.000000e+00> : vector<16x16xf32>
    %49 = tpu.matmul %47, %48, %cst_22 {dimension_numbers = #tpu.dot_dimension_numbers<[1], [1], [0], [0], [0, 0, 1, 0], [], []>} : vector<16x8xbf16>, vector<16x8xbf16>, vector<16x16xf32> -> vector<16x16xf32>
    %cst_23 = arith.constant 0.353553385 : f32
    %50 = vector.broadcast %cst_23 : f32 to vector<16x16xf32>
    %51 = arith.mulf %49, %50 : vector<16x16xf32>
    %52 = arith.addf %51, %2 : vector<16x16xf32>
    %cst_24 = arith.constant dense<0xFF800000> : vector<16xf32>
    %53 = vector.multi_reduction <maximumf>, %52, %cst_24 [1] : vector<16x16xf32> to vector<16xf32>
    %54 = vector.shape_cast %53 : vector<16xf32> to vector<16x1xf32>
    %55 = vector.broadcast %54 : vector<16x1xf32> to vector<16x16xf32>
    %56 = arith.subf %52, %55 : vector<16x16xf32>
    %57 = math.exp %56 : vector<16x16xf32>
    %cst_25 = arith.constant dense<0.000000e+00> : vector<16xf32>
    %58 = vector.multi_reduction <add>, %57, %cst_25 [1] : vector<16x16xf32> to vector<16xf32>
    %59 = vector.shape_cast %58 : vector<16xf32> to vector<16x1xf32>
    %60 = tpu.reciprocal %59 {approx = true} : vector<16x1xf32> -> vector<16x1xf32>
    %61 = vector.broadcast %60 : vector<16x1xf32> to vector<16x16xf32>
    %62 = arith.mulf %57, %61 : vector<16x16xf32>
    %63 = vector.extract_strided_slice %18 {offsets = [0, 8], sizes = [16, 8], strides = [1, 1]} : vector<16x32xf32> to vector<16x8xf32>
    %64 = arith.truncf %62 : vector<16x16xf32> to vector<16x16xbf16>
    %65 = arith.truncf %63 : vector<16x8xf32> to vector<16x8xbf16>
    %cst_26 = arith.constant dense<0.000000e+00> : vector<16x8xf32>
    %66 = tpu.matmul %64, %65, %cst_26 {dimension_numbers = #tpu.dot_dimension_numbers<[1], [0], [0], [1], [0, 0, 1, 1], [], []>} : vector<16x16xbf16>, vector<16x8xbf16>, vector<16x8xf32> -> vector<16x8xf32>
    %67 = vector.extract_strided_slice %8 {offsets = [8, 0], sizes = [8, 32], strides = [1, 1]} : vector<32x32xf32> to vector<8x32xf32>
    %68 = arith.truncf %66 : vector<16x8xf32> to vector<16x8xbf16>
    %69 = arith.truncf %67 : vector<8x32xf32> to vector<8x32xbf16>
    %cst_27 = arith.constant dense<0.000000e+00> : vector<16x32xf32>
    %70 = tpu.matmul %68, %69, %cst_27 {dimension_numbers = #tpu.dot_dimension_numbers<[1], [0], [0], [1], [0, 0, 1, 1], [], []>} : vector<16x8xbf16>, vector<8x32xbf16>, vector<16x32xf32> -> vector<16x32xf32>
    %71 = arith.addf %44, %70 : vector<16x32xf32>
    %72 = vector.extract_strided_slice %16 {offsets = [0, 16], sizes = [16, 8], strides = [1, 1]} : vector<16x32xf32> to vector<16x8xf32>
    %73 = vector.extract_strided_slice %17 {offsets = [0, 16], sizes = [16, 8], strides = [1, 1]} : vector<16x32xf32> to vector<16x8xf32>
    %74 = arith.truncf %72 : vector<16x8xf32> to vector<16x8xbf16>
    %75 = arith.truncf %73 : vector<16x8xf32> to vector<16x8xbf16>
    %cst_28 = arith.constant dense<0.000000e+00> : vector<16x16xf32>
    %76 = tpu.matmul %74, %75, %cst_28 {dimension_numbers = #tpu.dot_dimension_numbers<[1], [1], [0], [0], [0, 0, 1, 0], [], []>} : vector<16x8xbf16>, vector<16x8xbf16>, vector<16x16xf32> -> vector<16x16xf32>
    %cst_29 = arith.constant 0.353553385 : f32
    %77 = vector.broadcast %cst_29 : f32 to vector<16x16xf32>
    %78 = arith.mulf %76, %77 : vector<16x16xf32>
    %79 = arith.addf %78, %2 : vector<16x16xf32>
    %cst_30 = arith.constant dense<0xFF800000> : vector<16xf32>
    %80 = vector.multi_reduction <maximumf>, %79, %cst_30 [1] : vector<16x16xf32> to vector<16xf32>
    %81 = vector.shape_cast %80 : vector<16xf32> to vector<16x1xf32>
    %82 = vector.broadcast %81 : vector<16x1xf32> to vector<16x16xf32>
    %83 = arith.subf %79, %82 : vector<16x16xf32>
    %84 = math.exp %83 : vector<16x16xf32>
    %cst_31 = arith.constant dense<0.000000e+00> : vector<16xf32>
    %85 = vector.multi_reduction <add>, %84, %cst_31 [1] : vector<16x16xf32> to vector<16xf32>
    %86 = vector.shape_cast %85 : vector<16xf32> to vector<16x1xf32>
    %87 = tpu.reciprocal %86 {approx = true} : vector<16x1xf32> -> vector<16x1xf32>
    %88 = vector.broadcast %87 : vector<16x1xf32> to vector<16x16xf32>
    %89 = arith.mulf %84, %88 : vector<16x16xf32>
    %90 = vector.extract_strided_slice %18 {offsets = [0, 16], sizes = [16, 8], strides = [1, 1]} : vector<16x32xf32> to vector<16x8xf32>
    %91 = arith.truncf %89 : vector<16x16xf32> to vector<16x16xbf16>
    %92 = arith.truncf %90 : vector<16x8xf32> to vector<16x8xbf16>
    %cst_32 = arith.constant dense<0.000000e+00> : vector<16x8xf32>
    %93 = tpu.matmul %91, %92, %cst_32 {dimension_numbers = #tpu.dot_dimension_numbers<[1], [0], [0], [1], [0, 0, 1, 1], [], []>} : vector<16x16xbf16>, vector<16x8xbf16>, vector<16x8xf32> -> vector<16x8xf32>
    %94 = vector.extract_strided_slice %8 {offsets = [16, 0], sizes = [8, 32], strides = [1, 1]} : vector<32x32xf32> to vector<8x32xf32>
    %95 = arith.truncf %93 : vector<16x8xf32> to vector<16x8xbf16>
    %96 = arith.truncf %94 : vector<8x32xf32> to vector<8x32xbf16>
    %cst_33 = arith.constant dense<0.000000e+00> : vector<16x32xf32>
    %97 = tpu.matmul %95, %96, %cst_33 {dimension_numbers = #tpu.dot_dimension_numbers<[1], [0], [0], [1], [0, 0, 1, 1], [], []>} : vector<16x8xbf16>, vector<8x32xbf16>, vector<16x32xf32> -> vector<16x32xf32>
    %98 = arith.addf %71, %97 : vector<16x32xf32>
    %99 = vector.extract_strided_slice %16 {offsets = [0, 24], sizes = [16, 8], strides = [1, 1]} : vector<16x32xf32> to vector<16x8xf32>
    %100 = vector.extract_strided_slice %17 {offsets = [0, 24], sizes = [16, 8], strides = [1, 1]} : vector<16x32xf32> to vector<16x8xf32>
    %101 = arith.truncf %99 : vector<16x8xf32> to vector<16x8xbf16>
    %102 = arith.truncf %100 : vector<16x8xf32> to vector<16x8xbf16>
    %cst_34 = arith.constant dense<0.000000e+00> : vector<16x16xf32>
    %103 = tpu.matmul %101, %102, %cst_34 {dimension_numbers = #tpu.dot_dimension_numbers<[1], [1], [0], [0], [0, 0, 1, 0], [], []>} : vector<16x8xbf16>, vector<16x8xbf16>, vector<16x16xf32> -> vector<16x16xf32>
    %cst_35 = arith.constant 0.353553385 : f32
    %104 = vector.broadcast %cst_35 : f32 to vector<16x16xf32>
    %105 = arith.mulf %103, %104 : vector<16x16xf32>
    %106 = arith.addf %105, %2 : vector<16x16xf32>
    %cst_36 = arith.constant dense<0xFF800000> : vector<16xf32>
    %107 = vector.multi_reduction <maximumf>, %106, %cst_36 [1] : vector<16x16xf32> to vector<16xf32>
    %108 = vector.shape_cast %107 : vector<16xf32> to vector<16x1xf32>
    %109 = vector.broadcast %108 : vector<16x1xf32> to vector<16x16xf32>
    %110 = arith.subf %106, %109 : vector<16x16xf32>
    %111 = math.exp %110 : vector<16x16xf32>
    %cst_37 = arith.constant dense<0.000000e+00> : vector<16xf32>
    %112 = vector.multi_reduction <add>, %111, %cst_37 [1] : vector<16x16xf32> to vector<16xf32>
    %113 = vector.shape_cast %112 : vector<16xf32> to vector<16x1xf32>
    %114 = tpu.reciprocal %113 {approx = true} : vector<16x1xf32> -> vector<16x1xf32>
    %115 = vector.broadcast %114 : vector<16x1xf32> to vector<16x16xf32>
    %116 = arith.mulf %111, %115 : vector<16x16xf32>
    %117 = vector.extract_strided_slice %18 {offsets = [0, 24], sizes = [16, 8], strides = [1, 1]} : vector<16x32xf32> to vector<16x8xf32>
    %118 = arith.truncf %116 : vector<16x16xf32> to vector<16x16xbf16>
    %119 = arith.truncf %117 : vector<16x8xf32> to vector<16x8xbf16>
    %cst_38 = arith.constant dense<0.000000e+00> : vector<16x8xf32>
    %120 = tpu.matmul %118, %119, %cst_38 {dimension_numbers = #tpu.dot_dimension_numbers<[1], [0], [0], [1], [0, 0, 1, 1], [], []>} : vector<16x16xbf16>, vector<16x8xbf16>, vector<16x8xf32> -> vector<16x8xf32>
    %121 = vector.extract_strided_slice %8 {offsets = [24, 0], sizes = [8, 32], strides = [1, 1]} : vector<32x32xf32> to vector<8x32xf32>
    %122 = arith.truncf %120 : vector<16x8xf32> to vector<16x8xbf16>
    %123 = arith.truncf %121 : vector<8x32xf32> to vector<8x32xbf16>
    %cst_39 = arith.constant dense<0.000000e+00> : vector<16x32xf32>
    %124 = tpu.matmul %122, %123, %cst_39 {dimension_numbers = #tpu.dot_dimension_numbers<[1], [0], [0], [1], [0, 0, 1, 1], [], []>} : vector<16x8xbf16>, vector<8x32xbf16>, vector<16x32xf32> -> vector<16x32xf32>
    %125 = arith.addf %98, %124 : vector<16x32xf32>
    %126 = vector.broadcast %10 : vector<1x32xf32> to vector<16x32xf32>
    %127 = arith.addf %125, %126 : vector<16x32xf32>
    %128 = arith.addf %1, %127 : vector<16x32xf32>
    %cst_40 = arith.constant dense<0.000000e+00> : vector<16xf32>
    %129 = vector.multi_reduction <add>, %128, %cst_40 [1] : vector<16x32xf32> to vector<16xf32>
    %130 = vector.shape_cast %129 : vector<16xf32> to vector<16x1xf32>
    %cst_41 = arith.constant 3.200000e+01 : f32
    %131 = vector.broadcast %cst_41 : f32 to vector<16x1xf32>
    %132 = arith.divf %130, %131 : vector<16x1xf32>
    %133 = vector.broadcast %132 : vector<16x1xf32> to vector<16x32xf32>
    %134 = arith.subf %128, %133 : vector<16x32xf32>
    %135 = arith.mulf %134, %134 : vector<16x32xf32>
    %cst_42 = arith.constant dense<0.000000e+00> : vector<16xf32>
    %136 = vector.multi_reduction <add>, %135, %cst_42 [1] : vector<16x32xf32> to vector<16xf32>
    %137 = vector.shape_cast %136 : vector<16xf32> to vector<16x1xf32>
    %cst_43 = arith.constant 3.200000e+01 : f32
    %138 = vector.broadcast %cst_43 : f32 to vector<16x1xf32>
    %139 = arith.divf %137, %138 : vector<16x1xf32>
    %cst_44 = arith.constant 9.99999974E-6 : f32
    %140 = vector.broadcast %cst_44 : f32 to vector<16x1xf32>
    %141 = arith.addf %139, %140 : vector<16x1xf32>
    %142 = math.rsqrt %141 : vector<16x1xf32>
    %143 = vector.broadcast %142 : vector<16x1xf32> to vector<16x32xf32>
    %144 = arith.mulf %134, %143 : vector<16x32xf32>
    %c0_45 = arith.constant 0 : index
    %c0_46 = arith.constant 0 : index
    %145 = vector.load %arg7[%c0_45, %c0_46] : memref<32x128xf32, #tpu.memory_space<vmem>>, vector<32x128xf32>
    %c0_47 = arith.constant 0 : index
    %c0_48 = arith.constant 0 : index
    %146 = vector.load %arg8[%c0_47, %c0_48] : memref<1x128xf32, #tpu.memory_space<vmem>>, vector<1x128xf32>
    %c0_49 = arith.constant 0 : index
    %c0_50 = arith.constant 0 : index
    %147 = vector.load %arg9[%c0_49, %c0_50] : memref<128x32xf32, #tpu.memory_space<vmem>>, vector<128x32xf32>
    %c0_51 = arith.constant 0 : index
    %c0_52 = arith.constant 0 : index
    %148 = vector.load %arg10[%c0_51, %c0_52] : memref<1x32xf32, #tpu.memory_space<vmem>>, vector<1x32xf32>
    %149 = arith.truncf %144 : vector<16x32xf32> to vector<16x32xbf16>
    %150 = arith.truncf %145 : vector<32x128xf32> to vector<32x128xbf16>
    %cst_53 = arith.constant dense<0.000000e+00> : vector<16x128xf32>
    %151 = tpu.matmul %149, %150, %cst_53 {dimension_numbers = #tpu.dot_dimension_numbers<[1], [0], [0], [1], [0, 0, 1, 1], [], []>} : vector<16x32xbf16>, vector<32x128xbf16>, vector<16x128xf32> -> vector<16x128xf32>
    %152 = vector.broadcast %146 : vector<1x128xf32> to vector<16x128xf32>
    %153 = arith.addf %151, %152 : vector<16x128xf32>
    %cst_54 = arith.constant 5.000000e-01 : f32
    %154 = vector.broadcast %cst_54 : f32 to vector<16x128xf32>
    %155 = arith.mulf %154, %153 : vector<16x128xf32>
    %cst_55 = arith.constant 4.471500e-02 : f32
    %156 = vector.broadcast %cst_55 : f32 to vector<16x128xf32>
    %157 = arith.mulf %156, %153 : vector<16x128xf32>
    %158 = arith.mulf %157, %153 : vector<16x128xf32>
    %159 = arith.mulf %158, %153 : vector<16x128xf32>
    %160 = arith.addf %153, %159 : vector<16x128xf32>
    %cst_56 = arith.constant 0.797884583 : f32
    %161 = vector.broadcast %cst_56 : f32 to vector<16x128xf32>
    %162 = arith.mulf %161, %160 : vector<16x128xf32>
    %163 = math.tanh %162 : vector<16x128xf32>
    %cst_57 = arith.constant 1.000000e+00 : f32
    %164 = vector.broadcast %cst_57 : f32 to vector<16x128xf32>
    %165 = arith.addf %164, %163 : vector<16x128xf32>
    %166 = arith.mulf %155, %165 : vector<16x128xf32>
    %167 = arith.truncf %166 : vector<16x128xf32> to vector<16x128xbf16>
    %168 = arith.truncf %147 : vector<128x32xf32> to vector<128x32xbf16>
    %cst_58 = arith.constant dense<0.000000e+00> : vector<16x32xf32>
    %169 = tpu.matmul %167, %168, %cst_58 {dimension_numbers = #tpu.dot_dimension_numbers<[1], [0], [0], [1], [0, 0, 1, 1], [], []>} : vector<16x128xbf16>, vector<128x32xbf16>, vector<16x32xf32> -> vector<16x32xf32>
    %170 = vector.broadcast %148 : vector<1x32xf32> to vector<16x32xf32>
    %171 = arith.addf %169, %170 : vector<16x32xf32>
    %172 = arith.addf %128, %171 : vector<16x32xf32>
    %c0_59 = arith.constant 0 : index
    %c0_60 = arith.constant 0 : index
    %c0_61 = arith.constant 0 : index
    %173 = vector.load %arg11[%c0_59, %c0_60, %c0_61] : memref<1x16x32xf32, #tpu.memory_space<vmem>>, vector<1x16x32xf32>
    %174 = vector.shape_cast %173 : vector<1x16x32xf32> to vector<16x32xf32>
    %175 = vector.shape_cast %172 : vector<16x32xf32> to vector<1x16x32xf32>
    tpu.vector_store %arg11[%c0_59, %c0_60, %c0_61], %175 {strides = array<i32>} : memref<1x16x32xf32, #tpu.memory_space<vmem>>, vector<1x16x32xf32>,
    return
  }
  func.func @transform_0(%arg0: i32) -> (i32, i32, i32) {
    %c0_i32 = arith.constant 0 : i32
    %c0_i32_0 = arith.constant 0 : i32
    %c0_i32_1 = arith.constant 0 : i32
    return %arg0, %c0_i32, %c0_i32_0 : i32, i32, i32
  }
  func.func @transform_1(%arg0: i32) -> (i32, i32) {
    %c0_i32 = arith.constant 0 : i32
    %c0_i32_0 = arith.constant 0 : i32
    %c0_i32_1 = arith.constant 0 : i32
    return %c0_i32, %c0_i32_0 : i32, i32
  }
  func.func @transform_2(%arg0: i32) -> (i32, i32, i32) {
    %c0_i32 = arith.constant 0 : i32
    %c0_i32_0 = arith.constant 0 : i32
    %c0_i32_1 = arith.constant 0 : i32
    %c0_i32_2 = arith.constant 0 : i32
    return %c0_i32, %c0_i32_0, %c0_i32_1 : i32, i32, i32
  }
  func.func @transform_3(%arg0: i32) -> (i32, i32, i32) {
    %c0_i32 = arith.constant 0 : i32
    %c0_i32_0 = arith.constant 0 : i32
    %c0_i32_1 = arith.constant 0 : i32
    %c0_i32_2 = arith.constant 0 : i32
    return %c0_i32, %c0_i32_0, %c0_i32_1 : i32, i32, i32
  }
  func.func @transform_4(%arg0: i32) -> (i32, i32, i32) {
    %c0_i32 = arith.constant 0 : i32
    %c0_i32_0 = arith.constant 0 : i32
    %c0_i32_1 = arith.constant 0 : i32
    %c0_i32_2 = arith.constant 0 : i32
    return %c0_i32, %c0_i32_0, %c0_i32_1 : i32, i32, i32
  }
  func.func @transform_5(%arg0: i32) -> (i32, i32, i32) {
    %c0_i32 = arith.constant 0 : i32
    %c0_i32_0 = arith.constant 0 : i32
    %c0_i32_1 = arith.constant 0 : i32
    %c0_i32_2 = arith.constant 0 : i32
    return %c0_i32, %c0_i32_0, %c0_i32_1 : i32, i32, i32
  }
  func.func @transform_6(%arg0: i32) -> (i32, i32) {
    %c0_i32 = arith.constant 0 : i32
    %c0_i32_0 = arith.constant 0 : i32
    %c0_i32_1 = arith.constant 0 : i32
    return %c0_i32, %c0_i32_0 : i32, i32
  }
  func.func @transform_7(%arg0: i32) -> (i32, i32) {
    %c0_i32 = arith.constant 0 : i32
    %c0_i32_0 = arith.constant 0 : i32
    %c0_i32_1 = arith.constant 0 : i32
    return %c0_i32, %c0_i32_0 : i32, i32
  }
  func.func @transform_8(%arg0: i32) -> (i32, i32) {
    %c0_i32 = arith.constant 0 : i32
    %c0_i32_0 = arith.constant 0 : i32
    %c0_i32_1 = arith.constant 0 : i32
    return %c0_i32, %c0_i32_0 : i32, i32
  }
  func.func @transform_9(%arg0: i32) -> (i32, i32) {
    %c0_i32 = arith.constant 0 : i32
    %c0_i32_0 = arith.constant 0 : i32
    %c0_i32_1 = arith.constant 0 : i32
    return %c0_i32, %c0_i32_0 : i32, i32
  }
  func.func @transform_10(%arg0: i32) -> (i32, i32, i32) {
    %c0_i32 = arith.constant 0 : i32
    %c0_i32_0 = arith.constant 0 : i32
    %c0_i32_1 = arith.constant 0 : i32
    return %arg0, %c0_i32, %c0_i32_0 : i32, i32, i32
  }
}

module attributes {stable_mosaic.version = 11 : i64} {
  func.func @_encoder_kernel(%arg0: i32, %arg1: i32, %arg2: memref<1x1x32xf32, #tpu.memory_space<vmem>>, %arg3: memref<32x32xf32, #tpu.memory_space<vmem>>, %arg4: memref<1x32xf32, #tpu.memory_space<vmem>>, %arg5: memref<32x32xf32, #tpu.memory_space<vmem>>, %arg6: memref<1x32xf32, #tpu.memory_space<vmem>>, %arg7: memref<1x1x16x4xf32, #tpu.memory_space<vmem>>, %arg8: memref<1x4x32xf32, #tpu.memory_space<vmem>>, %arg9: memref<1x1x32xf32, #tpu.memory_space<vmem>>, %arg10: memref<1x32x96xf32, #tpu.memory_space<vmem>>, %arg11: memref<1x1x96xf32, #tpu.memory_space<vmem>>, %arg12: memref<1x32x32xf32, #tpu.memory_space<vmem>>, %arg13: memref<1x1x32xf32, #tpu.memory_space<vmem>>, %arg14: memref<1x1x16x32xf32, #tpu.memory_space<vmem>>) attributes {dimension_semantics = [#tpu.dimension_semantics<parallel>, #tpu.dimension_semantics<parallel>], iteration_bounds = array<i64: 2, 2>, scalar_prefetch = 0 : i64, scratch_operands = 0 : i64, tpu.core_type = #tpu.core_type<tc>, window_params = [{transform_indices = @transform_0, window_bounds = array<i64: 1, 1, 32>}, {pipeline_mode = #tpu.pipeline_mode<synchronous>, transform_indices = @transform_1, window_bounds = array<i64: 32, 32>}, {pipeline_mode = #tpu.pipeline_mode<synchronous>, transform_indices = @transform_2, window_bounds = array<i64: 1, 32>}, {pipeline_mode = #tpu.pipeline_mode<synchronous>, transform_indices = @transform_3, window_bounds = array<i64: 32, 32>}, {pipeline_mode = #tpu.pipeline_mode<synchronous>, transform_indices = @transform_4, window_bounds = array<i64: 1, 32>}, {transform_indices = @transform_5, window_bounds = array<i64: 1, 1, 16, 4>}, {transform_indices = @transform_6, window_bounds = array<i64: 1, 4, 32>}, {transform_indices = @transform_7, window_bounds = array<i64: 1, 1, 32>}, {transform_indices = @transform_8, window_bounds = array<i64: 1, 32, 96>}, {transform_indices = @transform_9, window_bounds = array<i64: 1, 1, 96>}, {transform_indices = @transform_10, window_bounds = array<i64: 1, 32, 32>}, {transform_indices = @transform_11, window_bounds = array<i64: 1, 1, 32>}, {transform_indices = @transform_12, window_bounds = array<i64: 1, 1, 16, 32>}]} {
    %c0 = arith.constant 0 : index
    %c0_0 = arith.constant 0 : index
    %c0_1 = arith.constant 0 : index
    %0 = vector.load %arg2[%c0, %c0_0, %c0_1] : memref<1x1x32xf32, #tpu.memory_space<vmem>>, vector<1x1x32xf32>
    %1 = vector.shape_cast %0 : vector<1x1x32xf32> to vector<1x32xf32>
    %c0_2 = arith.constant 0 : index
    %c0_3 = arith.constant 0 : index
    %2 = vector.load %arg3[%c0_2, %c0_3] : memref<32x32xf32, #tpu.memory_space<vmem>>, vector<32x32xf32>
    %3 = arith.truncf %1 : vector<1x32xf32> to vector<1x32xbf16>
    %4 = arith.truncf %2 : vector<32x32xf32> to vector<32x32xbf16>
    %cst = arith.constant dense<0.000000e+00> : vector<1x32xf32>
    %5 = tpu.matmul %3, %4, %cst {dimension_numbers = #tpu.dot_dimension_numbers<[1], [0], [0], [1], [0, 0, 1, 1], [], []>} : vector<1x32xbf16>, vector<32x32xbf16>, vector<1x32xf32> -> vector<1x32xf32>
    %c0_4 = arith.constant 0 : index
    %c0_5 = arith.constant 0 : index
    %6 = vector.load %arg4[%c0_4, %c0_5] : memref<1x32xf32, #tpu.memory_space<vmem>>, vector<1x32xf32>
    %7 = arith.addf %5, %6 : vector<1x32xf32>
    %cst_6 = arith.constant 0.000000e+00 : f32
    %8 = vector.broadcast %cst_6 : f32 to vector<1x32xf32>
    %9 = arith.subf %8, %7 : vector<1x32xf32>
    %10 = math.exp %9 : vector<1x32xf32>
    %cst_7 = arith.constant 1.000000e+00 : f32
    %11 = vector.broadcast %cst_7 : f32 to vector<1x32xf32>
    %12 = arith.addf %11, %10 : vector<1x32xf32>
    %13 = tpu.reciprocal %12 {approx = true} : vector<1x32xf32> -> vector<1x32xf32>
    %14 = arith.mulf %7, %13 : vector<1x32xf32>
    %c0_8 = arith.constant 0 : index
    %c0_9 = arith.constant 0 : index
    %15 = vector.load %arg5[%c0_8, %c0_9] : memref<32x32xf32, #tpu.memory_space<vmem>>, vector<32x32xf32>
    %16 = arith.truncf %14 : vector<1x32xf32> to vector<1x32xbf16>
    %17 = arith.truncf %15 : vector<32x32xf32> to vector<32x32xbf16>
    %cst_10 = arith.constant dense<0.000000e+00> : vector<1x32xf32>
    %18 = tpu.matmul %16, %17, %cst_10 {dimension_numbers = #tpu.dot_dimension_numbers<[1], [0], [0], [1], [0, 0, 1, 1], [], []>} : vector<1x32xbf16>, vector<32x32xbf16>, vector<1x32xf32> -> vector<1x32xf32>
    %c0_11 = arith.constant 0 : index
    %c0_12 = arith.constant 0 : index
    %19 = vector.load %arg6[%c0_11, %c0_12] : memref<1x32xf32, #tpu.memory_space<vmem>>, vector<1x32xf32>
    %20 = arith.addf %18, %19 : vector<1x32xf32>
    %cst_13 = arith.constant 0.000000e+00 : f32
    %21 = vector.broadcast %cst_13 : f32 to vector<1x32xf32>
    %22 = arith.subf %21, %20 : vector<1x32xf32>
    %23 = math.exp %22 : vector<1x32xf32>
    %cst_14 = arith.constant 1.000000e+00 : f32
    %24 = vector.broadcast %cst_14 : f32 to vector<1x32xf32>
    %25 = arith.addf %24, %23 : vector<1x32xf32>
    %26 = tpu.reciprocal %25 {approx = true} : vector<1x32xf32> -> vector<1x32xf32>
    %27 = arith.mulf %20, %26 : vector<1x32xf32>
    %c0_15 = arith.constant 0 : index
    %c0_16 = arith.constant 0 : index
    %c0_17 = arith.constant 0 : index
    %c0_18 = arith.constant 0 : index
    %28 = vector.load %arg7[%c0_15, %c0_16, %c0_17, %c0_18] : memref<1x1x16x4xf32, #tpu.memory_space<vmem>>, vector<1x1x16x4xf32>
    %29 = vector.shape_cast %28 : vector<1x1x16x4xf32> to vector<16x4xf32>
    %c0_19 = arith.constant 0 : index
    %c0_20 = arith.constant 0 : index
    %c0_21 = arith.constant 0 : index
    %30 = vector.load %arg8[%c0_19, %c0_20, %c0_21] : memref<1x4x32xf32, #tpu.memory_space<vmem>>, vector<1x4x32xf32>
    %31 = vector.shape_cast %30 : vector<1x4x32xf32> to vector<4x32xf32>
    %32 = arith.truncf %29 : vector<16x4xf32> to vector<16x4xbf16>
    %33 = arith.truncf %31 : vector<4x32xf32> to vector<4x32xbf16>
    %cst_22 = arith.constant dense<0.000000e+00> : vector<16x32xf32>
    %34 = tpu.matmul %32, %33, %cst_22 {dimension_numbers = #tpu.dot_dimension_numbers<[1], [0], [0], [1], [0, 0, 1, 1], [], []>} : vector<16x4xbf16>, vector<4x32xbf16>, vector<16x32xf32> -> vector<16x32xf32>
    %c0_23 = arith.constant 0 : index
    %c0_24 = arith.constant 0 : index
    %c0_25 = arith.constant 0 : index
    %35 = vector.load %arg9[%c0_23, %c0_24, %c0_25] : memref<1x1x32xf32, #tpu.memory_space<vmem>>, vector<1x1x32xf32>
    %36 = vector.shape_cast %35 : vector<1x1x32xf32> to vector<1x32xf32>
    %37 = vector.broadcast %36 : vector<1x32xf32> to vector<16x32xf32>
    %38 = arith.addf %34, %37 : vector<16x32xf32>
    %39 = vector.broadcast %27 : vector<1x32xf32> to vector<16x32xf32>
    %40 = arith.addf %38, %39 : vector<16x32xf32>
    %c0_26 = arith.constant 0 : index
    %c0_27 = arith.constant 0 : index
    %c0_28 = arith.constant 0 : index
    %41 = vector.load %arg10[%c0_26, %c0_27, %c0_28] : memref<1x32x96xf32, #tpu.memory_space<vmem>>, vector<1x32x96xf32>
    %42 = vector.shape_cast %41 : vector<1x32x96xf32> to vector<32x96xf32>
    %c0_29 = arith.constant 0 : index
    %c0_30 = arith.constant 0 : index
    %c0_31 = arith.constant 0 : index
    %43 = vector.load %arg11[%c0_29, %c0_30, %c0_31] : memref<1x1x96xf32, #tpu.memory_space<vmem>>, vector<1x1x96xf32>
    %44 = vector.shape_cast %43 : vector<1x1x96xf32> to vector<1x96xf32>
    %c0_32 = arith.constant 0 : index
    %c0_33 = arith.constant 0 : index
    %c0_34 = arith.constant 0 : index
    %45 = vector.load %arg12[%c0_32, %c0_33, %c0_34] : memref<1x32x32xf32, #tpu.memory_space<vmem>>, vector<1x32x32xf32>
    %46 = vector.shape_cast %45 : vector<1x32x32xf32> to vector<32x32xf32>
    %c0_35 = arith.constant 0 : index
    %c0_36 = arith.constant 0 : index
    %c0_37 = arith.constant 0 : index
    %47 = vector.load %arg13[%c0_35, %c0_36, %c0_37] : memref<1x1x32xf32, #tpu.memory_space<vmem>>, vector<1x1x32xf32>
    %48 = vector.shape_cast %47 : vector<1x1x32xf32> to vector<1x32xf32>
    %49 = arith.truncf %40 : vector<16x32xf32> to vector<16x32xbf16>
    %50 = arith.truncf %42 : vector<32x96xf32> to vector<32x96xbf16>
    %cst_38 = arith.constant dense<0.000000e+00> : vector<16x96xf32>
    %51 = tpu.matmul %49, %50, %cst_38 {dimension_numbers = #tpu.dot_dimension_numbers<[1], [0], [0], [1], [0, 0, 1, 1], [], []>} : vector<16x32xbf16>, vector<32x96xbf16>, vector<16x96xf32> -> vector<16x96xf32>
    %52 = vector.broadcast %44 : vector<1x96xf32> to vector<16x96xf32>
    %53 = arith.addf %51, %52 : vector<16x96xf32>
    %54 = vector.extract_strided_slice %53 {offsets = [0, 0], sizes = [16, 32], strides = [1, 1]} : vector<16x96xf32> to vector<16x32xf32>
    %55 = vector.extract_strided_slice %53 {offsets = [0, 32], sizes = [16, 32], strides = [1, 1]} : vector<16x96xf32> to vector<16x32xf32>
    %56 = vector.extract_strided_slice %53 {offsets = [0, 64], sizes = [16, 32], strides = [1, 1]} : vector<16x96xf32> to vector<16x32xf32>
    %57 = vector.extract_strided_slice %54 {offsets = [0, 0], sizes = [16, 8], strides = [1, 1]} : vector<16x32xf32> to vector<16x8xf32>
    %58 = vector.extract_strided_slice %55 {offsets = [0, 0], sizes = [16, 8], strides = [1, 1]} : vector<16x32xf32> to vector<16x8xf32>
    %59 = arith.truncf %57 : vector<16x8xf32> to vector<16x8xbf16>
    %60 = arith.truncf %58 : vector<16x8xf32> to vector<16x8xbf16>
    %cst_39 = arith.constant dense<0.000000e+00> : vector<16x16xf32>
    %61 = tpu.matmul %59, %60, %cst_39 {dimension_numbers = #tpu.dot_dimension_numbers<[1], [1], [0], [0], [0, 0, 1, 0], [], []>} : vector<16x8xbf16>, vector<16x8xbf16>, vector<16x16xf32> -> vector<16x16xf32>
    %cst_40 = arith.constant 0.353553385 : f32
    %62 = vector.broadcast %cst_40 : f32 to vector<16x16xf32>
    %63 = arith.mulf %61, %62 : vector<16x16xf32>
    %cst_41 = arith.constant dense<0xFF800000> : vector<16xf32>
    %64 = vector.multi_reduction <maximumf>, %63, %cst_41 [1] : vector<16x16xf32> to vector<16xf32>
    %65 = vector.shape_cast %64 : vector<16xf32> to vector<16x1xf32>
    %66 = vector.broadcast %65 : vector<16x1xf32> to vector<16x16xf32>
    %67 = arith.subf %63, %66 : vector<16x16xf32>
    %68 = math.exp %67 : vector<16x16xf32>
    %cst_42 = arith.constant dense<0.000000e+00> : vector<16xf32>
    %69 = vector.multi_reduction <add>, %68, %cst_42 [1] : vector<16x16xf32> to vector<16xf32>
    %70 = vector.shape_cast %69 : vector<16xf32> to vector<16x1xf32>
    %71 = tpu.reciprocal %70 {approx = true} : vector<16x1xf32> -> vector<16x1xf32>
    %72 = vector.broadcast %71 : vector<16x1xf32> to vector<16x16xf32>
    %73 = arith.mulf %68, %72 : vector<16x16xf32>
    %74 = vector.extract_strided_slice %56 {offsets = [0, 0], sizes = [16, 8], strides = [1, 1]} : vector<16x32xf32> to vector<16x8xf32>
    %75 = arith.truncf %73 : vector<16x16xf32> to vector<16x16xbf16>
    %76 = arith.truncf %74 : vector<16x8xf32> to vector<16x8xbf16>
    %cst_43 = arith.constant dense<0.000000e+00> : vector<16x8xf32>
    %77 = tpu.matmul %75, %76, %cst_43 {dimension_numbers = #tpu.dot_dimension_numbers<[1], [0], [0], [1], [0, 0, 1, 1], [], []>} : vector<16x16xbf16>, vector<16x8xbf16>, vector<16x8xf32> -> vector<16x8xf32>
    %78 = vector.extract_strided_slice %46 {offsets = [0, 0], sizes = [8, 32], strides = [1, 1]} : vector<32x32xf32> to vector<8x32xf32>
    %79 = arith.truncf %77 : vector<16x8xf32> to vector<16x8xbf16>
    %80 = arith.truncf %78 : vector<8x32xf32> to vector<8x32xbf16>
    %cst_44 = arith.constant dense<0.000000e+00> : vector<16x32xf32>
    %81 = tpu.matmul %79, %80, %cst_44 {dimension_numbers = #tpu.dot_dimension_numbers<[1], [0], [0], [1], [0, 0, 1, 1], [], []>} : vector<16x8xbf16>, vector<8x32xbf16>, vector<16x32xf32> -> vector<16x32xf32>
    %82 = vector.extract_strided_slice %54 {offsets = [0, 8], sizes = [16, 8], strides = [1, 1]} : vector<16x32xf32> to vector<16x8xf32>
    %83 = vector.extract_strided_slice %55 {offsets = [0, 8], sizes = [16, 8], strides = [1, 1]} : vector<16x32xf32> to vector<16x8xf32>
    %84 = arith.truncf %82 : vector<16x8xf32> to vector<16x8xbf16>
    %85 = arith.truncf %83 : vector<16x8xf32> to vector<16x8xbf16>
    %cst_45 = arith.constant dense<0.000000e+00> : vector<16x16xf32>
    %86 = tpu.matmul %84, %85, %cst_45 {dimension_numbers = #tpu.dot_dimension_numbers<[1], [1], [0], [0], [0, 0, 1, 0], [], []>} : vector<16x8xbf16>, vector<16x8xbf16>, vector<16x16xf32> -> vector<16x16xf32>
    %cst_46 = arith.constant 0.353553385 : f32
    %87 = vector.broadcast %cst_46 : f32 to vector<16x16xf32>
    %88 = arith.mulf %86, %87 : vector<16x16xf32>
    %cst_47 = arith.constant dense<0xFF800000> : vector<16xf32>
    %89 = vector.multi_reduction <maximumf>, %88, %cst_47 [1] : vector<16x16xf32> to vector<16xf32>
    %90 = vector.shape_cast %89 : vector<16xf32> to vector<16x1xf32>
    %91 = vector.broadcast %90 : vector<16x1xf32> to vector<16x16xf32>
    %92 = arith.subf %88, %91 : vector<16x16xf32>
    %93 = math.exp %92 : vector<16x16xf32>
    %cst_48 = arith.constant dense<0.000000e+00> : vector<16xf32>
    %94 = vector.multi_reduction <add>, %93, %cst_48 [1] : vector<16x16xf32> to vector<16xf32>
    %95 = vector.shape_cast %94 : vector<16xf32> to vector<16x1xf32>
    %96 = tpu.reciprocal %95 {approx = true} : vector<16x1xf32> -> vector<16x1xf32>
    %97 = vector.broadcast %96 : vector<16x1xf32> to vector<16x16xf32>
    %98 = arith.mulf %93, %97 : vector<16x16xf32>
    %99 = vector.extract_strided_slice %56 {offsets = [0, 8], sizes = [16, 8], strides = [1, 1]} : vector<16x32xf32> to vector<16x8xf32>
    %100 = arith.truncf %98 : vector<16x16xf32> to vector<16x16xbf16>
    %101 = arith.truncf %99 : vector<16x8xf32> to vector<16x8xbf16>
    %cst_49 = arith.constant dense<0.000000e+00> : vector<16x8xf32>
    %102 = tpu.matmul %100, %101, %cst_49 {dimension_numbers = #tpu.dot_dimension_numbers<[1], [0], [0], [1], [0, 0, 1, 1], [], []>} : vector<16x16xbf16>, vector<16x8xbf16>, vector<16x8xf32> -> vector<16x8xf32>
    %103 = vector.extract_strided_slice %46 {offsets = [8, 0], sizes = [8, 32], strides = [1, 1]} : vector<32x32xf32> to vector<8x32xf32>
    %104 = arith.truncf %102 : vector<16x8xf32> to vector<16x8xbf16>
    %105 = arith.truncf %103 : vector<8x32xf32> to vector<8x32xbf16>
    %cst_50 = arith.constant dense<0.000000e+00> : vector<16x32xf32>
    %106 = tpu.matmul %104, %105, %cst_50 {dimension_numbers = #tpu.dot_dimension_numbers<[1], [0], [0], [1], [0, 0, 1, 1], [], []>} : vector<16x8xbf16>, vector<8x32xbf16>, vector<16x32xf32> -> vector<16x32xf32>
    %107 = arith.addf %81, %106 : vector<16x32xf32>
    %108 = vector.extract_strided_slice %54 {offsets = [0, 16], sizes = [16, 8], strides = [1, 1]} : vector<16x32xf32> to vector<16x8xf32>
    %109 = vector.extract_strided_slice %55 {offsets = [0, 16], sizes = [16, 8], strides = [1, 1]} : vector<16x32xf32> to vector<16x8xf32>
    %110 = arith.truncf %108 : vector<16x8xf32> to vector<16x8xbf16>
    %111 = arith.truncf %109 : vector<16x8xf32> to vector<16x8xbf16>
    %cst_51 = arith.constant dense<0.000000e+00> : vector<16x16xf32>
    %112 = tpu.matmul %110, %111, %cst_51 {dimension_numbers = #tpu.dot_dimension_numbers<[1], [1], [0], [0], [0, 0, 1, 0], [], []>} : vector<16x8xbf16>, vector<16x8xbf16>, vector<16x16xf32> -> vector<16x16xf32>
    %cst_52 = arith.constant 0.353553385 : f32
    %113 = vector.broadcast %cst_52 : f32 to vector<16x16xf32>
    %114 = arith.mulf %112, %113 : vector<16x16xf32>
    %cst_53 = arith.constant dense<0xFF800000> : vector<16xf32>
    %115 = vector.multi_reduction <maximumf>, %114, %cst_53 [1] : vector<16x16xf32> to vector<16xf32>
    %116 = vector.shape_cast %115 : vector<16xf32> to vector<16x1xf32>
    %117 = vector.broadcast %116 : vector<16x1xf32> to vector<16x16xf32>
    %118 = arith.subf %114, %117 : vector<16x16xf32>
    %119 = math.exp %118 : vector<16x16xf32>
    %cst_54 = arith.constant dense<0.000000e+00> : vector<16xf32>
    %120 = vector.multi_reduction <add>, %119, %cst_54 [1] : vector<16x16xf32> to vector<16xf32>
    %121 = vector.shape_cast %120 : vector<16xf32> to vector<16x1xf32>
    %122 = tpu.reciprocal %121 {approx = true} : vector<16x1xf32> -> vector<16x1xf32>
    %123 = vector.broadcast %122 : vector<16x1xf32> to vector<16x16xf32>
    %124 = arith.mulf %119, %123 : vector<16x16xf32>
    %125 = vector.extract_strided_slice %56 {offsets = [0, 16], sizes = [16, 8], strides = [1, 1]} : vector<16x32xf32> to vector<16x8xf32>
    %126 = arith.truncf %124 : vector<16x16xf32> to vector<16x16xbf16>
    %127 = arith.truncf %125 : vector<16x8xf32> to vector<16x8xbf16>
    %cst_55 = arith.constant dense<0.000000e+00> : vector<16x8xf32>
    %128 = tpu.matmul %126, %127, %cst_55 {dimension_numbers = #tpu.dot_dimension_numbers<[1], [0], [0], [1], [0, 0, 1, 1], [], []>} : vector<16x16xbf16>, vector<16x8xbf16>, vector<16x8xf32> -> vector<16x8xf32>
    %129 = vector.extract_strided_slice %46 {offsets = [16, 0], sizes = [8, 32], strides = [1, 1]} : vector<32x32xf32> to vector<8x32xf32>
    %130 = arith.truncf %128 : vector<16x8xf32> to vector<16x8xbf16>
    %131 = arith.truncf %129 : vector<8x32xf32> to vector<8x32xbf16>
    %cst_56 = arith.constant dense<0.000000e+00> : vector<16x32xf32>
    %132 = tpu.matmul %130, %131, %cst_56 {dimension_numbers = #tpu.dot_dimension_numbers<[1], [0], [0], [1], [0, 0, 1, 1], [], []>} : vector<16x8xbf16>, vector<8x32xbf16>, vector<16x32xf32> -> vector<16x32xf32>
    %133 = arith.addf %107, %132 : vector<16x32xf32>
    %134 = vector.extract_strided_slice %54 {offsets = [0, 24], sizes = [16, 8], strides = [1, 1]} : vector<16x32xf32> to vector<16x8xf32>
    %135 = vector.extract_strided_slice %55 {offsets = [0, 24], sizes = [16, 8], strides = [1, 1]} : vector<16x32xf32> to vector<16x8xf32>
    %136 = arith.truncf %134 : vector<16x8xf32> to vector<16x8xbf16>
    %137 = arith.truncf %135 : vector<16x8xf32> to vector<16x8xbf16>
    %cst_57 = arith.constant dense<0.000000e+00> : vector<16x16xf32>
    %138 = tpu.matmul %136, %137, %cst_57 {dimension_numbers = #tpu.dot_dimension_numbers<[1], [1], [0], [0], [0, 0, 1, 0], [], []>} : vector<16x8xbf16>, vector<16x8xbf16>, vector<16x16xf32> -> vector<16x16xf32>
    %cst_58 = arith.constant 0.353553385 : f32
    %139 = vector.broadcast %cst_58 : f32 to vector<16x16xf32>
    %140 = arith.mulf %138, %139 : vector<16x16xf32>
    %cst_59 = arith.constant dense<0xFF800000> : vector<16xf32>
    %141 = vector.multi_reduction <maximumf>, %140, %cst_59 [1] : vector<16x16xf32> to vector<16xf32>
    %142 = vector.shape_cast %141 : vector<16xf32> to vector<16x1xf32>
    %143 = vector.broadcast %142 : vector<16x1xf32> to vector<16x16xf32>
    %144 = arith.subf %140, %143 : vector<16x16xf32>
    %145 = math.exp %144 : vector<16x16xf32>
    %cst_60 = arith.constant dense<0.000000e+00> : vector<16xf32>
    %146 = vector.multi_reduction <add>, %145, %cst_60 [1] : vector<16x16xf32> to vector<16xf32>
    %147 = vector.shape_cast %146 : vector<16xf32> to vector<16x1xf32>
    %148 = tpu.reciprocal %147 {approx = true} : vector<16x1xf32> -> vector<16x1xf32>
    %149 = vector.broadcast %148 : vector<16x1xf32> to vector<16x16xf32>
    %150 = arith.mulf %145, %149 : vector<16x16xf32>
    %151 = vector.extract_strided_slice %56 {offsets = [0, 24], sizes = [16, 8], strides = [1, 1]} : vector<16x32xf32> to vector<16x8xf32>
    %152 = arith.truncf %150 : vector<16x16xf32> to vector<16x16xbf16>
    %153 = arith.truncf %151 : vector<16x8xf32> to vector<16x8xbf16>
    %cst_61 = arith.constant dense<0.000000e+00> : vector<16x8xf32>
    %154 = tpu.matmul %152, %153, %cst_61 {dimension_numbers = #tpu.dot_dimension_numbers<[1], [0], [0], [1], [0, 0, 1, 1], [], []>} : vector<16x16xbf16>, vector<16x8xbf16>, vector<16x8xf32> -> vector<16x8xf32>
    %155 = vector.extract_strided_slice %46 {offsets = [24, 0], sizes = [8, 32], strides = [1, 1]} : vector<32x32xf32> to vector<8x32xf32>
    %156 = arith.truncf %154 : vector<16x8xf32> to vector<16x8xbf16>
    %157 = arith.truncf %155 : vector<8x32xf32> to vector<8x32xbf16>
    %cst_62 = arith.constant dense<0.000000e+00> : vector<16x32xf32>
    %158 = tpu.matmul %156, %157, %cst_62 {dimension_numbers = #tpu.dot_dimension_numbers<[1], [0], [0], [1], [0, 0, 1, 1], [], []>} : vector<16x8xbf16>, vector<8x32xbf16>, vector<16x32xf32> -> vector<16x32xf32>
    %159 = arith.addf %133, %158 : vector<16x32xf32>
    %160 = vector.broadcast %48 : vector<1x32xf32> to vector<16x32xf32>
    %161 = arith.addf %159, %160 : vector<16x32xf32>
    %162 = arith.addf %40, %161 : vector<16x32xf32>
    %c0_63 = arith.constant 0 : index
    %c0_64 = arith.constant 0 : index
    %c0_65 = arith.constant 0 : index
    %c0_66 = arith.constant 0 : index
    %163 = vector.load %arg14[%c0_63, %c0_64, %c0_65, %c0_66] : memref<1x1x16x32xf32, #tpu.memory_space<vmem>>, vector<1x1x16x32xf32>
    %164 = vector.shape_cast %163 : vector<1x1x16x32xf32> to vector<16x32xf32>
    %165 = vector.shape_cast %162 : vector<16x32xf32> to vector<1x1x16x32xf32>
    tpu.vector_store %arg14[%c0_63, %c0_64, %c0_65, %c0_66], %165 {strides = array<i32>} : memref<1x1x16x32xf32, #tpu.memory_space<vmem>>, vector<1x1x16x32xf32>,
    return
  }
  func.func @transform_0(%arg0: i32, %arg1: i32) -> (i32, i32, i32) {
    %c0_i32 = arith.constant 0 : i32
    %c0_i32_0 = arith.constant 0 : i32
    %c0_i32_1 = arith.constant 0 : i32
    return %arg1, %c0_i32, %c0_i32_0 : i32, i32, i32
  }
  func.func @transform_1(%arg0: i32, %arg1: i32) -> (i32, i32) {
    %c0_i32 = arith.constant 0 : i32
    %c0_i32_0 = arith.constant 0 : i32
    %c0_i32_1 = arith.constant 0 : i32
    return %c0_i32, %c0_i32_0 : i32, i32
  }
  func.func @transform_2(%arg0: i32, %arg1: i32) -> (i32, i32) {
    %c0_i32 = arith.constant 0 : i32
    %c0_i32_0 = arith.constant 0 : i32
    %c0_i32_1 = arith.constant 0 : i32
    return %c0_i32, %c0_i32_0 : i32, i32
  }
  func.func @transform_3(%arg0: i32, %arg1: i32) -> (i32, i32) {
    %c0_i32 = arith.constant 0 : i32
    %c0_i32_0 = arith.constant 0 : i32
    %c0_i32_1 = arith.constant 0 : i32
    return %c0_i32, %c0_i32_0 : i32, i32
  }
  func.func @transform_4(%arg0: i32, %arg1: i32) -> (i32, i32) {
    %c0_i32 = arith.constant 0 : i32
    %c0_i32_0 = arith.constant 0 : i32
    %c0_i32_1 = arith.constant 0 : i32
    return %c0_i32, %c0_i32_0 : i32, i32
  }
  func.func @transform_5(%arg0: i32, %arg1: i32) -> (i32, i32, i32, i32) {
    %c0_i32 = arith.constant 0 : i32
    %c0_i32_0 = arith.constant 0 : i32
    %c0_i32_1 = arith.constant 0 : i32
    return %arg0, %arg1, %c0_i32, %c0_i32_0 : i32, i32, i32, i32
  }
  func.func @transform_6(%arg0: i32, %arg1: i32) -> (i32, i32, i32) {
    %c0_i32 = arith.constant 0 : i32
    %c0_i32_0 = arith.constant 0 : i32
    %c0_i32_1 = arith.constant 0 : i32
    return %arg0, %c0_i32, %c0_i32_0 : i32, i32, i32
  }
  func.func @transform_7(%arg0: i32, %arg1: i32) -> (i32, i32, i32) {
    %c0_i32 = arith.constant 0 : i32
    %c0_i32_0 = arith.constant 0 : i32
    %c0_i32_1 = arith.constant 0 : i32
    return %arg0, %c0_i32, %c0_i32_0 : i32, i32, i32
  }
  func.func @transform_8(%arg0: i32, %arg1: i32) -> (i32, i32, i32) {
    %c0_i32 = arith.constant 0 : i32
    %c0_i32_0 = arith.constant 0 : i32
    %c0_i32_1 = arith.constant 0 : i32
    return %arg0, %c0_i32, %c0_i32_0 : i32, i32, i32
  }
  func.func @transform_9(%arg0: i32, %arg1: i32) -> (i32, i32, i32) {
    %c0_i32 = arith.constant 0 : i32
    %c0_i32_0 = arith.constant 0 : i32
    %c0_i32_1 = arith.constant 0 : i32
    return %arg0, %c0_i32, %c0_i32_0 : i32, i32, i32
  }
  func.func @transform_10(%arg0: i32, %arg1: i32) -> (i32, i32, i32) {
    %c0_i32 = arith.constant 0 : i32
    %c0_i32_0 = arith.constant 0 : i32
    %c0_i32_1 = arith.constant 0 : i32
    return %arg0, %c0_i32, %c0_i32_0 : i32, i32, i32
  }
  func.func @transform_11(%arg0: i32, %arg1: i32) -> (i32, i32, i32) {
    %c0_i32 = arith.constant 0 : i32
    %c0_i32_0 = arith.constant 0 : i32
    %c0_i32_1 = arith.constant 0 : i32
    return %arg0, %c0_i32, %c0_i32_0 : i32, i32, i32
  }
  func.func @transform_12(%arg0: i32, %arg1: i32) -> (i32, i32, i32, i32) {
    %c0_i32 = arith.constant 0 : i32
    %c0_i32_0 = arith.constant 0 : i32
    %c0_i32_1 = arith.constant 0 : i32
    return %arg0, %arg1, %c0_i32, %c0_i32_0 : i32, i32, i32, i32
  }
}

module attributes {stable_mosaic.version = 11 : i64} {
  func.func @_trend_block_kernel(%arg0: i32, %arg1: memref<1x32x16xf32, #tpu.memory_space<vmem>>, %arg2: memref<1x16x32xf32, #tpu.memory_space<vmem>>, %arg3: memref<1x1x32xf32, #tpu.memory_space<vmem>>, %arg4: memref<1x32x128xf32, #tpu.memory_space<vmem>>, %arg5: memref<1x1x128xf32, #tpu.memory_space<vmem>>, %arg6: memref<1x128x32xf32, #tpu.memory_space<vmem>>, %arg7: memref<1x1x32xf32, #tpu.memory_space<vmem>>, %arg8: memref<1x32x16xf32, #tpu.memory_space<vmem>>, %arg9: memref<1x1x16xf32, #tpu.memory_space<vmem>>, %arg10: memref<1x32x16xf32, #tpu.memory_space<vmem>>) attributes {dimension_semantics = [#tpu.dimension_semantics<parallel>], iteration_bounds = array<i64: 2>, scalar_prefetch = 0 : i64, scratch_operands = 0 : i64, tpu.core_type = #tpu.core_type<tc>, window_params = [{transform_indices = @transform_0, window_bounds = array<i64: 1, 32, 16>}, {pipeline_mode = #tpu.pipeline_mode<synchronous>, transform_indices = @transform_1, window_bounds = array<i64: 1, 16, 32>}, {pipeline_mode = #tpu.pipeline_mode<synchronous>, transform_indices = @transform_2, window_bounds = array<i64: 1, 1, 32>}, {pipeline_mode = #tpu.pipeline_mode<synchronous>, transform_indices = @transform_3, window_bounds = array<i64: 1, 32, 128>}, {pipeline_mode = #tpu.pipeline_mode<synchronous>, transform_indices = @transform_4, window_bounds = array<i64: 1, 1, 128>}, {pipeline_mode = #tpu.pipeline_mode<synchronous>, transform_indices = @transform_5, window_bounds = array<i64: 1, 128, 32>}, {pipeline_mode = #tpu.pipeline_mode<synchronous>, transform_indices = @transform_6, window_bounds = array<i64: 1, 1, 32>}, {pipeline_mode = #tpu.pipeline_mode<synchronous>, transform_indices = @transform_7, window_bounds = array<i64: 1, 32, 16>}, {pipeline_mode = #tpu.pipeline_mode<synchronous>, transform_indices = @transform_8, window_bounds = array<i64: 1, 1, 16>}, {transform_indices = @transform_9, window_bounds = array<i64: 1, 32, 16>}]} {
    %c0 = arith.constant 0 : index
    %c0_0 = arith.constant 0 : index
    %c0_1 = arith.constant 0 : index
    %0 = vector.load %arg1[%c0, %c0_0, %c0_1] : memref<1x32x16xf32, #tpu.memory_space<vmem>>, vector<1x32x16xf32>
    %1 = vector.shape_cast %0 : vector<1x32x16xf32> to vector<32x16xf32>
    %cst = arith.constant dense<0.000000e+00> : vector<32xf32>
    %2 = vector.multi_reduction <add>, %1, %cst [1] : vector<32x16xf32> to vector<32xf32>
    %3 = vector.shape_cast %2 : vector<32xf32> to vector<32x1xf32>
    %cst_2 = arith.constant 1.600000e+01 : f32
    %4 = vector.broadcast %cst_2 : f32 to vector<32x1xf32>
    %5 = arith.divf %3, %4 : vector<32x1xf32>
    %6 = vector.broadcast %5 : vector<32x1xf32> to vector<32x16xf32>
    %7 = arith.subf %1, %6 : vector<32x16xf32>
    %8 = arith.mulf %7, %7 : vector<32x16xf32>
    %cst_3 = arith.constant dense<0.000000e+00> : vector<32xf32>
    %9 = vector.multi_reduction <add>, %8, %cst_3 [1] : vector<32x16xf32> to vector<32xf32>
    %10 = vector.shape_cast %9 : vector<32xf32> to vector<32x1xf32>
    %cst_4 = arith.constant 1.600000e+01 : f32
    %11 = vector.broadcast %cst_4 : f32 to vector<32x1xf32>
    %12 = arith.divf %10, %11 : vector<32x1xf32>
    %cst_5 = arith.constant 9.99999974E-6 : f32
    %13 = vector.broadcast %cst_5 : f32 to vector<32x1xf32>
    %14 = arith.addf %12, %13 : vector<32x1xf32>
    %15 = math.sqrt %14 : vector<32x1xf32>
    %16 = vector.broadcast %15 : vector<32x1xf32> to vector<32x16xf32>
    %17 = arith.divf %7, %16 : vector<32x16xf32>
    %c0_6 = arith.constant 0 : index
    %c0_7 = arith.constant 0 : index
    %c0_8 = arith.constant 0 : index
    %18 = vector.load %arg2[%c0_6, %c0_7, %c0_8] : memref<1x16x32xf32, #tpu.memory_space<vmem>>, vector<1x16x32xf32>
    %19 = vector.shape_cast %18 : vector<1x16x32xf32> to vector<16x32xf32>
    %20 = arith.truncf %17 : vector<32x16xf32> to vector<32x16xbf16>
    %21 = arith.truncf %19 : vector<16x32xf32> to vector<16x32xbf16>
    %cst_9 = arith.constant dense<0.000000e+00> : vector<32x32xf32>
    %22 = tpu.matmul %20, %21, %cst_9 {dimension_numbers = #tpu.dot_dimension_numbers<[1], [0], [0], [1], [0, 0, 1, 1], [], []>} : vector<32x16xbf16>, vector<16x32xbf16>, vector<32x32xf32> -> vector<32x32xf32>
    %c0_10 = arith.constant 0 : index
    %c0_11 = arith.constant 0 : index
    %c0_12 = arith.constant 0 : index
    %23 = vector.load %arg3[%c0_10, %c0_11, %c0_12] : memref<1x1x32xf32, #tpu.memory_space<vmem>>, vector<1x1x32xf32>
    %24 = vector.shape_cast %23 : vector<1x1x32xf32> to vector<1x32xf32>
    %25 = vector.broadcast %24 : vector<1x32xf32> to vector<32x32xf32>
    %26 = arith.addf %22, %25 : vector<32x32xf32>
    %cst_13 = arith.constant 5.000000e-01 : f32
    %27 = vector.broadcast %cst_13 : f32 to vector<32x32xf32>
    %28 = arith.mulf %27, %26 : vector<32x32xf32>
    %cst_14 = arith.constant 4.471500e-02 : f32
    %29 = vector.broadcast %cst_14 : f32 to vector<32x32xf32>
    %30 = arith.mulf %29, %26 : vector<32x32xf32>
    %31 = arith.mulf %30, %26 : vector<32x32xf32>
    %32 = arith.mulf %31, %26 : vector<32x32xf32>
    %33 = arith.addf %26, %32 : vector<32x32xf32>
    %cst_15 = arith.constant 0.797884583 : f32
    %34 = vector.broadcast %cst_15 : f32 to vector<32x32xf32>
    %35 = arith.mulf %34, %33 : vector<32x32xf32>
    %36 = math.tanh %35 : vector<32x32xf32>
    %cst_16 = arith.constant 1.000000e+00 : f32
    %37 = vector.broadcast %cst_16 : f32 to vector<32x32xf32>
    %38 = arith.addf %37, %36 : vector<32x32xf32>
    %39 = arith.mulf %28, %38 : vector<32x32xf32>
    %c0_17 = arith.constant 0 : index
    %c0_18 = arith.constant 0 : index
    %c0_19 = arith.constant 0 : index
    %40 = vector.load %arg4[%c0_17, %c0_18, %c0_19] : memref<1x32x128xf32, #tpu.memory_space<vmem>>, vector<1x32x128xf32>
    %41 = vector.shape_cast %40 : vector<1x32x128xf32> to vector<32x128xf32>
    %42 = arith.truncf %39 : vector<32x32xf32> to vector<32x32xbf16>
    %43 = arith.truncf %41 : vector<32x128xf32> to vector<32x128xbf16>
    %cst_20 = arith.constant dense<0.000000e+00> : vector<32x128xf32>
    %44 = tpu.matmul %42, %43, %cst_20 {dimension_numbers = #tpu.dot_dimension_numbers<[1], [0], [0], [1], [0, 0, 1, 1], [], []>} : vector<32x32xbf16>, vector<32x128xbf16>, vector<32x128xf32> -> vector<32x128xf32>
    %c0_21 = arith.constant 0 : index
    %c0_22 = arith.constant 0 : index
    %c0_23 = arith.constant 0 : index
    %45 = vector.load %arg5[%c0_21, %c0_22, %c0_23] : memref<1x1x128xf32, #tpu.memory_space<vmem>>, vector<1x1x128xf32>
    %46 = vector.shape_cast %45 : vector<1x1x128xf32> to vector<1x128xf32>
    %47 = vector.broadcast %46 : vector<1x128xf32> to vector<32x128xf32>
    %48 = arith.addf %44, %47 : vector<32x128xf32>
    %cst_24 = arith.constant 5.000000e-01 : f32
    %49 = vector.broadcast %cst_24 : f32 to vector<32x128xf32>
    %50 = arith.mulf %49, %48 : vector<32x128xf32>
    %cst_25 = arith.constant 4.471500e-02 : f32
    %51 = vector.broadcast %cst_25 : f32 to vector<32x128xf32>
    %52 = arith.mulf %51, %48 : vector<32x128xf32>
    %53 = arith.mulf %52, %48 : vector<32x128xf32>
    %54 = arith.mulf %53, %48 : vector<32x128xf32>
    %55 = arith.addf %48, %54 : vector<32x128xf32>
    %cst_26 = arith.constant 0.797884583 : f32
    %56 = vector.broadcast %cst_26 : f32 to vector<32x128xf32>
    %57 = arith.mulf %56, %55 : vector<32x128xf32>
    %58 = math.tanh %57 : vector<32x128xf32>
    %cst_27 = arith.constant 1.000000e+00 : f32
    %59 = vector.broadcast %cst_27 : f32 to vector<32x128xf32>
    %60 = arith.addf %59, %58 : vector<32x128xf32>
    %61 = arith.mulf %50, %60 : vector<32x128xf32>
    %c0_28 = arith.constant 0 : index
    %c0_29 = arith.constant 0 : index
    %c0_30 = arith.constant 0 : index
    %62 = vector.load %arg6[%c0_28, %c0_29, %c0_30] : memref<1x128x32xf32, #tpu.memory_space<vmem>>, vector<1x128x32xf32>
    %63 = vector.shape_cast %62 : vector<1x128x32xf32> to vector<128x32xf32>
    %64 = arith.truncf %61 : vector<32x128xf32> to vector<32x128xbf16>
    %65 = arith.truncf %63 : vector<128x32xf32> to vector<128x32xbf16>
    %cst_31 = arith.constant dense<0.000000e+00> : vector<32x32xf32>
    %66 = tpu.matmul %64, %65, %cst_31 {dimension_numbers = #tpu.dot_dimension_numbers<[1], [0], [0], [1], [0, 0, 1, 1], [], []>} : vector<32x128xbf16>, vector<128x32xbf16>, vector<32x32xf32> -> vector<32x32xf32>
    %c0_32 = arith.constant 0 : index
    %c0_33 = arith.constant 0 : index
    %c0_34 = arith.constant 0 : index
    %67 = vector.load %arg7[%c0_32, %c0_33, %c0_34] : memref<1x1x32xf32, #tpu.memory_space<vmem>>, vector<1x1x32xf32>
    %68 = vector.shape_cast %67 : vector<1x1x32xf32> to vector<1x32xf32>
    %69 = vector.broadcast %68 : vector<1x32xf32> to vector<32x32xf32>
    %70 = arith.addf %66, %69 : vector<32x32xf32>
    %cst_35 = arith.constant 5.000000e-01 : f32
    %71 = vector.broadcast %cst_35 : f32 to vector<32x32xf32>
    %72 = arith.mulf %71, %70 : vector<32x32xf32>
    %cst_36 = arith.constant 4.471500e-02 : f32
    %73 = vector.broadcast %cst_36 : f32 to vector<32x32xf32>
    %74 = arith.mulf %73, %70 : vector<32x32xf32>
    %75 = arith.mulf %74, %70 : vector<32x32xf32>
    %76 = arith.mulf %75, %70 : vector<32x32xf32>
    %77 = arith.addf %70, %76 : vector<32x32xf32>
    %cst_37 = arith.constant 0.797884583 : f32
    %78 = vector.broadcast %cst_37 : f32 to vector<32x32xf32>
    %79 = arith.mulf %78, %77 : vector<32x32xf32>
    %80 = math.tanh %79 : vector<32x32xf32>
    %cst_38 = arith.constant 1.000000e+00 : f32
    %81 = vector.broadcast %cst_38 : f32 to vector<32x32xf32>
    %82 = arith.addf %81, %80 : vector<32x32xf32>
    %83 = arith.mulf %72, %82 : vector<32x32xf32>
    %c0_39 = arith.constant 0 : index
    %c0_40 = arith.constant 0 : index
    %c0_41 = arith.constant 0 : index
    %84 = vector.load %arg8[%c0_39, %c0_40, %c0_41] : memref<1x32x16xf32, #tpu.memory_space<vmem>>, vector<1x32x16xf32>
    %85 = vector.shape_cast %84 : vector<1x32x16xf32> to vector<32x16xf32>
    %86 = arith.truncf %83 : vector<32x32xf32> to vector<32x32xbf16>
    %87 = arith.truncf %85 : vector<32x16xf32> to vector<32x16xbf16>
    %cst_42 = arith.constant dense<0.000000e+00> : vector<32x16xf32>
    %88 = tpu.matmul %86, %87, %cst_42 {dimension_numbers = #tpu.dot_dimension_numbers<[1], [0], [0], [1], [0, 0, 1, 1], [], []>} : vector<32x32xbf16>, vector<32x16xbf16>, vector<32x16xf32> -> vector<32x16xf32>
    %c0_43 = arith.constant 0 : index
    %c0_44 = arith.constant 0 : index
    %c0_45 = arith.constant 0 : index
    %89 = vector.load %arg9[%c0_43, %c0_44, %c0_45] : memref<1x1x16xf32, #tpu.memory_space<vmem>>, vector<1x1x16xf32>
    %90 = vector.shape_cast %89 : vector<1x1x16xf32> to vector<1x16xf32>
    %91 = vector.broadcast %90 : vector<1x16xf32> to vector<32x16xf32>
    %92 = arith.addf %88, %91 : vector<32x16xf32>
    %93 = arith.addf %17, %92 : vector<32x16xf32>
    %94 = vector.broadcast %15 : vector<32x1xf32> to vector<32x16xf32>
    %95 = arith.mulf %93, %94 : vector<32x16xf32>
    %96 = vector.broadcast %5 : vector<32x1xf32> to vector<32x16xf32>
    %97 = arith.addf %95, %96 : vector<32x16xf32>
    %c0_46 = arith.constant 0 : index
    %c0_47 = arith.constant 0 : index
    %c0_48 = arith.constant 0 : index
    %98 = vector.load %arg10[%c0_46, %c0_47, %c0_48] : memref<1x32x16xf32, #tpu.memory_space<vmem>>, vector<1x32x16xf32>
    %99 = vector.shape_cast %98 : vector<1x32x16xf32> to vector<32x16xf32>
    %100 = vector.shape_cast %97 : vector<32x16xf32> to vector<1x32x16xf32>
    tpu.vector_store %arg10[%c0_46, %c0_47, %c0_48], %100 {strides = array<i32>} : memref<1x32x16xf32, #tpu.memory_space<vmem>>, vector<1x32x16xf32>,
    return
  }
  func.func @transform_0(%arg0: i32) -> (i32, i32, i32) {
    %c0_i32 = arith.constant 0 : i32
    %c0_i32_0 = arith.constant 0 : i32
    %c0_i32_1 = arith.constant 0 : i32
    return %arg0, %c0_i32, %c0_i32_0 : i32, i32, i32
  }
  func.func @transform_1(%arg0: i32) -> (i32, i32, i32) {
    %c0_i32 = arith.constant 0 : i32
    %c0_i32_0 = arith.constant 0 : i32
    %c0_i32_1 = arith.constant 0 : i32
    %c0_i32_2 = arith.constant 0 : i32
    return %c0_i32, %c0_i32_0, %c0_i32_1 : i32, i32, i32
  }
  func.func @transform_2(%arg0: i32) -> (i32, i32, i32) {
    %c0_i32 = arith.constant 0 : i32
    %c0_i32_0 = arith.constant 0 : i32
    %c0_i32_1 = arith.constant 0 : i32
    %c0_i32_2 = arith.constant 0 : i32
    return %c0_i32, %c0_i32_0, %c0_i32_1 : i32, i32, i32
  }
  func.func @transform_3(%arg0: i32) -> (i32, i32, i32) {
    %c0_i32 = arith.constant 0 : i32
    %c0_i32_0 = arith.constant 0 : i32
    %c0_i32_1 = arith.constant 0 : i32
    %c0_i32_2 = arith.constant 0 : i32
    return %c0_i32, %c0_i32_0, %c0_i32_1 : i32, i32, i32
  }
  func.func @transform_4(%arg0: i32) -> (i32, i32, i32) {
    %c0_i32 = arith.constant 0 : i32
    %c0_i32_0 = arith.constant 0 : i32
    %c0_i32_1 = arith.constant 0 : i32
    %c0_i32_2 = arith.constant 0 : i32
    return %c0_i32, %c0_i32_0, %c0_i32_1 : i32, i32, i32
  }
  func.func @transform_5(%arg0: i32) -> (i32, i32, i32) {
    %c0_i32 = arith.constant 0 : i32
    %c0_i32_0 = arith.constant 0 : i32
    %c0_i32_1 = arith.constant 0 : i32
    %c0_i32_2 = arith.constant 0 : i32
    return %c0_i32, %c0_i32_0, %c0_i32_1 : i32, i32, i32
  }
  func.func @transform_6(%arg0: i32) -> (i32, i32, i32) {
    %c0_i32 = arith.constant 0 : i32
    %c0_i32_0 = arith.constant 0 : i32
    %c0_i32_1 = arith.constant 0 : i32
    %c0_i32_2 = arith.constant 0 : i32
    return %c0_i32, %c0_i32_0, %c0_i32_1 : i32, i32, i32
  }
  func.func @transform_7(%arg0: i32) -> (i32, i32, i32) {
    %c0_i32 = arith.constant 0 : i32
    %c0_i32_0 = arith.constant 0 : i32
    %c0_i32_1 = arith.constant 0 : i32
    %c0_i32_2 = arith.constant 0 : i32
    return %c0_i32, %c0_i32_0, %c0_i32_1 : i32, i32, i32
  }
  func.func @transform_8(%arg0: i32) -> (i32, i32, i32) {
    %c0_i32 = arith.constant 0 : i32
    %c0_i32_0 = arith.constant 0 : i32
    %c0_i32_1 = arith.constant 0 : i32
    %c0_i32_2 = arith.constant 0 : i32
    return %c0_i32, %c0_i32_0, %c0_i32_1 : i32, i32, i32
  }
  func.func @transform_9(%arg0: i32) -> (i32, i32, i32) {
    %c0_i32 = arith.constant 0 : i32
    %c0_i32_0 = arith.constant 0 : i32
    %c0_i32_1 = arith.constant 0 : i32
    return %arg0, %c0_i32, %c0_i32_0 : i32, i32, i32
  }
}

module attributes {stable_mosaic.version = 11 : i64} {
  func.func @_corr_dec_kernel(%arg0: i32, %arg1: memref<1x16x32xf32, #tpu.memory_space<vmem>>, %arg2: memref<1x16x32xf32, #tpu.memory_space<vmem>>, %arg3: memref<32x64xf32, #tpu.memory_space<vmem>>, %arg4: memref<1x64xf32, #tpu.memory_space<vmem>>, %arg5: memref<32x64xf32, #tpu.memory_space<vmem>>, %arg6: memref<1x64xf32, #tpu.memory_space<vmem>>, %arg7: memref<32x32xf32, #tpu.memory_space<vmem>>, %arg8: memref<1x32xf32, #tpu.memory_space<vmem>>, %arg9: memref<32x64xf32, #tpu.memory_space<vmem>>, %arg10: memref<1x64xf32, #tpu.memory_space<vmem>>, %arg11: memref<32x32xf32, #tpu.memory_space<vmem>>, %arg12: memref<1x32xf32, #tpu.memory_space<vmem>>, %arg13: memref<32x32xf32, #tpu.memory_space<vmem>>, %arg14: memref<1x32xf32, #tpu.memory_space<vmem>>, %arg15: memref<32x64xf32, #tpu.memory_space<vmem>>, %arg16: memref<1x64xf32, #tpu.memory_space<vmem>>, %arg17: memref<32x32xf32, #tpu.memory_space<vmem>>, %arg18: memref<1x32xf32, #tpu.memory_space<vmem>>, %arg19: memref<32x128xf32, #tpu.memory_space<vmem>>, %arg20: memref<1x128xf32, #tpu.memory_space<vmem>>, %arg21: memref<128x32xf32, #tpu.memory_space<vmem>>, %arg22: memref<1x32xf32, #tpu.memory_space<vmem>>, %arg23: memref<32x128xf32, #tpu.memory_space<vmem>>, %arg24: memref<1x128xf32, #tpu.memory_space<vmem>>, %arg25: memref<128x32xf32, #tpu.memory_space<vmem>>, %arg26: memref<1x32xf32, #tpu.memory_space<vmem>>, %arg27: memref<32x4xf32, #tpu.memory_space<vmem>>, %arg28: memref<1x4xf32, #tpu.memory_space<vmem>>, %arg29: memref<32x4xf32, #tpu.memory_space<vmem>>, %arg30: memref<1x4xf32, #tpu.memory_space<vmem>>, %arg31: memref<1x16x4xf32, #tpu.memory_space<vmem>>, %arg32: memref<1x16x4xf32, #tpu.memory_space<vmem>>) attributes {dimension_semantics = [#tpu.dimension_semantics<parallel>], iteration_bounds = array<i64: 2>, scalar_prefetch = 0 : i64, scratch_operands = 0 : i64, tpu.core_type = #tpu.core_type<tc>, window_params = [{transform_indices = @transform_0, window_bounds = array<i64: 1, 16, 32>}, {transform_indices = @transform_1, window_bounds = array<i64: 1, 16, 32>}, {pipeline_mode = #tpu.pipeline_mode<synchronous>, transform_indices = @transform_2, window_bounds = array<i64: 32, 64>}, {pipeline_mode = #tpu.pipeline_mode<synchronous>, transform_indices = @transform_3, window_bounds = array<i64: 1, 64>}, {pipeline_mode = #tpu.pipeline_mode<synchronous>, transform_indices = @transform_4, window_bounds = array<i64: 32, 64>}, {pipeline_mode = #tpu.pipeline_mode<synchronous>, transform_indices = @transform_5, window_bounds = array<i64: 1, 64>}, {pipeline_mode = #tpu.pipeline_mode<synchronous>, transform_indices = @transform_6, window_bounds = array<i64: 32, 32>}, {pipeline_mode = #tpu.pipeline_mode<synchronous>, transform_indices = @transform_7, window_bounds = array<i64: 1, 32>}, {pipeline_mode = #tpu.pipeline_mode<synchronous>, transform_indices = @transform_8, window_bounds = array<i64: 32, 64>}, {pipeline_mode = #tpu.pipeline_mode<synchronous>, transform_indices = @transform_9, window_bounds = array<i64: 1, 64>}, {pipeline_mode = #tpu.pipeline_mode<synchronous>, transform_indices = @transform_10, window_bounds = array<i64: 32, 32>}, {pipeline_mode = #tpu.pipeline_mode<synchronous>, transform_indices = @transform_11, window_bounds = array<i64: 1, 32>}, {pipeline_mode = #tpu.pipeline_mode<synchronous>, transform_indices = @transform_12, window_bounds = array<i64: 32, 32>}, {pipeline_mode = #tpu.pipeline_mode<synchronous>, transform_indices = @transform_13, window_bounds = array<i64: 1, 32>}, {pipeline_mode = #tpu.pipeline_mode<synchronous>, transform_indices = @transform_14, window_bounds = array<i64: 32, 64>}, {pipeline_mode = #tpu.pipeline_mode<synchronous>, transform_indices = @transform_15, window_bounds = array<i64: 1, 64>}, {pipeline_mode = #tpu.pipeline_mode<synchronous>, transform_indices = @transform_16, window_bounds = array<i64: 32, 32>}, {pipeline_mode = #tpu.pipeline_mode<synchronous>, transform_indices = @transform_17, window_bounds = array<i64: 1, 32>}, {pipeline_mode = #tpu.pipeline_mode<synchronous>, transform_indices = @transform_18, window_bounds = array<i64: 32, 128>}, {pipeline_mode = #tpu.pipeline_mode<synchronous>, transform_indices = @transform_19, window_bounds = array<i64: 1, 128>}, {pipeline_mode = #tpu.pipeline_mode<synchronous>, transform_indices = @transform_20, window_bounds = array<i64: 128, 32>}, {pipeline_mode = #tpu.pipeline_mode<synchronous>, transform_indices = @transform_21, window_bounds = array<i64: 1, 32>}, {pipeline_mode = #tpu.pipeline_mode<synchronous>, transform_indices = @transform_22, window_bounds = array<i64: 32, 128>}, {pipeline_mode = #tpu.pipeline_mode<synchronous>, transform_indices = @transform_23, window_bounds = array<i64: 1, 128>}, {pipeline_mode = #tpu.pipeline_mode<synchronous>, transform_indices = @transform_24, window_bounds = array<i64: 128, 32>}, {pipeline_mode = #tpu.pipeline_mode<synchronous>, transform_indices = @transform_25, window_bounds = array<i64: 1, 32>}, {pipeline_mode = #tpu.pipeline_mode<synchronous>, transform_indices = @transform_26, window_bounds = array<i64: 32, 4>}, {pipeline_mode = #tpu.pipeline_mode<synchronous>, transform_indices = @transform_27, window_bounds = array<i64: 1, 4>}, {pipeline_mode = #tpu.pipeline_mode<synchronous>, transform_indices = @transform_28, window_bounds = array<i64: 32, 4>}, {pipeline_mode = #tpu.pipeline_mode<synchronous>, transform_indices = @transform_29, window_bounds = array<i64: 1, 4>}, {transform_indices = @transform_30, window_bounds = array<i64: 1, 16, 4>}, {transform_indices = @transform_31, window_bounds = array<i64: 1, 16, 4>}]} {
    %c0 = arith.constant 0 : index
    %c0_0 = arith.constant 0 : index
    %c0_1 = arith.constant 0 : index
    %0 = vector.load %arg1[%c0, %c0_0, %c0_1] : memref<1x16x32xf32, #tpu.memory_space<vmem>>, vector<1x16x32xf32>
    %1 = vector.shape_cast %0 : vector<1x16x32xf32> to vector<16x32xf32>
    %c0_2 = arith.constant 0 : index
    %c0_3 = arith.constant 0 : index
    %2 = vector.load %arg3[%c0_2, %c0_3] : memref<32x64xf32, #tpu.memory_space<vmem>>, vector<32x64xf32>
    %3 = arith.truncf %1 : vector<16x32xf32> to vector<16x32xbf16>
    %4 = arith.truncf %2 : vector<32x64xf32> to vector<32x64xbf16>
    %cst = arith.constant dense<0.000000e+00> : vector<16x64xf32>
    %5 = tpu.matmul %3, %4, %cst {dimension_numbers = #tpu.dot_dimension_numbers<[1], [0], [0], [1], [0, 0, 1, 1], [], []>} : vector<16x32xbf16>, vector<32x64xbf16>, vector<16x64xf32> -> vector<16x64xf32>
    %c0_4 = arith.constant 0 : index
    %c0_5 = arith.constant 0 : index
    %6 = vector.load %arg4[%c0_4, %c0_5] : memref<1x64xf32, #tpu.memory_space<vmem>>, vector<1x64xf32>
    %7 = vector.broadcast %6 : vector<1x64xf32> to vector<16x64xf32>
    %8 = arith.addf %5, %7 : vector<16x64xf32>
    %cst_6 = arith.constant 5.000000e-01 : f32
    %9 = vector.broadcast %cst_6 : f32 to vector<16x64xf32>
    %10 = arith.mulf %9, %8 : vector<16x64xf32>
    %cst_7 = arith.constant 4.471500e-02 : f32
    %11 = vector.broadcast %cst_7 : f32 to vector<16x64xf32>
    %12 = arith.mulf %11, %8 : vector<16x64xf32>
    %13 = arith.mulf %12, %8 : vector<16x64xf32>
    %14 = arith.mulf %13, %8 : vector<16x64xf32>
    %15 = arith.addf %8, %14 : vector<16x64xf32>
    %cst_8 = arith.constant 0.797884583 : f32
    %16 = vector.broadcast %cst_8 : f32 to vector<16x64xf32>
    %17 = arith.mulf %16, %15 : vector<16x64xf32>
    %18 = math.tanh %17 : vector<16x64xf32>
    %cst_9 = arith.constant 1.000000e+00 : f32
    %19 = vector.broadcast %cst_9 : f32 to vector<16x64xf32>
    %20 = arith.addf %19, %18 : vector<16x64xf32>
    %21 = arith.mulf %10, %20 : vector<16x64xf32>
    %22 = vector.extract_strided_slice %21 {offsets = [0, 0], sizes = [16, 32], strides = [1, 1]} : vector<16x64xf32> to vector<16x32xf32>
    %23 = vector.extract_strided_slice %21 {offsets = [0, 32], sizes = [16, 32], strides = [1, 1]} : vector<16x64xf32> to vector<16x32xf32>
    %c0_10 = arith.constant 0 : index
    %c0_11 = arith.constant 0 : index
    %c0_12 = arith.constant 0 : index
    %24 = vector.load %arg2[%c0_10, %c0_11, %c0_12] : memref<1x16x32xf32, #tpu.memory_space<vmem>>, vector<1x16x32xf32>
    %25 = vector.shape_cast %24 : vector<1x16x32xf32> to vector<16x32xf32>
    %c0_13 = arith.constant 0 : index
    %c0_14 = arith.constant 0 : index
    %26 = vector.load %arg5[%c0_13, %c0_14] : memref<32x64xf32, #tpu.memory_space<vmem>>, vector<32x64xf32>
    %27 = arith.truncf %25 : vector<16x32xf32> to vector<16x32xbf16>
    %28 = arith.truncf %26 : vector<32x64xf32> to vector<32x64xbf16>
    %cst_15 = arith.constant dense<0.000000e+00> : vector<16x64xf32>
    %29 = tpu.matmul %27, %28, %cst_15 {dimension_numbers = #tpu.dot_dimension_numbers<[1], [0], [0], [1], [0, 0, 1, 1], [], []>} : vector<16x32xbf16>, vector<32x64xbf16>, vector<16x64xf32> -> vector<16x64xf32>
    %c0_16 = arith.constant 0 : index
    %c0_17 = arith.constant 0 : index
    %30 = vector.load %arg6[%c0_16, %c0_17] : memref<1x64xf32, #tpu.memory_space<vmem>>, vector<1x64xf32>
    %31 = vector.broadcast %30 : vector<1x64xf32> to vector<16x64xf32>
    %32 = arith.addf %29, %31 : vector<16x64xf32>
    %cst_18 = arith.constant 5.000000e-01 : f32
    %33 = vector.broadcast %cst_18 : f32 to vector<16x64xf32>
    %34 = arith.mulf %33, %32 : vector<16x64xf32>
    %cst_19 = arith.constant 4.471500e-02 : f32
    %35 = vector.broadcast %cst_19 : f32 to vector<16x64xf32>
    %36 = arith.mulf %35, %32 : vector<16x64xf32>
    %37 = arith.mulf %36, %32 : vector<16x64xf32>
    %38 = arith.mulf %37, %32 : vector<16x64xf32>
    %39 = arith.addf %32, %38 : vector<16x64xf32>
    %cst_20 = arith.constant 0.797884583 : f32
    %40 = vector.broadcast %cst_20 : f32 to vector<16x64xf32>
    %41 = arith.mulf %40, %39 : vector<16x64xf32>
    %42 = math.tanh %41 : vector<16x64xf32>
    %cst_21 = arith.constant 1.000000e+00 : f32
    %43 = vector.broadcast %cst_21 : f32 to vector<16x64xf32>
    %44 = arith.addf %43, %42 : vector<16x64xf32>
    %45 = arith.mulf %34, %44 : vector<16x64xf32>
    %46 = vector.extract_strided_slice %45 {offsets = [0, 0], sizes = [16, 32], strides = [1, 1]} : vector<16x64xf32> to vector<16x32xf32>
    %47 = vector.extract_strided_slice %45 {offsets = [0, 32], sizes = [16, 32], strides = [1, 1]} : vector<16x64xf32> to vector<16x32xf32>
    %c0_22 = arith.constant 0 : index
    %c0_23 = arith.constant 0 : index
    %48 = vector.load %arg7[%c0_22, %c0_23] : memref<32x32xf32, #tpu.memory_space<vmem>>, vector<32x32xf32>
    %c0_24 = arith.constant 0 : index
    %c0_25 = arith.constant 0 : index
    %49 = vector.load %arg8[%c0_24, %c0_25] : memref<1x32xf32, #tpu.memory_space<vmem>>, vector<1x32xf32>
    %c0_26 = arith.constant 0 : index
    %c0_27 = arith.constant 0 : index
    %50 = vector.load %arg9[%c0_26, %c0_27] : memref<32x64xf32, #tpu.memory_space<vmem>>, vector<32x64xf32>
    %c0_28 = arith.constant 0 : index
    %c0_29 = arith.constant 0 : index
    %51 = vector.load %arg10[%c0_28, %c0_29] : memref<1x64xf32, #tpu.memory_space<vmem>>, vector<1x64xf32>
    %c0_30 = arith.constant 0 : index
    %c0_31 = arith.constant 0 : index
    %52 = vector.load %arg11[%c0_30, %c0_31] : memref<32x32xf32, #tpu.memory_space<vmem>>, vector<32x32xf32>
    %c0_32 = arith.constant 0 : index
    %c0_33 = arith.constant 0 : index
    %53 = vector.load %arg12[%c0_32, %c0_33] : memref<1x32xf32, #tpu.memory_space<vmem>>, vector<1x32xf32>
    %54 = arith.truncf %22 : vector<16x32xf32> to vector<16x32xbf16>
    %55 = arith.truncf %48 : vector<32x32xf32> to vector<32x32xbf16>
    %cst_34 = arith.constant dense<0.000000e+00> : vector<16x32xf32>
    %56 = tpu.matmul %54, %55, %cst_34 {dimension_numbers = #tpu.dot_dimension_numbers<[1], [0], [0], [1], [0, 0, 1, 1], [], []>} : vector<16x32xbf16>, vector<32x32xbf16>, vector<16x32xf32> -> vector<16x32xf32>
    %57 = vector.broadcast %49 : vector<1x32xf32> to vector<16x32xf32>
    %58 = arith.addf %56, %57 : vector<16x32xf32>
    %59 = arith.truncf %47 : vector<16x32xf32> to vector<16x32xbf16>
    %60 = arith.truncf %50 : vector<32x64xf32> to vector<32x64xbf16>
    %cst_35 = arith.constant dense<0.000000e+00> : vector<16x64xf32>
    %61 = tpu.matmul %59, %60, %cst_35 {dimension_numbers = #tpu.dot_dimension_numbers<[1], [0], [0], [1], [0, 0, 1, 1], [], []>} : vector<16x32xbf16>, vector<32x64xbf16>, vector<16x64xf32> -> vector<16x64xf32>
    %62 = vector.broadcast %51 : vector<1x64xf32> to vector<16x64xf32>
    %63 = arith.addf %61, %62 : vector<16x64xf32>
    %64 = vector.extract_strided_slice %63 {offsets = [0, 0], sizes = [16, 32], strides = [1, 1]} : vector<16x64xf32> to vector<16x32xf32>
    %65 = vector.extract_strided_slice %63 {offsets = [0, 32], sizes = [16, 32], strides = [1, 1]} : vector<16x64xf32> to vector<16x32xf32>
    %66 = vector.extract_strided_slice %58 {offsets = [0, 0], sizes = [16, 8], strides = [1, 1]} : vector<16x32xf32> to vector<16x8xf32>
    %67 = vector.extract_strided_slice %64 {offsets = [0, 0], sizes = [16, 8], strides = [1, 1]} : vector<16x32xf32> to vector<16x8xf32>
    %68 = arith.truncf %66 : vector<16x8xf32> to vector<16x8xbf16>
    %69 = arith.truncf %67 : vector<16x8xf32> to vector<16x8xbf16>
    %cst_36 = arith.constant dense<0.000000e+00> : vector<16x16xf32>
    %70 = tpu.matmul %68, %69, %cst_36 {dimension_numbers = #tpu.dot_dimension_numbers<[1], [1], [0], [0], [0, 0, 1, 0], [], []>} : vector<16x8xbf16>, vector<16x8xbf16>, vector<16x16xf32> -> vector<16x16xf32>
    %cst_37 = arith.constant 0.353553385 : f32
    %71 = vector.broadcast %cst_37 : f32 to vector<16x16xf32>
    %72 = arith.mulf %70, %71 : vector<16x16xf32>
    %cst_38 = arith.constant dense<0xFF800000> : vector<16xf32>
    %73 = vector.multi_reduction <maximumf>, %72, %cst_38 [1] : vector<16x16xf32> to vector<16xf32>
    %74 = vector.shape_cast %73 : vector<16xf32> to vector<16x1xf32>
    %75 = vector.broadcast %74 : vector<16x1xf32> to vector<16x16xf32>
    %76 = arith.subf %72, %75 : vector<16x16xf32>
    %77 = math.exp %76 : vector<16x16xf32>
    %cst_39 = arith.constant dense<0.000000e+00> : vector<16xf32>
    %78 = vector.multi_reduction <add>, %77, %cst_39 [1] : vector<16x16xf32> to vector<16xf32>
    %79 = vector.shape_cast %78 : vector<16xf32> to vector<16x1xf32>
    %80 = tpu.reciprocal %79 {approx = true} : vector<16x1xf32> -> vector<16x1xf32>
    %81 = vector.broadcast %80 : vector<16x1xf32> to vector<16x16xf32>
    %82 = arith.mulf %77, %81 : vector<16x16xf32>
    %83 = vector.extract_strided_slice %65 {offsets = [0, 0], sizes = [16, 8], strides = [1, 1]} : vector<16x32xf32> to vector<16x8xf32>
    %84 = arith.truncf %82 : vector<16x16xf32> to vector<16x16xbf16>
    %85 = arith.truncf %83 : vector<16x8xf32> to vector<16x8xbf16>
    %cst_40 = arith.constant dense<0.000000e+00> : vector<16x8xf32>
    %86 = tpu.matmul %84, %85, %cst_40 {dimension_numbers = #tpu.dot_dimension_numbers<[1], [0], [0], [1], [0, 0, 1, 1], [], []>} : vector<16x16xbf16>, vector<16x8xbf16>, vector<16x8xf32> -> vector<16x8xf32>
    %87 = vector.extract_strided_slice %52 {offsets = [0, 0], sizes = [8, 32], strides = [1, 1]} : vector<32x32xf32> to vector<8x32xf32>
    %88 = arith.truncf %86 : vector<16x8xf32> to vector<16x8xbf16>
    %89 = arith.truncf %87 : vector<8x32xf32> to vector<8x32xbf16>
    %cst_41 = arith.constant dense<0.000000e+00> : vector<16x32xf32>
    %90 = tpu.matmul %88, %89, %cst_41 {dimension_numbers = #tpu.dot_dimension_numbers<[1], [0], [0], [1], [0, 0, 1, 1], [], []>} : vector<16x8xbf16>, vector<8x32xbf16>, vector<16x32xf32> -> vector<16x32xf32>
    %91 = vector.extract_strided_slice %58 {offsets = [0, 8], sizes = [16, 8], strides = [1, 1]} : vector<16x32xf32> to vector<16x8xf32>
    %92 = vector.extract_strided_slice %64 {offsets = [0, 8], sizes = [16, 8], strides = [1, 1]} : vector<16x32xf32> to vector<16x8xf32>
    %93 = arith.truncf %91 : vector<16x8xf32> to vector<16x8xbf16>
    %94 = arith.truncf %92 : vector<16x8xf32> to vector<16x8xbf16>
    %cst_42 = arith.constant dense<0.000000e+00> : vector<16x16xf32>
    %95 = tpu.matmul %93, %94, %cst_42 {dimension_numbers = #tpu.dot_dimension_numbers<[1], [1], [0], [0], [0, 0, 1, 0], [], []>} : vector<16x8xbf16>, vector<16x8xbf16>, vector<16x16xf32> -> vector<16x16xf32>
    %cst_43 = arith.constant 0.353553385 : f32
    %96 = vector.broadcast %cst_43 : f32 to vector<16x16xf32>
    %97 = arith.mulf %95, %96 : vector<16x16xf32>
    %cst_44 = arith.constant dense<0xFF800000> : vector<16xf32>
    %98 = vector.multi_reduction <maximumf>, %97, %cst_44 [1] : vector<16x16xf32> to vector<16xf32>
    %99 = vector.shape_cast %98 : vector<16xf32> to vector<16x1xf32>
    %100 = vector.broadcast %99 : vector<16x1xf32> to vector<16x16xf32>
    %101 = arith.subf %97, %100 : vector<16x16xf32>
    %102 = math.exp %101 : vector<16x16xf32>
    %cst_45 = arith.constant dense<0.000000e+00> : vector<16xf32>
    %103 = vector.multi_reduction <add>, %102, %cst_45 [1] : vector<16x16xf32> to vector<16xf32>
    %104 = vector.shape_cast %103 : vector<16xf32> to vector<16x1xf32>
    %105 = tpu.reciprocal %104 {approx = true} : vector<16x1xf32> -> vector<16x1xf32>
    %106 = vector.broadcast %105 : vector<16x1xf32> to vector<16x16xf32>
    %107 = arith.mulf %102, %106 : vector<16x16xf32>
    %108 = vector.extract_strided_slice %65 {offsets = [0, 8], sizes = [16, 8], strides = [1, 1]} : vector<16x32xf32> to vector<16x8xf32>
    %109 = arith.truncf %107 : vector<16x16xf32> to vector<16x16xbf16>
    %110 = arith.truncf %108 : vector<16x8xf32> to vector<16x8xbf16>
    %cst_46 = arith.constant dense<0.000000e+00> : vector<16x8xf32>
    %111 = tpu.matmul %109, %110, %cst_46 {dimension_numbers = #tpu.dot_dimension_numbers<[1], [0], [0], [1], [0, 0, 1, 1], [], []>} : vector<16x16xbf16>, vector<16x8xbf16>, vector<16x8xf32> -> vector<16x8xf32>
    %112 = vector.extract_strided_slice %52 {offsets = [8, 0], sizes = [8, 32], strides = [1, 1]} : vector<32x32xf32> to vector<8x32xf32>
    %113 = arith.truncf %111 : vector<16x8xf32> to vector<16x8xbf16>
    %114 = arith.truncf %112 : vector<8x32xf32> to vector<8x32xbf16>
    %cst_47 = arith.constant dense<0.000000e+00> : vector<16x32xf32>
    %115 = tpu.matmul %113, %114, %cst_47 {dimension_numbers = #tpu.dot_dimension_numbers<[1], [0], [0], [1], [0, 0, 1, 1], [], []>} : vector<16x8xbf16>, vector<8x32xbf16>, vector<16x32xf32> -> vector<16x32xf32>
    %116 = arith.addf %90, %115 : vector<16x32xf32>
    %117 = vector.extract_strided_slice %58 {offsets = [0, 16], sizes = [16, 8], strides = [1, 1]} : vector<16x32xf32> to vector<16x8xf32>
    %118 = vector.extract_strided_slice %64 {offsets = [0, 16], sizes = [16, 8], strides = [1, 1]} : vector<16x32xf32> to vector<16x8xf32>
    %119 = arith.truncf %117 : vector<16x8xf32> to vector<16x8xbf16>
    %120 = arith.truncf %118 : vector<16x8xf32> to vector<16x8xbf16>
    %cst_48 = arith.constant dense<0.000000e+00> : vector<16x16xf32>
    %121 = tpu.matmul %119, %120, %cst_48 {dimension_numbers = #tpu.dot_dimension_numbers<[1], [1], [0], [0], [0, 0, 1, 0], [], []>} : vector<16x8xbf16>, vector<16x8xbf16>, vector<16x16xf32> -> vector<16x16xf32>
    %cst_49 = arith.constant 0.353553385 : f32
    %122 = vector.broadcast %cst_49 : f32 to vector<16x16xf32>
    %123 = arith.mulf %121, %122 : vector<16x16xf32>
    %cst_50 = arith.constant dense<0xFF800000> : vector<16xf32>
    %124 = vector.multi_reduction <maximumf>, %123, %cst_50 [1] : vector<16x16xf32> to vector<16xf32>
    %125 = vector.shape_cast %124 : vector<16xf32> to vector<16x1xf32>
    %126 = vector.broadcast %125 : vector<16x1xf32> to vector<16x16xf32>
    %127 = arith.subf %123, %126 : vector<16x16xf32>
    %128 = math.exp %127 : vector<16x16xf32>
    %cst_51 = arith.constant dense<0.000000e+00> : vector<16xf32>
    %129 = vector.multi_reduction <add>, %128, %cst_51 [1] : vector<16x16xf32> to vector<16xf32>
    %130 = vector.shape_cast %129 : vector<16xf32> to vector<16x1xf32>
    %131 = tpu.reciprocal %130 {approx = true} : vector<16x1xf32> -> vector<16x1xf32>
    %132 = vector.broadcast %131 : vector<16x1xf32> to vector<16x16xf32>
    %133 = arith.mulf %128, %132 : vector<16x16xf32>
    %134 = vector.extract_strided_slice %65 {offsets = [0, 16], sizes = [16, 8], strides = [1, 1]} : vector<16x32xf32> to vector<16x8xf32>
    %135 = arith.truncf %133 : vector<16x16xf32> to vector<16x16xbf16>
    %136 = arith.truncf %134 : vector<16x8xf32> to vector<16x8xbf16>
    %cst_52 = arith.constant dense<0.000000e+00> : vector<16x8xf32>
    %137 = tpu.matmul %135, %136, %cst_52 {dimension_numbers = #tpu.dot_dimension_numbers<[1], [0], [0], [1], [0, 0, 1, 1], [], []>} : vector<16x16xbf16>, vector<16x8xbf16>, vector<16x8xf32> -> vector<16x8xf32>
    %138 = vector.extract_strided_slice %52 {offsets = [16, 0], sizes = [8, 32], strides = [1, 1]} : vector<32x32xf32> to vector<8x32xf32>
    %139 = arith.truncf %137 : vector<16x8xf32> to vector<16x8xbf16>
    %140 = arith.truncf %138 : vector<8x32xf32> to vector<8x32xbf16>
    %cst_53 = arith.constant dense<0.000000e+00> : vector<16x32xf32>
    %141 = tpu.matmul %139, %140, %cst_53 {dimension_numbers = #tpu.dot_dimension_numbers<[1], [0], [0], [1], [0, 0, 1, 1], [], []>} : vector<16x8xbf16>, vector<8x32xbf16>, vector<16x32xf32> -> vector<16x32xf32>
    %142 = arith.addf %116, %141 : vector<16x32xf32>
    %143 = vector.extract_strided_slice %58 {offsets = [0, 24], sizes = [16, 8], strides = [1, 1]} : vector<16x32xf32> to vector<16x8xf32>
    %144 = vector.extract_strided_slice %64 {offsets = [0, 24], sizes = [16, 8], strides = [1, 1]} : vector<16x32xf32> to vector<16x8xf32>
    %145 = arith.truncf %143 : vector<16x8xf32> to vector<16x8xbf16>
    %146 = arith.truncf %144 : vector<16x8xf32> to vector<16x8xbf16>
    %cst_54 = arith.constant dense<0.000000e+00> : vector<16x16xf32>
    %147 = tpu.matmul %145, %146, %cst_54 {dimension_numbers = #tpu.dot_dimension_numbers<[1], [1], [0], [0], [0, 0, 1, 0], [], []>} : vector<16x8xbf16>, vector<16x8xbf16>, vector<16x16xf32> -> vector<16x16xf32>
    %cst_55 = arith.constant 0.353553385 : f32
    %148 = vector.broadcast %cst_55 : f32 to vector<16x16xf32>
    %149 = arith.mulf %147, %148 : vector<16x16xf32>
    %cst_56 = arith.constant dense<0xFF800000> : vector<16xf32>
    %150 = vector.multi_reduction <maximumf>, %149, %cst_56 [1] : vector<16x16xf32> to vector<16xf32>
    %151 = vector.shape_cast %150 : vector<16xf32> to vector<16x1xf32>
    %152 = vector.broadcast %151 : vector<16x1xf32> to vector<16x16xf32>
    %153 = arith.subf %149, %152 : vector<16x16xf32>
    %154 = math.exp %153 : vector<16x16xf32>
    %cst_57 = arith.constant dense<0.000000e+00> : vector<16xf32>
    %155 = vector.multi_reduction <add>, %154, %cst_57 [1] : vector<16x16xf32> to vector<16xf32>
    %156 = vector.shape_cast %155 : vector<16xf32> to vector<16x1xf32>
    %157 = tpu.reciprocal %156 {approx = true} : vector<16x1xf32> -> vector<16x1xf32>
    %158 = vector.broadcast %157 : vector<16x1xf32> to vector<16x16xf32>
    %159 = arith.mulf %154, %158 : vector<16x16xf32>
    %160 = vector.extract_strided_slice %65 {offsets = [0, 24], sizes = [16, 8], strides = [1, 1]} : vector<16x32xf32> to vector<16x8xf32>
    %161 = arith.truncf %159 : vector<16x16xf32> to vector<16x16xbf16>
    %162 = arith.truncf %160 : vector<16x8xf32> to vector<16x8xbf16>
    %cst_58 = arith.constant dense<0.000000e+00> : vector<16x8xf32>
    %163 = tpu.matmul %161, %162, %cst_58 {dimension_numbers = #tpu.dot_dimension_numbers<[1], [0], [0], [1], [0, 0, 1, 1], [], []>} : vector<16x16xbf16>, vector<16x8xbf16>, vector<16x8xf32> -> vector<16x8xf32>
    %164 = vector.extract_strided_slice %52 {offsets = [24, 0], sizes = [8, 32], strides = [1, 1]} : vector<32x32xf32> to vector<8x32xf32>
    %165 = arith.truncf %163 : vector<16x8xf32> to vector<16x8xbf16>
    %166 = arith.truncf %164 : vector<8x32xf32> to vector<8x32xbf16>
    %cst_59 = arith.constant dense<0.000000e+00> : vector<16x32xf32>
    %167 = tpu.matmul %165, %166, %cst_59 {dimension_numbers = #tpu.dot_dimension_numbers<[1], [0], [0], [1], [0, 0, 1, 1], [], []>} : vector<16x8xbf16>, vector<8x32xbf16>, vector<16x32xf32> -> vector<16x32xf32>
    %168 = arith.addf %142, %167 : vector<16x32xf32>
    %169 = vector.broadcast %53 : vector<1x32xf32> to vector<16x32xf32>
    %170 = arith.addf %168, %169 : vector<16x32xf32>
    %171 = arith.addf %22, %170 : vector<16x32xf32>
    %cst_60 = arith.constant dense<0.000000e+00> : vector<16xf32>
    %172 = vector.multi_reduction <add>, %171, %cst_60 [1] : vector<16x32xf32> to vector<16xf32>
    %173 = vector.shape_cast %172 : vector<16xf32> to vector<16x1xf32>
    %cst_61 = arith.constant 3.200000e+01 : f32
    %174 = vector.broadcast %cst_61 : f32 to vector<16x1xf32>
    %175 = arith.divf %173, %174 : vector<16x1xf32>
    %176 = vector.broadcast %175 : vector<16x1xf32> to vector<16x32xf32>
    %177 = arith.subf %171, %176 : vector<16x32xf32>
    %178 = arith.mulf %177, %177 : vector<16x32xf32>
    %cst_62 = arith.constant dense<0.000000e+00> : vector<16xf32>
    %179 = vector.multi_reduction <add>, %178, %cst_62 [1] : vector<16x32xf32> to vector<16xf32>
    %180 = vector.shape_cast %179 : vector<16xf32> to vector<16x1xf32>
    %cst_63 = arith.constant 3.200000e+01 : f32
    %181 = vector.broadcast %cst_63 : f32 to vector<16x1xf32>
    %182 = arith.divf %180, %181 : vector<16x1xf32>
    %cst_64 = arith.constant 9.99999974E-6 : f32
    %183 = vector.broadcast %cst_64 : f32 to vector<16x1xf32>
    %184 = arith.addf %182, %183 : vector<16x1xf32>
    %185 = math.rsqrt %184 : vector<16x1xf32>
    %186 = vector.broadcast %185 : vector<16x1xf32> to vector<16x32xf32>
    %187 = arith.mulf %177, %186 : vector<16x32xf32>
    %c0_65 = arith.constant 0 : index
    %c0_66 = arith.constant 0 : index
    %188 = vector.load %arg19[%c0_65, %c0_66] : memref<32x128xf32, #tpu.memory_space<vmem>>, vector<32x128xf32>
    %c0_67 = arith.constant 0 : index
    %c0_68 = arith.constant 0 : index
    %189 = vector.load %arg20[%c0_67, %c0_68] : memref<1x128xf32, #tpu.memory_space<vmem>>, vector<1x128xf32>
    %c0_69 = arith.constant 0 : index
    %c0_70 = arith.constant 0 : index
    %190 = vector.load %arg21[%c0_69, %c0_70] : memref<128x32xf32, #tpu.memory_space<vmem>>, vector<128x32xf32>
    %c0_71 = arith.constant 0 : index
    %c0_72 = arith.constant 0 : index
    %191 = vector.load %arg22[%c0_71, %c0_72] : memref<1x32xf32, #tpu.memory_space<vmem>>, vector<1x32xf32>
    %192 = arith.truncf %187 : vector<16x32xf32> to vector<16x32xbf16>
    %193 = arith.truncf %188 : vector<32x128xf32> to vector<32x128xbf16>
    %cst_73 = arith.constant dense<0.000000e+00> : vector<16x128xf32>
    %194 = tpu.matmul %192, %193, %cst_73 {dimension_numbers = #tpu.dot_dimension_numbers<[1], [0], [0], [1], [0, 0, 1, 1], [], []>} : vector<16x32xbf16>, vector<32x128xbf16>, vector<16x128xf32> -> vector<16x128xf32>
    %195 = vector.broadcast %189 : vector<1x128xf32> to vector<16x128xf32>
    %196 = arith.addf %194, %195 : vector<16x128xf32>
    %cst_74 = arith.constant 5.000000e-01 : f32
    %197 = vector.broadcast %cst_74 : f32 to vector<16x128xf32>
    %198 = arith.mulf %197, %196 : vector<16x128xf32>
    %cst_75 = arith.constant 4.471500e-02 : f32
    %199 = vector.broadcast %cst_75 : f32 to vector<16x128xf32>
    %200 = arith.mulf %199, %196 : vector<16x128xf32>
    %201 = arith.mulf %200, %196 : vector<16x128xf32>
    %202 = arith.mulf %201, %196 : vector<16x128xf32>
    %203 = arith.addf %196, %202 : vector<16x128xf32>
    %cst_76 = arith.constant 0.797884583 : f32
    %204 = vector.broadcast %cst_76 : f32 to vector<16x128xf32>
    %205 = arith.mulf %204, %203 : vector<16x128xf32>
    %206 = math.tanh %205 : vector<16x128xf32>
    %cst_77 = arith.constant 1.000000e+00 : f32
    %207 = vector.broadcast %cst_77 : f32 to vector<16x128xf32>
    %208 = arith.addf %207, %206 : vector<16x128xf32>
    %209 = arith.mulf %198, %208 : vector<16x128xf32>
    %210 = arith.truncf %209 : vector<16x128xf32> to vector<16x128xbf16>
    %211 = arith.truncf %190 : vector<128x32xf32> to vector<128x32xbf16>
    %cst_78 = arith.constant dense<0.000000e+00> : vector<16x32xf32>
    %212 = tpu.matmul %210, %211, %cst_78 {dimension_numbers = #tpu.dot_dimension_numbers<[1], [0], [0], [1], [0, 0, 1, 1], [], []>} : vector<16x128xbf16>, vector<128x32xbf16>, vector<16x32xf32> -> vector<16x32xf32>
    %213 = vector.broadcast %191 : vector<1x32xf32> to vector<16x32xf32>
    %214 = arith.addf %212, %213 : vector<16x32xf32>
    %215 = arith.addf %171, %214 : vector<16x32xf32>
    %c0_79 = arith.constant 0 : index
    %c0_80 = arith.constant 0 : index
    %216 = vector.load %arg13[%c0_79, %c0_80] : memref<32x32xf32, #tpu.memory_space<vmem>>, vector<32x32xf32>
    %c0_81 = arith.constant 0 : index
    %c0_82 = arith.constant 0 : index
    %217 = vector.load %arg14[%c0_81, %c0_82] : memref<1x32xf32, #tpu.memory_space<vmem>>, vector<1x32xf32>
    %c0_83 = arith.constant 0 : index
    %c0_84 = arith.constant 0 : index
    %218 = vector.load %arg15[%c0_83, %c0_84] : memref<32x64xf32, #tpu.memory_space<vmem>>, vector<32x64xf32>
    %c0_85 = arith.constant 0 : index
    %c0_86 = arith.constant 0 : index
    %219 = vector.load %arg16[%c0_85, %c0_86] : memref<1x64xf32, #tpu.memory_space<vmem>>, vector<1x64xf32>
    %c0_87 = arith.constant 0 : index
    %c0_88 = arith.constant 0 : index
    %220 = vector.load %arg17[%c0_87, %c0_88] : memref<32x32xf32, #tpu.memory_space<vmem>>, vector<32x32xf32>
    %c0_89 = arith.constant 0 : index
    %c0_90 = arith.constant 0 : index
    %221 = vector.load %arg18[%c0_89, %c0_90] : memref<1x32xf32, #tpu.memory_space<vmem>>, vector<1x32xf32>
    %222 = arith.truncf %46 : vector<16x32xf32> to vector<16x32xbf16>
    %223 = arith.truncf %216 : vector<32x32xf32> to vector<32x32xbf16>
    %cst_91 = arith.constant dense<0.000000e+00> : vector<16x32xf32>
    %224 = tpu.matmul %222, %223, %cst_91 {dimension_numbers = #tpu.dot_dimension_numbers<[1], [0], [0], [1], [0, 0, 1, 1], [], []>} : vector<16x32xbf16>, vector<32x32xbf16>, vector<16x32xf32> -> vector<16x32xf32>
    %225 = vector.broadcast %217 : vector<1x32xf32> to vector<16x32xf32>
    %226 = arith.addf %224, %225 : vector<16x32xf32>
    %227 = arith.truncf %23 : vector<16x32xf32> to vector<16x32xbf16>
    %228 = arith.truncf %218 : vector<32x64xf32> to vector<32x64xbf16>
    %cst_92 = arith.constant dense<0.000000e+00> : vector<16x64xf32>
    %229 = tpu.matmul %227, %228, %cst_92 {dimension_numbers = #tpu.dot_dimension_numbers<[1], [0], [0], [1], [0, 0, 1, 1], [], []>} : vector<16x32xbf16>, vector<32x64xbf16>, vector<16x64xf32> -> vector<16x64xf32>
    %230 = vector.broadcast %219 : vector<1x64xf32> to vector<16x64xf32>
    %231 = arith.addf %229, %230 : vector<16x64xf32>
    %232 = vector.extract_strided_slice %231 {offsets = [0, 0], sizes = [16, 32], strides = [1, 1]} : vector<16x64xf32> to vector<16x32xf32>
    %233 = vector.extract_strided_slice %231 {offsets = [0, 32], sizes = [16, 32], strides = [1, 1]} : vector<16x64xf32> to vector<16x32xf32>
    %234 = vector.extract_strided_slice %226 {offsets = [0, 0], sizes = [16, 8], strides = [1, 1]} : vector<16x32xf32> to vector<16x8xf32>
    %235 = vector.extract_strided_slice %232 {offsets = [0, 0], sizes = [16, 8], strides = [1, 1]} : vector<16x32xf32> to vector<16x8xf32>
    %236 = arith.truncf %234 : vector<16x8xf32> to vector<16x8xbf16>
    %237 = arith.truncf %235 : vector<16x8xf32> to vector<16x8xbf16>
    %cst_93 = arith.constant dense<0.000000e+00> : vector<16x16xf32>
    %238 = tpu.matmul %236, %237, %cst_93 {dimension_numbers = #tpu.dot_dimension_numbers<[1], [1], [0], [0], [0, 0, 1, 0], [], []>} : vector<16x8xbf16>, vector<16x8xbf16>, vector<16x16xf32> -> vector<16x16xf32>
    %cst_94 = arith.constant 0.353553385 : f32
    %239 = vector.broadcast %cst_94 : f32 to vector<16x16xf32>
    %240 = arith.mulf %238, %239 : vector<16x16xf32>
    %cst_95 = arith.constant dense<0xFF800000> : vector<16xf32>
    %241 = vector.multi_reduction <maximumf>, %240, %cst_95 [1] : vector<16x16xf32> to vector<16xf32>
    %242 = vector.shape_cast %241 : vector<16xf32> to vector<16x1xf32>
    %243 = vector.broadcast %242 : vector<16x1xf32> to vector<16x16xf32>
    %244 = arith.subf %240, %243 : vector<16x16xf32>
    %245 = math.exp %244 : vector<16x16xf32>
    %cst_96 = arith.constant dense<0.000000e+00> : vector<16xf32>
    %246 = vector.multi_reduction <add>, %245, %cst_96 [1] : vector<16x16xf32> to vector<16xf32>
    %247 = vector.shape_cast %246 : vector<16xf32> to vector<16x1xf32>
    %248 = tpu.reciprocal %247 {approx = true} : vector<16x1xf32> -> vector<16x1xf32>
    %249 = vector.broadcast %248 : vector<16x1xf32> to vector<16x16xf32>
    %250 = arith.mulf %245, %249 : vector<16x16xf32>
    %251 = vector.extract_strided_slice %233 {offsets = [0, 0], sizes = [16, 8], strides = [1, 1]} : vector<16x32xf32> to vector<16x8xf32>
    %252 = arith.truncf %250 : vector<16x16xf32> to vector<16x16xbf16>
    %253 = arith.truncf %251 : vector<16x8xf32> to vector<16x8xbf16>
    %cst_97 = arith.constant dense<0.000000e+00> : vector<16x8xf32>
    %254 = tpu.matmul %252, %253, %cst_97 {dimension_numbers = #tpu.dot_dimension_numbers<[1], [0], [0], [1], [0, 0, 1, 1], [], []>} : vector<16x16xbf16>, vector<16x8xbf16>, vector<16x8xf32> -> vector<16x8xf32>
    %255 = vector.extract_strided_slice %220 {offsets = [0, 0], sizes = [8, 32], strides = [1, 1]} : vector<32x32xf32> to vector<8x32xf32>
    %256 = arith.truncf %254 : vector<16x8xf32> to vector<16x8xbf16>
    %257 = arith.truncf %255 : vector<8x32xf32> to vector<8x32xbf16>
    %cst_98 = arith.constant dense<0.000000e+00> : vector<16x32xf32>
    %258 = tpu.matmul %256, %257, %cst_98 {dimension_numbers = #tpu.dot_dimension_numbers<[1], [0], [0], [1], [0, 0, 1, 1], [], []>} : vector<16x8xbf16>, vector<8x32xbf16>, vector<16x32xf32> -> vector<16x32xf32>
    %259 = vector.extract_strided_slice %226 {offsets = [0, 8], sizes = [16, 8], strides = [1, 1]} : vector<16x32xf32> to vector<16x8xf32>
    %260 = vector.extract_strided_slice %232 {offsets = [0, 8], sizes = [16, 8], strides = [1, 1]} : vector<16x32xf32> to vector<16x8xf32>
    %261 = arith.truncf %259 : vector<16x8xf32> to vector<16x8xbf16>
    %262 = arith.truncf %260 : vector<16x8xf32> to vector<16x8xbf16>
    %cst_99 = arith.constant dense<0.000000e+00> : vector<16x16xf32>
    %263 = tpu.matmul %261, %262, %cst_99 {dimension_numbers = #tpu.dot_dimension_numbers<[1], [1], [0], [0], [0, 0, 1, 0], [], []>} : vector<16x8xbf16>, vector<16x8xbf16>, vector<16x16xf32> -> vector<16x16xf32>
    %cst_100 = arith.constant 0.353553385 : f32
    %264 = vector.broadcast %cst_100 : f32 to vector<16x16xf32>
    %265 = arith.mulf %263, %264 : vector<16x16xf32>
    %cst_101 = arith.constant dense<0xFF800000> : vector<16xf32>
    %266 = vector.multi_reduction <maximumf>, %265, %cst_101 [1] : vector<16x16xf32> to vector<16xf32>
    %267 = vector.shape_cast %266 : vector<16xf32> to vector<16x1xf32>
    %268 = vector.broadcast %267 : vector<16x1xf32> to vector<16x16xf32>
    %269 = arith.subf %265, %268 : vector<16x16xf32>
    %270 = math.exp %269 : vector<16x16xf32>
    %cst_102 = arith.constant dense<0.000000e+00> : vector<16xf32>
    %271 = vector.multi_reduction <add>, %270, %cst_102 [1] : vector<16x16xf32> to vector<16xf32>
    %272 = vector.shape_cast %271 : vector<16xf32> to vector<16x1xf32>
    %273 = tpu.reciprocal %272 {approx = true} : vector<16x1xf32> -> vector<16x1xf32>
    %274 = vector.broadcast %273 : vector<16x1xf32> to vector<16x16xf32>
    %275 = arith.mulf %270, %274 : vector<16x16xf32>
    %276 = vector.extract_strided_slice %233 {offsets = [0, 8], sizes = [16, 8], strides = [1, 1]} : vector<16x32xf32> to vector<16x8xf32>
    %277 = arith.truncf %275 : vector<16x16xf32> to vector<16x16xbf16>
    %278 = arith.truncf %276 : vector<16x8xf32> to vector<16x8xbf16>
    %cst_103 = arith.constant dense<0.000000e+00> : vector<16x8xf32>
    %279 = tpu.matmul %277, %278, %cst_103 {dimension_numbers = #tpu.dot_dimension_numbers<[1], [0], [0], [1], [0, 0, 1, 1], [], []>} : vector<16x16xbf16>, vector<16x8xbf16>, vector<16x8xf32> -> vector<16x8xf32>
    %280 = vector.extract_strided_slice %220 {offsets = [8, 0], sizes = [8, 32], strides = [1, 1]} : vector<32x32xf32> to vector<8x32xf32>
    %281 = arith.truncf %279 : vector<16x8xf32> to vector<16x8xbf16>
    %282 = arith.truncf %280 : vector<8x32xf32> to vector<8x32xbf16>
    %cst_104 = arith.constant dense<0.000000e+00> : vector<16x32xf32>
    %283 = tpu.matmul %281, %282, %cst_104 {dimension_numbers = #tpu.dot_dimension_numbers<[1], [0], [0], [1], [0, 0, 1, 1], [], []>} : vector<16x8xbf16>, vector<8x32xbf16>, vector<16x32xf32> -> vector<16x32xf32>
    %284 = arith.addf %258, %283 : vector<16x32xf32>
    %285 = vector.extract_strided_slice %226 {offsets = [0, 16], sizes = [16, 8], strides = [1, 1]} : vector<16x32xf32> to vector<16x8xf32>
    %286 = vector.extract_strided_slice %232 {offsets = [0, 16], sizes = [16, 8], strides = [1, 1]} : vector<16x32xf32> to vector<16x8xf32>
    %287 = arith.truncf %285 : vector<16x8xf32> to vector<16x8xbf16>
    %288 = arith.truncf %286 : vector<16x8xf32> to vector<16x8xbf16>
    %cst_105 = arith.constant dense<0.000000e+00> : vector<16x16xf32>
    %289 = tpu.matmul %287, %288, %cst_105 {dimension_numbers = #tpu.dot_dimension_numbers<[1], [1], [0], [0], [0, 0, 1, 0], [], []>} : vector<16x8xbf16>, vector<16x8xbf16>, vector<16x16xf32> -> vector<16x16xf32>
    %cst_106 = arith.constant 0.353553385 : f32
    %290 = vector.broadcast %cst_106 : f32 to vector<16x16xf32>
    %291 = arith.mulf %289, %290 : vector<16x16xf32>
    %cst_107 = arith.constant dense<0xFF800000> : vector<16xf32>
    %292 = vector.multi_reduction <maximumf>, %291, %cst_107 [1] : vector<16x16xf32> to vector<16xf32>
    %293 = vector.shape_cast %292 : vector<16xf32> to vector<16x1xf32>
    %294 = vector.broadcast %293 : vector<16x1xf32> to vector<16x16xf32>
    %295 = arith.subf %291, %294 : vector<16x16xf32>
    %296 = math.exp %295 : vector<16x16xf32>
    %cst_108 = arith.constant dense<0.000000e+00> : vector<16xf32>
    %297 = vector.multi_reduction <add>, %296, %cst_108 [1] : vector<16x16xf32> to vector<16xf32>
    %298 = vector.shape_cast %297 : vector<16xf32> to vector<16x1xf32>
    %299 = tpu.reciprocal %298 {approx = true} : vector<16x1xf32> -> vector<16x1xf32>
    %300 = vector.broadcast %299 : vector<16x1xf32> to vector<16x16xf32>
    %301 = arith.mulf %296, %300 : vector<16x16xf32>
    %302 = vector.extract_strided_slice %233 {offsets = [0, 16], sizes = [16, 8], strides = [1, 1]} : vector<16x32xf32> to vector<16x8xf32>
    %303 = arith.truncf %301 : vector<16x16xf32> to vector<16x16xbf16>
    %304 = arith.truncf %302 : vector<16x8xf32> to vector<16x8xbf16>
    %cst_109 = arith.constant dense<0.000000e+00> : vector<16x8xf32>
    %305 = tpu.matmul %303, %304, %cst_109 {dimension_numbers = #tpu.dot_dimension_numbers<[1], [0], [0], [1], [0, 0, 1, 1], [], []>} : vector<16x16xbf16>, vector<16x8xbf16>, vector<16x8xf32> -> vector<16x8xf32>
    %306 = vector.extract_strided_slice %220 {offsets = [16, 0], sizes = [8, 32], strides = [1, 1]} : vector<32x32xf32> to vector<8x32xf32>
    %307 = arith.truncf %305 : vector<16x8xf32> to vector<16x8xbf16>
    %308 = arith.truncf %306 : vector<8x32xf32> to vector<8x32xbf16>
    %cst_110 = arith.constant dense<0.000000e+00> : vector<16x32xf32>
    %309 = tpu.matmul %307, %308, %cst_110 {dimension_numbers = #tpu.dot_dimension_numbers<[1], [0], [0], [1], [0, 0, 1, 1], [], []>} : vector<16x8xbf16>, vector<8x32xbf16>, vector<16x32xf32> -> vector<16x32xf32>
    %310 = arith.addf %284, %309 : vector<16x32xf32>
    %311 = vector.extract_strided_slice %226 {offsets = [0, 24], sizes = [16, 8], strides = [1, 1]} : vector<16x32xf32> to vector<16x8xf32>
    %312 = vector.extract_strided_slice %232 {offsets = [0, 24], sizes = [16, 8], strides = [1, 1]} : vector<16x32xf32> to vector<16x8xf32>
    %313 = arith.truncf %311 : vector<16x8xf32> to vector<16x8xbf16>
    %314 = arith.truncf %312 : vector<16x8xf32> to vector<16x8xbf16>
    %cst_111 = arith.constant dense<0.000000e+00> : vector<16x16xf32>
    %315 = tpu.matmul %313, %314, %cst_111 {dimension_numbers = #tpu.dot_dimension_numbers<[1], [1], [0], [0], [0, 0, 1, 0], [], []>} : vector<16x8xbf16>, vector<16x8xbf16>, vector<16x16xf32> -> vector<16x16xf32>
    %cst_112 = arith.constant 0.353553385 : f32
    %316 = vector.broadcast %cst_112 : f32 to vector<16x16xf32>
    %317 = arith.mulf %315, %316 : vector<16x16xf32>
    %cst_113 = arith.constant dense<0xFF800000> : vector<16xf32>
    %318 = vector.multi_reduction <maximumf>, %317, %cst_113 [1] : vector<16x16xf32> to vector<16xf32>
    %319 = vector.shape_cast %318 : vector<16xf32> to vector<16x1xf32>
    %320 = vector.broadcast %319 : vector<16x1xf32> to vector<16x16xf32>
    %321 = arith.subf %317, %320 : vector<16x16xf32>
    %322 = math.exp %321 : vector<16x16xf32>
    %cst_114 = arith.constant dense<0.000000e+00> : vector<16xf32>
    %323 = vector.multi_reduction <add>, %322, %cst_114 [1] : vector<16x16xf32> to vector<16xf32>
    %324 = vector.shape_cast %323 : vector<16xf32> to vector<16x1xf32>
    %325 = tpu.reciprocal %324 {approx = true} : vector<16x1xf32> -> vector<16x1xf32>
    %326 = vector.broadcast %325 : vector<16x1xf32> to vector<16x16xf32>
    %327 = arith.mulf %322, %326 : vector<16x16xf32>
    %328 = vector.extract_strided_slice %233 {offsets = [0, 24], sizes = [16, 8], strides = [1, 1]} : vector<16x32xf32> to vector<16x8xf32>
    %329 = arith.truncf %327 : vector<16x16xf32> to vector<16x16xbf16>
    %330 = arith.truncf %328 : vector<16x8xf32> to vector<16x8xbf16>
    %cst_115 = arith.constant dense<0.000000e+00> : vector<16x8xf32>
    %331 = tpu.matmul %329, %330, %cst_115 {dimension_numbers = #tpu.dot_dimension_numbers<[1], [0], [0], [1], [0, 0, 1, 1], [], []>} : vector<16x16xbf16>, vector<16x8xbf16>, vector<16x8xf32> -> vector<16x8xf32>
    %332 = vector.extract_strided_slice %220 {offsets = [24, 0], sizes = [8, 32], strides = [1, 1]} : vector<32x32xf32> to vector<8x32xf32>
    %333 = arith.truncf %331 : vector<16x8xf32> to vector<16x8xbf16>
    %334 = arith.truncf %332 : vector<8x32xf32> to vector<8x32xbf16>
    %cst_116 = arith.constant dense<0.000000e+00> : vector<16x32xf32>
    %335 = tpu.matmul %333, %334, %cst_116 {dimension_numbers = #tpu.dot_dimension_numbers<[1], [0], [0], [1], [0, 0, 1, 1], [], []>} : vector<16x8xbf16>, vector<8x32xbf16>, vector<16x32xf32> -> vector<16x32xf32>
    %336 = arith.addf %310, %335 : vector<16x32xf32>
    %337 = vector.broadcast %221 : vector<1x32xf32> to vector<16x32xf32>
    %338 = arith.addf %336, %337 : vector<16x32xf32>
    %339 = arith.addf %46, %338 : vector<16x32xf32>
    %cst_117 = arith.constant dense<0.000000e+00> : vector<16xf32>
    %340 = vector.multi_reduction <add>, %339, %cst_117 [1] : vector<16x32xf32> to vector<16xf32>
    %341 = vector.shape_cast %340 : vector<16xf32> to vector<16x1xf32>
    %cst_118 = arith.constant 3.200000e+01 : f32
    %342 = vector.broadcast %cst_118 : f32 to vector<16x1xf32>
    %343 = arith.divf %341, %342 : vector<16x1xf32>
    %344 = vector.broadcast %343 : vector<16x1xf32> to vector<16x32xf32>
    %345 = arith.subf %339, %344 : vector<16x32xf32>
    %346 = arith.mulf %345, %345 : vector<16x32xf32>
    %cst_119 = arith.constant dense<0.000000e+00> : vector<16xf32>
    %347 = vector.multi_reduction <add>, %346, %cst_119 [1] : vector<16x32xf32> to vector<16xf32>
    %348 = vector.shape_cast %347 : vector<16xf32> to vector<16x1xf32>
    %cst_120 = arith.constant 3.200000e+01 : f32
    %349 = vector.broadcast %cst_120 : f32 to vector<16x1xf32>
    %350 = arith.divf %348, %349 : vector<16x1xf32>
    %cst_121 = arith.constant 9.99999974E-6 : f32
    %351 = vector.broadcast %cst_121 : f32 to vector<16x1xf32>
    %352 = arith.addf %350, %351 : vector<16x1xf32>
    %353 = math.rsqrt %352 : vector<16x1xf32>
    %354 = vector.broadcast %353 : vector<16x1xf32> to vector<16x32xf32>
    %355 = arith.mulf %345, %354 : vector<16x32xf32>
    %c0_122 = arith.constant 0 : index
    %c0_123 = arith.constant 0 : index
    %356 = vector.load %arg23[%c0_122, %c0_123] : memref<32x128xf32, #tpu.memory_space<vmem>>, vector<32x128xf32>
    %c0_124 = arith.constant 0 : index
    %c0_125 = arith.constant 0 : index
    %357 = vector.load %arg24[%c0_124, %c0_125] : memref<1x128xf32, #tpu.memory_space<vmem>>, vector<1x128xf32>
    %c0_126 = arith.constant 0 : index
    %c0_127 = arith.constant 0 : index
    %358 = vector.load %arg25[%c0_126, %c0_127] : memref<128x32xf32, #tpu.memory_space<vmem>>, vector<128x32xf32>
    %c0_128 = arith.constant 0 : index
    %c0_129 = arith.constant 0 : index
    %359 = vector.load %arg26[%c0_128, %c0_129] : memref<1x32xf32, #tpu.memory_space<vmem>>, vector<1x32xf32>
    %360 = arith.truncf %355 : vector<16x32xf32> to vector<16x32xbf16>
    %361 = arith.truncf %356 : vector<32x128xf32> to vector<32x128xbf16>
    %cst_130 = arith.constant dense<0.000000e+00> : vector<16x128xf32>
    %362 = tpu.matmul %360, %361, %cst_130 {dimension_numbers = #tpu.dot_dimension_numbers<[1], [0], [0], [1], [0, 0, 1, 1], [], []>} : vector<16x32xbf16>, vector<32x128xbf16>, vector<16x128xf32> -> vector<16x128xf32>
    %363 = vector.broadcast %357 : vector<1x128xf32> to vector<16x128xf32>
    %364 = arith.addf %362, %363 : vector<16x128xf32>
    %cst_131 = arith.constant 5.000000e-01 : f32
    %365 = vector.broadcast %cst_131 : f32 to vector<16x128xf32>
    %366 = arith.mulf %365, %364 : vector<16x128xf32>
    %cst_132 = arith.constant 4.471500e-02 : f32
    %367 = vector.broadcast %cst_132 : f32 to vector<16x128xf32>
    %368 = arith.mulf %367, %364 : vector<16x128xf32>
    %369 = arith.mulf %368, %364 : vector<16x128xf32>
    %370 = arith.mulf %369, %364 : vector<16x128xf32>
    %371 = arith.addf %364, %370 : vector<16x128xf32>
    %cst_133 = arith.constant 0.797884583 : f32
    %372 = vector.broadcast %cst_133 : f32 to vector<16x128xf32>
    %373 = arith.mulf %372, %371 : vector<16x128xf32>
    %374 = math.tanh %373 : vector<16x128xf32>
    %cst_134 = arith.constant 1.000000e+00 : f32
    %375 = vector.broadcast %cst_134 : f32 to vector<16x128xf32>
    %376 = arith.addf %375, %374 : vector<16x128xf32>
    %377 = arith.mulf %366, %376 : vector<16x128xf32>
    %378 = arith.truncf %377 : vector<16x128xf32> to vector<16x128xbf16>
    %379 = arith.truncf %358 : vector<128x32xf32> to vector<128x32xbf16>
    %cst_135 = arith.constant dense<0.000000e+00> : vector<16x32xf32>
    %380 = tpu.matmul %378, %379, %cst_135 {dimension_numbers = #tpu.dot_dimension_numbers<[1], [0], [0], [1], [0, 0, 1, 1], [], []>} : vector<16x128xbf16>, vector<128x32xbf16>, vector<16x32xf32> -> vector<16x32xf32>
    %381 = vector.broadcast %359 : vector<1x32xf32> to vector<16x32xf32>
    %382 = arith.addf %380, %381 : vector<16x32xf32>
    %383 = arith.addf %339, %382 : vector<16x32xf32>
    %c0_136 = arith.constant 0 : index
    %c0_137 = arith.constant 0 : index
    %384 = vector.load %arg27[%c0_136, %c0_137] : memref<32x4xf32, #tpu.memory_space<vmem>>, vector<32x4xf32>
    %385 = arith.truncf %215 : vector<16x32xf32> to vector<16x32xbf16>
    %386 = arith.truncf %384 : vector<32x4xf32> to vector<32x4xbf16>
    %cst_138 = arith.constant dense<0.000000e+00> : vector<16x4xf32>
    %387 = tpu.matmul %385, %386, %cst_138 {dimension_numbers = #tpu.dot_dimension_numbers<[1], [0], [0], [1], [0, 0, 1, 1], [], []>} : vector<16x32xbf16>, vector<32x4xbf16>, vector<16x4xf32> -> vector<16x4xf32>
    %c0_139 = arith.constant 0 : index
    %c0_140 = arith.constant 0 : index
    %388 = vector.load %arg28[%c0_139, %c0_140] : memref<1x4xf32, #tpu.memory_space<vmem>>, vector<1x4xf32>
    %389 = vector.broadcast %388 : vector<1x4xf32> to vector<16x4xf32>
    %390 = arith.addf %387, %389 : vector<16x4xf32>
    %c0_141 = arith.constant 0 : index
    %c0_142 = arith.constant 0 : index
    %c0_143 = arith.constant 0 : index
    %391 = vector.load %arg31[%c0_141, %c0_142, %c0_143] : memref<1x16x4xf32, #tpu.memory_space<vmem>>, vector<1x16x4xf32>
    %392 = vector.shape_cast %391 : vector<1x16x4xf32> to vector<16x4xf32>
    %393 = vector.shape_cast %390 : vector<16x4xf32> to vector<1x16x4xf32>
    tpu.vector_store %arg31[%c0_141, %c0_142, %c0_143], %393 {strides = array<i32>} : memref<1x16x4xf32, #tpu.memory_space<vmem>>, vector<1x16x4xf32>,
    %c0_144 = arith.constant 0 : index
    %c0_145 = arith.constant 0 : index
    %394 = vector.load %arg29[%c0_144, %c0_145] : memref<32x4xf32, #tpu.memory_space<vmem>>, vector<32x4xf32>
    %395 = arith.truncf %383 : vector<16x32xf32> to vector<16x32xbf16>
    %396 = arith.truncf %394 : vector<32x4xf32> to vector<32x4xbf16>
    %cst_146 = arith.constant dense<0.000000e+00> : vector<16x4xf32>
    %397 = tpu.matmul %395, %396, %cst_146 {dimension_numbers = #tpu.dot_dimension_numbers<[1], [0], [0], [1], [0, 0, 1, 1], [], []>} : vector<16x32xbf16>, vector<32x4xbf16>, vector<16x4xf32> -> vector<16x4xf32>
    %c0_147 = arith.constant 0 : index
    %c0_148 = arith.constant 0 : index
    %398 = vector.load %arg30[%c0_147, %c0_148] : memref<1x4xf32, #tpu.memory_space<vmem>>, vector<1x4xf32>
    %399 = vector.broadcast %398 : vector<1x4xf32> to vector<16x4xf32>
    %400 = arith.addf %397, %399 : vector<16x4xf32>
    %c0_149 = arith.constant 0 : index
    %c0_150 = arith.constant 0 : index
    %c0_151 = arith.constant 0 : index
    %401 = vector.load %arg32[%c0_149, %c0_150, %c0_151] : memref<1x16x4xf32, #tpu.memory_space<vmem>>, vector<1x16x4xf32>
    %402 = vector.shape_cast %401 : vector<1x16x4xf32> to vector<16x4xf32>
    %403 = vector.shape_cast %400 : vector<16x4xf32> to vector<1x16x4xf32>
    tpu.vector_store %arg32[%c0_149, %c0_150, %c0_151], %403 {strides = array<i32>} : memref<1x16x4xf32, #tpu.memory_space<vmem>>, vector<1x16x4xf32>,
    return
  }
  func.func @transform_0(%arg0: i32) -> (i32, i32, i32) {
    %c0_i32 = arith.constant 0 : i32
    %c0_i32_0 = arith.constant 0 : i32
    %c0_i32_1 = arith.constant 0 : i32
    return %arg0, %c0_i32, %c0_i32_0 : i32, i32, i32
  }
  func.func @transform_1(%arg0: i32) -> (i32, i32, i32) {
    %c0_i32 = arith.constant 0 : i32
    %c0_i32_0 = arith.constant 0 : i32
    %c0_i32_1 = arith.constant 0 : i32
    return %arg0, %c0_i32, %c0_i32_0 : i32, i32, i32
  }
  func.func @transform_2(%arg0: i32) -> (i32, i32) {
    %c0_i32 = arith.constant 0 : i32
    %c0_i32_0 = arith.constant 0 : i32
    %c0_i32_1 = arith.constant 0 : i32
    return %c0_i32, %c0_i32_0 : i32, i32
  }
  func.func @transform_3(%arg0: i32) -> (i32, i32) {
    %c0_i32 = arith.constant 0 : i32
    %c0_i32_0 = arith.constant 0 : i32
    %c0_i32_1 = arith.constant 0 : i32
    return %c0_i32, %c0_i32_0 : i32, i32
  }
  func.func @transform_4(%arg0: i32) -> (i32, i32) {
    %c0_i32 = arith.constant 0 : i32
    %c0_i32_0 = arith.constant 0 : i32
    %c0_i32_1 = arith.constant 0 : i32
    return %c0_i32, %c0_i32_0 : i32, i32
  }
  func.func @transform_5(%arg0: i32) -> (i32, i32) {
    %c0_i32 = arith.constant 0 : i32
    %c0_i32_0 = arith.constant 0 : i32
    %c0_i32_1 = arith.constant 0 : i32
    return %c0_i32, %c0_i32_0 : i32, i32
  }
  func.func @transform_6(%arg0: i32) -> (i32, i32) {
    %c0_i32 = arith.constant 0 : i32
    %c0_i32_0 = arith.constant 0 : i32
    %c0_i32_1 = arith.constant 0 : i32
    return %c0_i32, %c0_i32_0 : i32, i32
  }
  func.func @transform_7(%arg0: i32) -> (i32, i32) {
    %c0_i32 = arith.constant 0 : i32
    %c0_i32_0 = arith.constant 0 : i32
    %c0_i32_1 = arith.constant 0 : i32
    return %c0_i32, %c0_i32_0 : i32, i32
  }
  func.func @transform_8(%arg0: i32) -> (i32, i32) {
    %c0_i32 = arith.constant 0 : i32
    %c0_i32_0 = arith.constant 0 : i32
    %c0_i32_1 = arith.constant 0 : i32
    return %c0_i32, %c0_i32_0 : i32, i32
  }
  func.func @transform_9(%arg0: i32) -> (i32, i32) {
    %c0_i32 = arith.constant 0 : i32
    %c0_i32_0 = arith.constant 0 : i32
    %c0_i32_1 = arith.constant 0 : i32
    return %c0_i32, %c0_i32_0 : i32, i32
  }
  func.func @transform_10(%arg0: i32) -> (i32, i32) {
    %c0_i32 = arith.constant 0 : i32
    %c0_i32_0 = arith.constant 0 : i32
    %c0_i32_1 = arith.constant 0 : i32
    return %c0_i32, %c0_i32_0 : i32, i32
  }
  func.func @transform_11(%arg0: i32) -> (i32, i32) {
    %c0_i32 = arith.constant 0 : i32
    %c0_i32_0 = arith.constant 0 : i32
    %c0_i32_1 = arith.constant 0 : i32
    return %c0_i32, %c0_i32_0 : i32, i32
  }
  func.func @transform_12(%arg0: i32) -> (i32, i32) {
    %c0_i32 = arith.constant 0 : i32
    %c0_i32_0 = arith.constant 0 : i32
    %c0_i32_1 = arith.constant 0 : i32
    return %c0_i32, %c0_i32_0 : i32, i32
  }
  func.func @transform_13(%arg0: i32) -> (i32, i32) {
    %c0_i32 = arith.constant 0 : i32
    %c0_i32_0 = arith.constant 0 : i32
    %c0_i32_1 = arith.constant 0 : i32
    return %c0_i32, %c0_i32_0 : i32, i32
  }
  func.func @transform_14(%arg0: i32) -> (i32, i32) {
    %c0_i32 = arith.constant 0 : i32
    %c0_i32_0 = arith.constant 0 : i32
    %c0_i32_1 = arith.constant 0 : i32
    return %c0_i32, %c0_i32_0 : i32, i32
  }
  func.func @transform_15(%arg0: i32) -> (i32, i32) {
    %c0_i32 = arith.constant 0 : i32
    %c0_i32_0 = arith.constant 0 : i32
    %c0_i32_1 = arith.constant 0 : i32
    return %c0_i32, %c0_i32_0 : i32, i32
  }
  func.func @transform_16(%arg0: i32) -> (i32, i32) {
    %c0_i32 = arith.constant 0 : i32
    %c0_i32_0 = arith.constant 0 : i32
    %c0_i32_1 = arith.constant 0 : i32
    return %c0_i32, %c0_i32_0 : i32, i32
  }
  func.func @transform_17(%arg0: i32) -> (i32, i32) {
    %c0_i32 = arith.constant 0 : i32
    %c0_i32_0 = arith.constant 0 : i32
    %c0_i32_1 = arith.constant 0 : i32
    return %c0_i32, %c0_i32_0 : i32, i32
  }
  func.func @transform_18(%arg0: i32) -> (i32, i32) {
    %c0_i32 = arith.constant 0 : i32
    %c0_i32_0 = arith.constant 0 : i32
    %c0_i32_1 = arith.constant 0 : i32
    return %c0_i32, %c0_i32_0 : i32, i32
  }
  func.func @transform_19(%arg0: i32) -> (i32, i32) {
    %c0_i32 = arith.constant 0 : i32
    %c0_i32_0 = arith.constant 0 : i32
    %c0_i32_1 = arith.constant 0 : i32
    return %c0_i32, %c0_i32_0 : i32, i32
  }
  func.func @transform_20(%arg0: i32) -> (i32, i32) {
    %c0_i32 = arith.constant 0 : i32
    %c0_i32_0 = arith.constant 0 : i32
    %c0_i32_1 = arith.constant 0 : i32
    return %c0_i32, %c0_i32_0 : i32, i32
  }
  func.func @transform_21(%arg0: i32) -> (i32, i32) {
    %c0_i32 = arith.constant 0 : i32
    %c0_i32_0 = arith.constant 0 : i32
    %c0_i32_1 = arith.constant 0 : i32
    return %c0_i32, %c0_i32_0 : i32, i32
  }
  func.func @transform_22(%arg0: i32) -> (i32, i32) {
    %c0_i32 = arith.constant 0 : i32
    %c0_i32_0 = arith.constant 0 : i32
    %c0_i32_1 = arith.constant 0 : i32
    return %c0_i32, %c0_i32_0 : i32, i32
  }
  func.func @transform_23(%arg0: i32) -> (i32, i32) {
    %c0_i32 = arith.constant 0 : i32
    %c0_i32_0 = arith.constant 0 : i32
    %c0_i32_1 = arith.constant 0 : i32
    return %c0_i32, %c0_i32_0 : i32, i32
  }
  func.func @transform_24(%arg0: i32) -> (i32, i32) {
    %c0_i32 = arith.constant 0 : i32
    %c0_i32_0 = arith.constant 0 : i32
    %c0_i32_1 = arith.constant 0 : i32
    return %c0_i32, %c0_i32_0 : i32, i32
  }
  func.func @transform_25(%arg0: i32) -> (i32, i32) {
    %c0_i32 = arith.constant 0 : i32
    %c0_i32_0 = arith.constant 0 : i32
    %c0_i32_1 = arith.constant 0 : i32
    return %c0_i32, %c0_i32_0 : i32, i32
  }
  func.func @transform_26(%arg0: i32) -> (i32, i32) {
    %c0_i32 = arith.constant 0 : i32
    %c0_i32_0 = arith.constant 0 : i32
    %c0_i32_1 = arith.constant 0 : i32
    return %c0_i32, %c0_i32_0 : i32, i32
  }
  func.func @transform_27(%arg0: i32) -> (i32, i32) {
    %c0_i32 = arith.constant 0 : i32
    %c0_i32_0 = arith.constant 0 : i32
    %c0_i32_1 = arith.constant 0 : i32
    return %c0_i32, %c0_i32_0 : i32, i32
  }
  func.func @transform_28(%arg0: i32) -> (i32, i32) {
    %c0_i32 = arith.constant 0 : i32
    %c0_i32_0 = arith.constant 0 : i32
    %c0_i32_1 = arith.constant 0 : i32
    return %c0_i32, %c0_i32_0 : i32, i32
  }
  func.func @transform_29(%arg0: i32) -> (i32, i32) {
    %c0_i32 = arith.constant 0 : i32
    %c0_i32_0 = arith.constant 0 : i32
    %c0_i32_1 = arith.constant 0 : i32
    return %c0_i32, %c0_i32_0 : i32, i32
  }
  func.func @transform_30(%arg0: i32) -> (i32, i32, i32) {
    %c0_i32 = arith.constant 0 : i32
    %c0_i32_0 = arith.constant 0 : i32
    %c0_i32_1 = arith.constant 0 : i32
    return %arg0, %c0_i32, %c0_i32_0 : i32, i32, i32
  }
  func.func @transform_31(%arg0: i32) -> (i32, i32, i32) {
    %c0_i32 = arith.constant 0 : i32
    %c0_i32_0 = arith.constant 0 : i32
    %c0_i32_1 = arith.constant 0 : i32
    return %arg0, %c0_i32, %c0_i32_0 : i32, i32, i32
  }
}

</mosaic_0001>

<bundles_post_ra>
// kernel: score_network_forward.4
= control target key start
LH: loop header
LB: loop body
LE: loop exit
PB: predicated region body
PF: predicated region fallthrough
CT: control target
= control target key end

     0   :  { %s1486_s21 = smov 0   ;;  %s1488_s22 = smov 0   ;;  %s1690_s0 = inlined_call_operand.vmem [shape: f32[2,1,32], index: 0, kind: input, shape index: {}]   ;;  %s1691_s1 = inlined_call_operand.vmem [shape: f32[32,32], index: 1, kind: input, shape index: {}]   ;;  %s1692_s2 = inlined_call_operand.vmem [shape: f32[1,32], index: 2, kind: input, shape index: {}]   ;;  %s1693_s3 = inlined_call_operand.vmem [shape: f32[32,32], index: 3, kind: input, shape index: {}]   ;;  %s1694_s4 = inlined_call_operand.vmem [shape: f32[1,32], index: 4, kind: input, shape index: {}]   ;;  %s1695_s5 = inlined_call_operand.vmem [shape: f32[2,2,16,4], index: 5, kind: input, shape index: {}]   ;;  %s1696_s6 = inlined_call_operand.vmem [shape: f32[2,4,32], index: 6, kind: input, shape index: {}]   ;;  %s1697_s7 = inlined_call_operand.vmem [shape: f32[2,1,32], index: 7, kind: input, shape index: {}]   ;;  %s1698_s8 = inlined_call_operand.vmem [shape: f32[2,32,96], index: 8, kind: input, shape index: {}]   ;;  %s1699_s9 = inlined_call_operand.vmem [shape: f32[2,1,96], index: 9, kind: input, shape index: {}]   ;;  %s1700_s10 = inlined_call_operand.vmem [shape: f32[2,32,32], index: 10, kind: input, shape index: {}]   ;;  %s1701_s11 = inlined_call_operand.vmem [shape: f32[2,1,32], index: 11, kind: input, shape index: {}]   ;;  %s1702_s12 = inlined_call_operand.vmem [shape: f32[2,2,16,32], index: 12, kind: output, shape index: {}]  }
   0x1   :  { %1703 = sst [smem:[#allocation2_spill]] %s1690_s0  ;;  %s1490_s23 = smov 0  }
   0x2   :  { %s1492_s24 = smov 0   ;;  %s1494_s25 = smov 0  }
   0x3 LB: > { %s31_s26 = sadd.s32 1, %s1400_s23  ;;  %s34_s27 = sadd.s32 1, %s1404_s24  ;;  %s1408_s25 = sphi %s1494_s25, %s22_s25   ;;  %s1404_s24 = sphi %s1492_s24, %s1708_s24   ;;  %s1400_s23 = sphi %s1490_s23, %s1707_s23   ;;  %s1396_s22 = sphi %s1488_s22, %s1706_s22   ;;  %s1392_s21 = sphi %s1486_s21, %s1705_s21  }
   0x4   : > { %p32_p0 = scmp.ge.s32.totalorder %s31_s26, 2  ;;  %p1244_p1 = scmp.ge.s32.totalorder %s1408_s25, 1 }
   0x5   : > { %p443_p2 = scmp.lt.s32.totalorder %s1408_s25, 5 }
   0x6   : > { %s1710_s26 = smov (%p32_p0, %s31_s26), 0  ;;  %s1712_s27 = smov (!%p32_p0, %s34_s27), %s1404_s24 }
   0x7   : > { %p444_p3 = pnand %p1244_p1, %p443_p2  ;;  %p36_p4 = scmp.ge.s32.totalorder %s1712_s27, 2 }
   0x8   : > { %p519_p5 = scmp.lt.s32.totalorder (!%p444_p3), %s1392_s21, 1  ;;  %s1704_s0 = sld [smem:[#allocation2_spill]] (!%p444_p3) }
   0x9   : > { %s1714_s27 = smov (%p36_p4, %s1712_s27), 0  ;;  %447 = sbr.rel (%p444_p3) target bundleno = 1845 (0x735), region = 68 }
   0xa   : > { %p522_p6 = scmp.lt.s32.totalorder (!%p444_p3), %s1396_s22, 1  ;;  %s1411_s30 = smov (!%p444_p3), 88  }
   0xb   : > { %s1413_s14 = smov (!%p444_p3), 112   ;;  %s1417_s17 = smov (!%p444_p3), 72  }
   0xe   : > { %v567_v0 = vld [vmem:[%s1691_s1 + $0x10] sm:$0xff]  ;;  %v568_v1 = vld [vmem:[%s1691_s1 + $0x18] sm:$0xff]  ;;  %v565_v2 = vld [vmem:[%s1691_s1] sm:$0xff]  ;;  %s1716_s21 = smov (!%p519_p5, %s1392_s21), 1  ;;  %vm573_vm0 = vcmask 261120   ;;  %s1718_s22 = smov (!%p522_p6, %s1396_s22), 1 }
   0xf   : > { %v571_v3 = vpack.c.bf16 %v568_v1, %v567_v0  ;;  %v566_v4 = vld [vmem:[%s1691_s1 + $0x8] sm:$0xff]  ;;  %s521_s20 = scalar_lea.vmem %s1704_s0, %s1716_s21  ;;  %s1245_s28 = sshll.u32 %s1716_s21, 1  ;;  %v598_v8 = vld [vmem:[%s1693_s3 + $0x10] sm:$0xff]  ;;  %v599_v9 = vld [vmem:[%s1693_s3 + $0x18] sm:$0xff]  ;;  %vm639_vm1 = vcmask 1041408   ;;  %vm635_vm2 = vcmask 31744  }
  0x10   : > { %v570_v5 = vpack.c.bf16 %v566_v4, %v565_v2  ;;  %v564_v6 = vld [vmem:[%s521_s20] sm:$0x1]  ;;  %s1246_s29 = sshll.u32 %s1718_s22, 2  ;;  %v602_v10 = vpack.c.bf16 %v599_v9, %v598_v8  ;;  %v597_v12 = vld [vmem:[%s1693_s3 + $0x8] sm:$0xff]  ;;  %s545_s13 = scalar_lea.vmem %s1699_s9, %s1718_s22  ;;  %vm697_vm3 = vcmask 64512   ;;  %vm720_vm4 = vcmask 130048  }
  0x11   : > { %583 = vmatpush.bf16.msra.mxu0 %v571_v3  ;;  %v569_v7 = vpack.c.bf16 %v564_v6, %v564_v6  ;;  %s1545_s16 = sadd.s32 %s1246_s29, %s1245_s28  ;;  %s534_s19 = scalar_lea.vmem %s1696_s6, %s1246_s29  ;;  %v596_v11 = vld [vmem:[%s1693_s3] sm:$0xff]  ;;  %vm840_vm5 = vcmask 1043456  }
  0x12   : > { %613 = vmatpush.bf16.msra.mxu1 %v602_v10  ;;  %s1247_s21 = sshll.u32 %s1545_s16, 3  ;;  %v601_v13 = vpack.c.bf16 %v597_v12, %v596_v11  ;;  %v628_v14 = vld [vmem:[%s534_s19] sm:$0xf]  ;;  %s537_s19 = scalar_lea.vmem %s1697_s7, %s1718_s22 }
  0x13   : > { %s530_s15 = scalar_lea.vmem %s1695_s5, %s1247_s21  ;;  %v630_v15 = vpack.c.bf16 %v628_v14, %v628_v14  ;;  %v572_v20 = vld [vmem:[%s1692_s2] sm:$0x1]  ;;  %s1274_s28 = sshll.u32 %s1718_s22, 5 }
  0x14   : > { %v626_v17 = vld [vmem:[%s530_s15] sm:$0xff]  ;;  %v627_v18 = vld [vmem:[%s530_s15 + $0x8] sm:$0xff]  ;;  %s542_s0 = scalar_lea.vmem %s1698_s8, %s1274_s28  ;;  %s1414_s15 = smov 120  }
  0x15   : > { %584 = vmatpush.bf16.msra.mxu0 %v570_v5  ;;  %v641_v16 = vsel %vm639_vm1, %v630_v15, 0  ;;  %v629_v19 = vpack.c.bf16 %v627_v18, %v626_v17  ;;  %v662_v31 = vld [vmem:[%s542_s0 + $0x10] sm:$0xff]  ;;  %v663_v32 = vld [vmem:[%s542_s0 + $0x18] sm:$0xff]  ;;  %v660_v34 = vld [vmem:[%s542_s0] sm:$0xff]  ;;  %s1416_s29 = smov 80   ;;  %s562_s18 = scalar_lea.vmem %s1702_s12, %s1247_s21 }
  0x16   : > { %614 = vmatpush.bf16.msra.mxu1 %v601_v13  ;;  %650 = vmatpush.bf16.msra.mxu2 %v641_v16  ;;  %v672_v33 = vpack.c.bf16 %v663_v32, %v662_v31  ;;  %v661_v35 = vld [vmem:[%s542_s0 + $0x8] sm:$0xff]  ;;  %v603_v37 = vld [vmem:[%s1694_s4] sm:$0x1]  ;;  %s1415_s0 = smov 104  }
  0x17   : > { %v671_v36 = vpack.c.bf16 %v661_v35, %v660_v34  ;;  %v1327_v46 = vld [vmem:[%s537_s19] ss:$0 sm:$0xff]  ;;  %s1410_s19 = smov 96  }
  0x18   : > { %1256 = vmatmul.msk.bf16.vlgmr.msra.gmra.mxu0 %vm573_vm0, %v569_v7  ;;  %685 = vmatpush.bf16.msra.mxu3 %v672_v33  ;;  %v1328_v57 = vld [vmem:[%s545_s13] ss:$0 sm:$0xff]  ;;  %s1412_s13 = smov 64  }
  0x19   : > { %1258 = vmatmul.msk.bf16.vlgmr.msra.gmra.mxu2 %vm635_vm2, %v629_v19 }
  0x1c   : > { %686 = vmatpush.bf16.msra.mxu3 %v671_v36 }
  0x95   : > { %v586_v21 = vpop.f32.mrf.mxu0 }
  0x96   : > { %v587_v22 = vadd.f32 %v586_v21, %v572_v20 }
  0x98   : > { %v590_v23 = vsub.f32 0.0, %v587_v22 }
  0x9a   : > { %v591_v24 = vmul.f32 1.442695, %v590_v23 }
  0x9c   : > { %1330 = vpow2.f32 %v591_v24  ;;  %v652_v43 = vpop.f32.mrf.mxu2 }
  0x9d   : > { %v588_v25 = vpop.f32.mrf.mxu0  ;;  %v653_v51 = vadd.f32 %v1327_v46, %v652_v43 }
  0xa2   : > { %v1331_v26 = vpop.eup %1330 }
  0xa3   : > { %v593_v27 = vadd.f32 1.0, %v1331_v26 }
  0xa4   : > { %v654_v48 = vpop.f32.mrf.mxu2 }
  0xa5   : > { %1332 = vrcp.f32 %v593_v27  ;;  %v655_v52 = vadd.f32 %v1327_v46, %v654_v48 }
  0xab   : > { %v1333_v28 = vpop.eup %1332 }
  0xac   : > { %v595_v29 = vmul.f32 %v1333_v28, %v587_v22 }
  0xae   : > { %v600_v30 = vpack.c.bf16 %v595_v29, %v595_v29 }
  0xb0   : > { %1257 = vmatmul.msk.bf16.vlgmr.msra.gmra.mxu1 %vm573_vm0, %v600_v30 }
 0x12d   : > { %v616_v38 = vpop.f32.mrf.mxu1 }
 0x12e   : > { %v617_v39 = vadd.f32 %v616_v38, %v603_v37 }
 0x130   : > { %v620_v40 = vsub.f32 0.0, %v617_v39 }
 0x132   : > { %v621_v41 = vmul.f32 1.442695, %v620_v40 }
 0x134   : > { %1334 = vpow2.f32 %v621_v41 }
 0x135   : > { %v618_v42 = vpop.f32.mrf.mxu1 }
 0x13a   : > { %v1335_v44 = vpop.eup %1334 }
 0x13b   : > { %v623_v45 = vadd.f32 1.0, %v1335_v44 }
 0x13d   : > { %1336 = vrcp.f32 %v623_v45 }
 0x143   : > { %v1337_v47 = vpop.eup %1336 }
 0x144   : > { %v625_v49 = vmul.f32 %v1337_v47, %v617_v39 }
 0x146   : > { %v657_v50 = vperm.slane %v625_v49, 0 }
 0x148   : > { %v1583_v53 = vadd.f32 %v657_v50, %v653_v51  ;;  %v1585_v54 = vadd.f32 %v657_v50, %v655_v52 }
 0x14a   : > { %v670_v55 = vpack.c.bf16 %v1585_v54, %v1583_v53 }
 0x14c   : > { %1259 = vmatmul.msk.bf16.vlgmr.msra.gmra.mxu3 %vm573_vm0, %v670_v55 }
 0x1cf   : > { %v688_v56 = vpop.f32.mrf.mxu3 }
 0x1d0   : > { %v689_v59 = vadd.f32 %v1328_v57, %v688_v56 }
 0x1d7   : > { %v690_v58 = vpop.f32.mrf.mxu3 }
 0x1d8   : > { %v691_v60 = vadd.f32 %v1328_v57, %v690_v58 }
 0x1da   : > { %v1595_v61 = vpack.c.bf16 %v691_v60, %v689_v59 }
 0x1dc   : > { %695 = vrot.lane.b32.xlu0 %v1595_v61, %s1410_s19  ;;  %s1617_s19 = scalar_lea.vmem %s1700_s10, %s1274_s28  ;;  %s1418_s28 = smov 56  }
 0x1dd   : > { %v665_v18 = vld [vmem:[%s1617_s19] sm:$0xff] }
 0x1de   : > { %v765_v19 = vpack.c.bf16 %v665_v18, %v665_v18 }
 0x1e0   : > { %v862_v22 = vsel %vm840_vm5, %v765_v19, 0 }
 0x24e   : > { %v696_v62 = vpop.permute.xlu0 %695 }
 0x24f   : > { %v702_v63 = vsel %vm697_vm3, %v696_v62, 0 }
 0x250   : > { %711 = vmatpush.bf16.xpose.msrb.mxu2 %v702_v63 }
 0x257   : > { %1260 = vmatmul.msk.bf16.vlgmr.msrb.gmra.mxu2 %vm697_vm3, %v1595_v61 }
 0x2da   : > { %v713_v0 = vpop.f32.mrf.mxu2 }
 0x2db   : > { %v718_v1 = vmul.f32 0.35355338, %v713_v0 }
 0x2dd   : > { %v721_v2 = vsel %vm720_vm4, %v718_v1, -inf }
 0x2de   : > { %722 = vmax.xlane.f32.xlu0 %v721_v2 }
 0x2e2   : > { %v715_v3 = vpop.f32.mrf.mxu2 }
 0x2e3   : > { %v719_v4 = vmul.f32 0.35355338, %v715_v3 }
 0x2e5   : > { %v724_v5 = vsel %vm720_vm4, %v719_v4, -inf }
 0x2e6   : > { %725 = vmax.xlane.f32.xlu1 %v724_v5 }
 0x351   : > { %v723_v6 = vpop.xlane.xlu0 %722 }
 0x352   : > { %v727_v7 = vsub.f32 %v718_v1, %v723_v6 }
 0x354   : > { %v729_v8 = vmul.f32 1.442695, %v727_v7 }
 0x356   : > { %1338 = vpow2.f32 %v729_v8 }
 0x359   : > { %v726_v9 = vpop.xlane.xlu1 %725 }
 0x35a   : > { %v728_v10 = vsub.f32 %v719_v4, %v726_v9 }
 0x35c   : > { %v1339_v11 = vpop.eup %1338  ;;  %v731_v12 = vmul.f32 1.442695, %v728_v10 }
 0x35d   : > { %v733_v13 = vsel %vm720_vm4, %v1339_v11, 0.0 }
 0x35e   : > { %1340 = vpow2.f32 %v731_v12  ;;  %734 = vadd.xlane.f32.xlu1 %v733_v13 }
 0x364   : > { %v1341_v14 = vpop.eup %1340 }
 0x365   : > { %v736_v15 = vsel %vm720_vm4, %v1341_v14, 0.0 }
 0x366   : > { %737 = vadd.xlane.f32.xlu2 %v736_v15 }
 0x377   : > { %768 = vrot.lane.b32.xlu1 %v1595_v61, %s1411_s30  ;;  %s1419_s30 = smov 48  }
 0x37e   : > { %744 = vrot.lane.b32.xlu2 %v1595_v61, %s1412_s13  ;;  %s1420_s13 = smov 40  }
 0x37f   : > { %878 = vrot.lane.b32.xlu1 %v1595_v61, %s1413_s14 }
 0x386   : > { %766 = vrot.lane.b32.xlu2 %v1595_v61, %s1414_s15 }
 0x387   : > { %971 = vrot.lane.b32.xlu1 %v1595_v61, %s1415_s0  ;;  %s553_s0 = scalar_lea.vmem %s1701_s11, %s1718_s22 }
 0x38e   : > { %880 = vrot.lane.b32.xlu2 %v1595_v61, %s1416_s29 }
 0x396   : > { %973 = vrot.lane.b32.xlu2 %v1595_v61, %s1417_s17 }
 0x3d1   : > { %v735_v16 = vpop.xlane.xlu1 %734 }
 0x3d2   : > { %1342 = vrcp.f32 %v735_v16 }
 0x3d8   : > { %v1343_v20 = vpop.eup %1342 }
 0x3d9   : > { %v738_v17 = vpop.xlane.xlu2 %737  ;;  %v741_v23 = vmul.f32 %v1343_v20, %v1339_v11 }
 0x3da   : > { %1344 = vrcp.f32 %v738_v17 }
 0x3e0   : > { %v1345_v21 = vpop.eup %1344 }
 0x3e1   : > { %v742_v24 = vmul.f32 %v1345_v21, %v1341_v14  ;;  %v745_v25 = vpop.permute.xlu2 %744 }
 0x3e2   : > { %757 = vmatpush.bf16.msrb.mxu0 %v745_v25 }
 0x3e3   : > { %v743_v26 = vpack.c.bf16 %v742_v24, %v741_v23 }
 0x3e5   : > { %1261 = vmatmul.msk.bf16.vlgmr.msrb.gmra.mxu0 %vm720_vm4, %v743_v26 }
 0x3e6   : > { %871 = vmatpush.bf16.msra.mxu0 %v862_v22 }
 0x3e9   : > { %v767_v27 = vpop.permute.xlu2 %766  ;;  %v769_v28 = vpop.permute.xlu1 %768 }
 0x3ea   : > { %v774_v29 = vsel %vm697_vm3, %v769_v28, 0 }
 0x3eb   : > { %783 = vmatpush.bf16.xpose.msrb.mxu1 %v774_v29 }
 0x3f1   : > { %v881_v30 = vpop.permute.xlu2 %880  ;;  %v879_v34 = vpop.permute.xlu1 %878 }
 0x3f2   : > { %v886_v31 = vsel %vm697_vm3, %v881_v30, 0  ;;  %1262 = vmatmul.msk.bf16.vlgmr.msrb.gmra.mxu1 %vm697_vm3, %v767_v27 }
 0x3f3   : > { %895 = vmatpush.bf16.xpose.msra.mxu1 %v886_v31 }
 0x3f9   : > { %v974_v32 = vpop.permute.xlu2 %973  ;;  %v972_v44 = vpop.permute.xlu1 %971 }
 0x3fa   : > { %v979_v33 = vsel %vm697_vm3, %v974_v32, 0 }
 0x3fb   : > { %988 = vmatpush.bf16.xpose.msrb.mxu0 %v979_v33 }
 0x402   : > { %1266 = vmatmul.msk.bf16.vlgmr.msra.gmra.mxu1 %vm697_vm3, %v879_v34 }
 0x462   : > { %v759_v35 = vpop.f32.mrf.mxu0 }
 0x46a   : > { %v761_v36 = vpop.f32.mrf.mxu0 }
 0x46b   : > { %v764_v37 = vpack.c.bf16 %v761_v36, %v759_v35  ;;  %v666_v36 = vld [vmem:[%s1617_s19 + $0x8] sm:$0xff] }
 0x46d   : > { %1265 = vmatmul.msk.bf16.vlgmr.msra.gmra.mxu0 %vm697_vm3, %v764_v37  ;;  %v836_v37 = vpack.c.bf16 %v666_v36, %v666_v36 }
 0x46f   : > { %v785_v38 = vpop.f32.mrf.mxu1 }
 0x470   : > { %v790_v39 = vmul.f32 0.35355338, %v785_v38  ;;  %v842_v38 = vsel %vm840_vm5, %v836_v37, 0 }
 0x471   : > { %851 = vmatpush.bf16.msra.mxu2 %v842_v38 }
 0x472   : > { %v792_v40 = vsel %vm720_vm4, %v790_v39, -inf }
 0x473   : > { %793 = vmax.xlane.f32.xlu0 %v792_v40 }
 0x477   : > { %v787_v41 = vpop.f32.mrf.mxu1 }
 0x478   : > { %v791_v42 = vmul.f32 0.35355338, %v787_v41 }
 0x47a   : > { %v795_v43 = vsel %vm720_vm4, %v791_v42, -inf }
 0x47b   : > { %796 = vmax.xlane.f32.xlu2 %v795_v43 }
 0x47d   : > { %1269 = vmatmul.msk.bf16.vlgmr.msrb.gmra.mxu0 %vm697_vm3, %v972_v44 }
 0x47f   : > { %v897_v45 = vpop.f32.mrf.mxu1 }
 0x480   : > { %v902_v46 = vmul.f32 0.35355338, %v897_v45 }
 0x482   : > { %v904_v47 = vsel %vm720_vm4, %v902_v46, -inf }
 0x483   : > { %905 = vmax.xlane.f32.xlu1 %v904_v47 }
 0x487   : > { %v899_v48 = vpop.f32.mrf.mxu1 }
 0x488   : > { %v903_v49 = vmul.f32 0.35355338, %v899_v48 }
 0x48a   : > { %v907_v50 = vsel %vm720_vm4, %v903_v49, -inf }
 0x48b   : > { %908 = vmax.xlane.f32.xlu0 %v907_v50 }
 0x493   : > { %815 = vrot.lane.b32.xlu2 %v1595_v61, %s1418_s28 }
 0x4e6   : > { %v794_v51 = vpop.xlane.xlu0 %793 }
 0x4e7   : > { %v798_v52 = vsub.f32 %v790_v39, %v794_v51 }
 0x4e9   : > { %v800_v55 = vmul.f32 1.442695, %v798_v52 }
 0x4ea   : > { %v1634_v56 = vpop.f32.mrf.mxu0 }
 0x4eb   : > { %1346 = vpow2.f32 %v800_v55 }
 0x4ee   : > { %v797_v57 = vpop.xlane.xlu2 %796 }
 0x4ef   : > { %v799_v58 = vsub.f32 %v791_v42, %v797_v57 }
 0x4f1   : > { %v1347_v59 = vpop.eup %1346  ;;  %v802_v60 = vmul.f32 1.442695, %v799_v58 }
 0x4f2   : > { %v1636_v62 = vpop.f32.mrf.mxu0  ;;  %v804_v63 = vsel %vm720_vm4, %v1347_v59, 0.0 }
 0x4f3   : > { %1348 = vpow2.f32 %v802_v60  ;;  %805 = vadd.xlane.f32.xlu0 %v804_v63  ;;  %v667_v60 = vld [vmem:[%s1617_s19 + $0x10] sm:$0xff] }
 0x4f4   : > { %v948_v63 = vpack.c.bf16 %v667_v60, %v667_v60 }
 0x4f6   : > { %v816_v0 = vpop.permute.xlu2 %815  ;;  %v906_v4 = vpop.xlane.xlu1 %905 }
 0x4f7   : > { %828 = vmatpush.bf16.msrb.mxu3 %v816_v0  ;;  %v910_v8 = vsub.f32 %v902_v46, %v906_v4  ;;  %v953_v0 = vsel %vm840_vm5, %v948_v63, 0 }
 0x4f8   : > { %962 = vmatpush.bf16.msrb.mxu2 %v953_v0 }
 0x4f9   : > { %v1349_v1 = vpop.eup %1348  ;;  %v912_v12 = vmul.f32 1.442695, %v910_v8 }
 0x4fa   : > { %v990_v2 = vpop.f32.mrf.mxu0  ;;  %v807_v3 = vsel %vm720_vm4, %v1349_v1, 0.0 }
 0x4fb   : > { %808 = vadd.xlane.f32.xlu0 %v807_v3  ;;  %v995_v5 = vmul.f32 0.35355338, %v990_v2 }
 0x4fd   : > { %v997_v10 = vsel %vm720_vm4, %v995_v5, -inf }
 0x4fe   : > { %v909_v6 = vpop.xlane.xlu0 %908 }
 0x4ff   : > { %v911_v7 = vsub.f32 %v903_v49, %v909_v6 }
 0x501   : > { %v914_v9 = vmul.f32 1.442695, %v911_v7 }
 0x502   : > { %v992_v11 = vpop.f32.mrf.mxu0 }
 0x503   : > { %1350 = vpow2.f32 %v914_v9  ;;  %998 = vmax.xlane.f32.xlu0 %v997_v10  ;;  %v996_v13 = vmul.f32 0.35355338, %v992_v11 }
 0x504   : > { %1352 = vpow2.f32 %v912_v12 }
 0x505   : > { %v1000_v16 = vsel %vm720_vm4, %v996_v13, -inf }
 0x509   : > { %v1351_v14 = vpop.eup %1350 }
 0x50a   : > { %v919_v15 = vsel %vm720_vm4, %v1351_v14, 0.0  ;;  %v1353_v17 = vpop.eup %1352 }
 0x50b   : > { %920 = vadd.xlane.f32.xlu1 %v919_v15  ;;  %1001 = vmax.xlane.f32.xlu0 %v1000_v16  ;;  %v916_v18 = vsel %vm720_vm4, %v1353_v17, 0.0  ;;  %v1329_v15 = vld [vmem:[%s553_s0] ss:$0 sm:$0xff] }
 0x513   : > { %917 = vadd.xlane.f32.xlu0 %v916_v18 }
 0x566   : > { %v806_v19 = vpop.xlane.xlu0 %805 }
 0x567   : > { %1354 = vrcp.f32 %v806_v19 }
 0x56d   : > { %v1355_v21 = vpop.eup %1354 }
 0x56e   : > { %v809_v20 = vpop.xlane.xlu0 %808  ;;  %v812_v23 = vmul.f32 %v1355_v21, %v1347_v59 }
 0x56f   : > { %1356 = vrcp.f32 %v809_v20 }
 0x575   : > { %v1357_v22 = vpop.eup %1356 }
 0x576   : > { %v813_v24 = vmul.f32 %v1357_v22, %v1349_v1  ;;  %v999_v25 = vpop.xlane.xlu0 %998  ;;  %v668_v1 = vld [vmem:[%s1617_s19 + $0x18] sm:$0xff] }
 0x577   : > { %v1003_v26 = vsub.f32 %v995_v5, %v999_v25  ;;  %v1041_v2 = vpack.c.bf16 %v668_v1, %v668_v1 }
 0x578   : > { %v814_v27 = vpack.c.bf16 %v813_v24, %v812_v23 }
 0x579   : > { %v1005_v28 = vmul.f32 1.442695, %v1003_v26  ;;  %v1046_v3 = vsel %vm840_vm5, %v1041_v2, 0 }
 0x57a   : > { %1263 = vmatmul.msk.bf16.vlgmr.msrb.gmra.mxu3 %vm720_vm4, %v814_v27 }
 0x57b   : > { %1358 = vpow2.f32 %v1005_v28 }
 0x57e   : > { %v1002_v29 = vpop.xlane.xlu0 %1001  ;;  %v921_v40 = vpop.xlane.xlu1 %920 }
 0x57f   : > { %v1004_v30 = vsub.f32 %v996_v13, %v1002_v29 }
 0x581   : > { %v1359_v31 = vpop.eup %1358  ;;  %v1007_v32 = vmul.f32 1.442695, %v1004_v30 }
 0x582   : > { %v1009_v33 = vsel %vm720_vm4, %v1359_v31, 0.0 }
 0x583   : > { %1360 = vpow2.f32 %v1007_v32  ;;  %1010 = vadd.xlane.f32.xlu0 %v1009_v33 }
 0x586   : > { %v918_v39 = vpop.xlane.xlu0 %917 }
 0x587   : > { %1362 = vrcp.f32 %v918_v39 }
 0x588   : > { %1364 = vrcp.f32 %v921_v40 }
 0x589   : > { %v1361_v34 = vpop.eup %1360 }
 0x58a   : > { %v1012_v35 = vsel %vm720_vm4, %v1361_v34, 0.0 }
 0x58b   : > { %1013 = vadd.xlane.f32.xlu1 %v1012_v35 }
 0x58d   : > { %v1363_v43 = vpop.eup %1362 }
 0x58e   : > { %v1365_v45 = vpop.eup %1364  ;;  %v924_v47 = vmul.f32 %v1363_v43, %v1353_v17 }
 0x597   : > { %927 = vrot.lane.b32.xlu0 %v1595_v61, %s1419_s30 }
 0x5a4   : > { %1020 = vrot.lane.b32.xlu1 %v1595_v61, %s1420_s13  ;;  %v925_v61 = vmul.f32 %v1365_v45, %v1351_v14 }
 0x5a6   : > { %v926_v50 = vpack.c.bf16 %v925_v61, %v924_v47 }
 0x5f6   : > { %v1011_v42 = vpop.xlane.xlu0 %1010 }
 0x5fd   : > { %v830_v41 = vpop.f32.mrf.mxu3 }
 0x5fe   : > { %v1014_v48 = vpop.xlane.xlu1 %1013 }
 0x5ff   : > { %1366 = vrcp.f32 %v1014_v48 }
 0x600   : > { %1368 = vrcp.f32 %v1011_v42 }
 0x605   : > { %v832_v44 = vpop.f32.mrf.mxu3  ;;  %v1367_v51 = vpop.eup %1366 }
 0x606   : > { %v835_v46 = vpack.c.bf16 %v832_v44, %v830_v41  ;;  %v1369_v52 = vpop.eup %1368  ;;  %v1018_v55 = vmul.f32 %v1367_v51, %v1361_v34 }
 0x607   : > { %v1017_v57 = vmul.f32 %v1369_v52, %v1359_v31 }
 0x608   : > { %1264 = vmatmul.msk.bf16.vlgmr.msra.gmra.mxu2 %vm697_vm3, %v835_v46 }
 0x609   : > { %v928_v49 = vpop.permute.xlu0 %927  ;;  %v1019_v59 = vpack.c.bf16 %v1018_v55, %v1017_v57 }
 0x60a   : > { %940 = vmatpush.bf16.msra.mxu3 %v928_v49 }
 0x60d   : > { %1267 = vmatmul.msk.bf16.vlgmr.msra.gmra.mxu3 %vm720_vm4, %v926_v50 }
 0x60e   : > { %1055 = vmatpush.bf16.msrb.mxu3 %v1046_v3 }
 0x616   : > { %v1021_v58 = vpop.permute.xlu1 %1020 }
 0x617   : > { %1033 = vmatpush.bf16.msrb.mxu1 %v1021_v58 }
 0x61a   : > { %1270 = vmatmul.msk.bf16.vlgmr.msrb.gmra.mxu1 %vm720_vm4, %v1019_v59 }
 0x68b   : > { %v853_v10 = vpop.f32.mrf.mxu2 }
 0x68c   : > { %v874_v13 = vadd.f32 %v1634_v56, %v853_v10 }
 0x690   : > { %v942_v4 = vpop.f32.mrf.mxu3 }
 0x693   : > { %v855_v11 = vpop.f32.mrf.mxu2 }
 0x694   : > { %v876_v20 = vadd.f32 %v1636_v62, %v855_v11 }
 0x697   : > { %v1035_v5 = vpop.f32.mrf.mxu1 }
 0x698   : > { %v944_v6 = vpop.f32.mrf.mxu3 }
 0x699   : > { %v947_v7 = vpack.c.bf16 %v944_v6, %v942_v4 }
 0x69b   : > { %1268 = vmatmul.msk.bf16.vlgmr.msrb.gmra.mxu2 %vm697_vm3, %v947_v7 }
 0x69f   : > { %v1037_v8 = vpop.f32.mrf.mxu1 }
 0x6a0   : > { %v1040_v9 = vpack.c.bf16 %v1037_v8, %v1035_v5 }
 0x6a2   : > { %1271 = vmatmul.msk.bf16.vlgmr.msrb.gmra.mxu3 %vm697_vm3, %v1040_v9 }
 0x71e   : > { %v964_v12 = vpop.f32.mrf.mxu2 }
 0x71f   : > { %v969_v14 = vadd.f32 %v964_v12, %v874_v13 }
 0x725   : > { %v1057_v16 = vpop.f32.mrf.mxu3 }
 0x726   : > { %v1062_v17 = vadd.f32 %v1057_v16, %v969_v14  ;;  %v966_v19 = vpop.f32.mrf.mxu2 }
 0x727   : > { %v970_v22 = vadd.f32 %v966_v19, %v876_v20 }
 0x728   : > { %v1067_v18 = vadd.f32 %v1329_v15, %v1062_v17 }
 0x72a   : > { %v1069_v21 = vadd.f32 %v1067_v18, %v1583_v53 }
 0x72c   : > { %1071 = vst.msk [vmem:[%s562_s18] sm:$0xff] %vm573_vm0, %v1069_v21 }
 0x72d   : > { %v1059_v23 = vpop.f32.mrf.mxu3 }
 0x72e   : > { %v1063_v56 = vadd.f32 %v1059_v23, %v970_v22 }
 0x730   : > { %v1068_v24 = vadd.f32 %v1329_v15, %v1063_v56 }
 0x732   : > { %v1070_v25 = vadd.f32 %v1068_v24, %v1585_v54 }
 0x734   : > { %1072 = vst.msk [vmem:[%s562_s18 + $0x8] sm:$0xff] %vm573_vm0, %v1070_v25 }
 0x735 PF: > { %s22_s25 = sadd.s32 1, %s1408_s25   ;;  %s1705_s21 = smov %s1400_s23 }
 0x736   : > { %p19_p7 = scmp.ge.s32.totalorder %s22_s25, 6   ;;  %s1706_s22 = smov %s1404_s24 }
 0x737   : > { %s1707_s23 = smov %s1710_s26  ;;  %s1708_s24 = smov %s1714_s27 }
 0x738   :  { %21 = sbr.rel (!%p19_p7) target bundleno = 3 (0x3), region = 119 }

// kernel: score_network_forward.6
= control target key start
LH: loop header
LB: loop body
LE: loop exit
PB: predicated region body
PF: predicated region fallthrough
CT: control target
= control target key end

     0   :  { %s1152_s13 = smov 0   ;;  %s1372_s0 = inlined_call_operand.vmem [shape: f32[2,16,32], index: 0, kind: input, shape index: {}]   ;;  %s1373_s1 = inlined_call_operand.vmem [shape: f32[16,16], index: 1, kind: input, shape index: {}]   ;;  %s1374_s2 = inlined_call_operand.vmem [shape: f32[1,32,96], index: 2, kind: input, shape index: {}]   ;;  %s1375_s3 = inlined_call_operand.vmem [shape: f32[1,1,96], index: 3, kind: input, shape index: {}]   ;;  %s1376_s4 = inlined_call_operand.vmem [shape: f32[1,32,32], index: 4, kind: input, shape index: {}]   ;;  %s1377_s5 = inlined_call_operand.vmem [shape: f32[1,1,32], index: 5, kind: input, shape index: {}]   ;;  %s1378_s6 = inlined_call_operand.vmem [shape: f32[32,128], index: 6, kind: input, shape index: {}]   ;;  %s1379_s7 = inlined_call_operand.vmem [shape: f32[1,128], index: 7, kind: input, shape index: {}]   ;;  %s1380_s8 = inlined_call_operand.vmem [shape: f32[128,32], index: 8, kind: input, shape index: {}]   ;;  %s1381_s9 = inlined_call_operand.vmem [shape: f32[1,32], index: 9, kind: input, shape index: {}]   ;;  %s1382_s10 = inlined_call_operand.vmem [shape: f32[2,16,32], index: 10, kind: output, shape index: {}]  }
   0x1 LB: > { %s984_s14 = sadd.s32 4294967295, %s1083_s13   ;;  %p988_p0 = scmp.ge.s32.totalorder %s1083_s13, 1  ;;  %s1083_s13 = sphi %s1152_s13, %s20_s13  }
   0x2   : > { %p312_p1 = scmp.lt.s32.totalorder %s1083_s13, 3 }
   0x4   : > { %p313_p2 = pnand %p988_p0, %p312_p1 }
   0x5   : > { %p350_p3 = scmp.lt.s32.totalorder (!%p313_p2), %s984_s14, 1  ;;  %s1085_s29 = smov (!%p313_p2), 96  }
   0x6   : > { %316 = sbr.rel (%p313_p2) target bundleno = 2098 (0x832), region = 60  ;;  %s1086_s16 = smov (!%p313_p2), 88  }
   0x7   : > { %s1087_s17 = smov (!%p313_p2), 64   ;;  %s1088_s18 = smov (!%p313_p2), 72  }
   0x8   : > { %s1089_s19 = smov (!%p313_p2), 120   ;;  %s1090_s20 = smov (!%p313_p2), 104  }
   0x9   : > { %s1091_s21 = smov (!%p313_p2), 80   ;;  %s1092_s22 = smov (!%p313_p2), 112  }
   0xa   : > { %s1094_s27 = smov (!%p313_p2), 40   ;;  %s1095_s28 = smov (!%p313_p2), 48  }
   0xb   : > { %v367_v0 = vld [vmem:[%s1374_s2 + $0x10] sm:$0xff]  ;;  %v368_v1 = vld [vmem:[%s1374_s2 + $0x18] sm:$0xff]  ;;  %v365_v2 = vld [vmem:[%s1374_s2] sm:$0xff]  ;;  %s1384_s14 = smov (!%p350_p3, %s984_s14), 1  ;;  %vm381_vm0 = vcmask 261120   ;;  %vm403_vm1 = vcmask 64512  }
   0xc   : > { %v377_v3 = vpack.c.bf16 %v368_v1, %v367_v0  ;;  %v366_v4 = vld [vmem:[%s1374_s2 + $0x8] sm:$0xff]  ;;  %s1009_s23 = sshll.u32 %s1384_s14, 4  ;;  %v1031_v10 = vld [vmem:[%s1375_s3] ss:$0 sm:$0xff]  ;;  %vm428_vm2 = vcmask 130048   ;;  %vm550_vm3 = vcmask 1043456  }
   0xd   : > { %v376_v5 = vpack.c.bf16 %v366_v4, %v365_v2  ;;  %s354_s26 = scalar_lea.vmem %s1372_s0, %s1009_s23  ;;  %v1199_v18 = vld [vmem:[%s1373_s1] sm:$0xff]  ;;  %v1206_v23 = vld [vmem:[%s1373_s1 + $0x8] sm:$0xff]  ;;  %s359_s12 = scalar_lea.vmem %s1382_s10, %s1009_s23 }
   0xe   : > { %391 = vmatpush.bf16.msra.mxu0 %v377_v3  ;;  %v1180_v6 = vld [vmem:[%s354_s26] sm:$0xff]  ;;  %v1182_v7 = vld [vmem:[%s354_s26 + $0x8] sm:$0xff]  ;;  %s1093_s26 = smov 56  }
   0xf   : > { %v375_v8 = vpack.c.bf16 %v1182_v7, %v1180_v6  ;;  %v370_v37 = vld [vmem:[%s1376_s4] sm:$0xff] }
  0x10   : > { %v473_v38 = vpack.c.bf16 %v370_v37, %v370_v37 }
  0x12   : > { %392 = vmatpush.bf16.msra.mxu0 %v376_v5  ;;  %v572_v39 = vsel %vm550_vm3, %v473_v38, 0 }
  0x13   : > { %581 = vmatpush.bf16.msra.mxu1 %v572_v39 }
  0x15   : > { %993 = vmatmul.msk.bf16.vlgmr.msra.gmra.mxu0 %vm381_vm0, %v375_v8 }
  0x92   : > { %v394_v9 = vpop.f32.mrf.mxu0 }
  0x93   : > { %v395_v12 = vadd.f32 %v1031_v10, %v394_v9 }
  0x9a   : > { %v396_v11 = vpop.f32.mrf.mxu0 }
  0x9b   : > { %v397_v13 = vadd.f32 %v1031_v10, %v396_v11 }
  0x9d   : > { %v1190_v14 = vpack.c.bf16 %v397_v13, %v395_v12 }
  0x9f   : > { %401 = vrot.lane.b32.xlu0 %v1190_v14, %s1085_s29 }
 0x111   : > { %v402_v15 = vpop.permute.xlu0 %401 }
 0x112   : > { %v408_v16 = vsel %vm403_vm1, %v402_v15, 0 }
 0x113   : > { %417 = vmatpush.bf16.xpose.msra.mxu3 %v408_v16 }
 0x11a   : > { %994 = vmatmul.msk.bf16.vlgmr.msra.gmra.mxu3 %vm403_vm1, %v1190_v14 }
 0x19d   : > { %v419_v17 = vpop.f32.mrf.mxu3 }
 0x19e   : > { %v424_v19 = vmul.f32 0.35355338, %v419_v17 }
 0x1a0   : > { %v426_v20 = vadd.f32 %v424_v19, %v1199_v18 }
 0x1a2   : > { %v429_v21 = vsel %vm428_vm2, %v426_v20, -inf }
 0x1a3   : > { %430 = vmax.xlane.f32.xlu0 %v429_v21 }
 0x1a5   : > { %v421_v22 = vpop.f32.mrf.mxu3 }
 0x1a6   : > { %v425_v24 = vmul.f32 0.35355338, %v421_v22 }
 0x1a8   : > { %v427_v25 = vadd.f32 %v425_v24, %v1206_v23 }
 0x1aa   : > { %v432_v26 = vsel %vm428_vm2, %v427_v25, -inf }
 0x1ab   : > { %433 = vmax.xlane.f32.xlu1 %v432_v26 }
 0x216   : > { %v431_v27 = vpop.xlane.xlu0 %430 }
 0x217   : > { %v435_v28 = vsub.f32 %v426_v20, %v431_v27 }
 0x219   : > { %v437_v29 = vmul.f32 1.442695, %v435_v28 }
 0x21b   : > { %1035 = vpow2.f32 %v437_v29 }
 0x21e   : > { %v434_v30 = vpop.xlane.xlu1 %433 }
 0x21f   : > { %v436_v31 = vsub.f32 %v427_v25, %v434_v30 }
 0x221   : > { %v1036_v32 = vpop.eup %1035  ;;  %v439_v33 = vmul.f32 1.442695, %v436_v31 }
 0x222   : > { %v441_v34 = vsel %vm428_vm2, %v1036_v32, 0.0 }
 0x223   : > { %1037 = vpow2.f32 %v439_v33  ;;  %442 = vadd.xlane.f32.xlu1 %v441_v34 }
 0x229   : > { %v1038_v35 = vpop.eup %1037 }
 0x22a   : > { %v444_v36 = vsel %vm428_vm2, %v1038_v35, 0.0 }
 0x22b   : > { %445 = vadd.xlane.f32.xlu2 %v444_v36 }
 0x23c   : > { %476 = vrot.lane.b32.xlu1 %v1190_v14, %s1086_s16 }
 0x243   : > { %452 = vrot.lane.b32.xlu2 %v1190_v14, %s1087_s17 }
 0x244   : > { %685 = vrot.lane.b32.xlu1 %v1190_v14, %s1088_s18 }
 0x24b   : > { %474 = vrot.lane.b32.xlu2 %v1190_v14, %s1089_s19 }
 0x24c   : > { %683 = vrot.lane.b32.xlu1 %v1190_v14, %s1090_s20 }
 0x253   : > { %590 = vrot.lane.b32.xlu2 %v1190_v14, %s1091_s21 }
 0x25b   : > { %588 = vrot.lane.b32.xlu2 %v1190_v14, %s1092_s22 }
 0x296   : > { %v443_v40 = vpop.xlane.xlu1 %442 }
 0x297   : > { %1039 = vrcp.f32 %v443_v40 }
 0x29d   : > { %v1040_v42 = vpop.eup %1039 }
 0x29e   : > { %v446_v41 = vpop.xlane.xlu2 %445  ;;  %v449_v45 = vmul.f32 %v1040_v42, %v1036_v32 }
 0x29f   : > { %1041 = vrcp.f32 %v446_v41 }
 0x2a5   : > { %v1042_v43 = vpop.eup %1041 }
 0x2a6   : > { %v453_v44 = vpop.permute.xlu2 %452  ;;  %v450_v46 = vmul.f32 %v1042_v43, %v1038_v35 }
 0x2a7   : > { %465 = vmatpush.bf16.msra.mxu2 %v453_v44 }
 0x2a8   : > { %v451_v47 = vpack.c.bf16 %v450_v46, %v449_v45 }
 0x2aa   : > { %995 = vmatmul.msk.bf16.vlgmr.msra.gmra.mxu2 %vm428_vm2, %v451_v47 }
 0x2ae   : > { %v475_v48 = vpop.permute.xlu2 %474  ;;  %v477_v49 = vpop.permute.xlu1 %476 }
 0x2af   : > { %v482_v50 = vsel %vm403_vm1, %v477_v49, 0 }
 0x2b0   : > { %491 = vmatpush.bf16.xpose.msrb.mxu3 %v482_v50 }
 0x2b6   : > { %v591_v51 = vpop.permute.xlu2 %590  ;;  %v686_v52 = vpop.permute.xlu1 %685 }
 0x2b7   : > { %v596_v53 = vsel %vm403_vm1, %v591_v51, 0  ;;  %996 = vmatmul.msk.bf16.vlgmr.msrb.gmra.mxu3 %vm403_vm1, %v475_v48  ;;  %v691_v54 = vsel %vm403_vm1, %v686_v52, 0 }
 0x2b8   : > { %605 = vmatpush.bf16.xpose.msra.mxu3 %v596_v53  ;;  %700 = vmatpush.bf16.xpose.msrb.mxu1 %v691_v54 }
 0x2be   : > { %v589_v55 = vpop.permute.xlu2 %588  ;;  %v684_v2 = vpop.permute.xlu1 %683 }
 0x2c7   : > { %1000 = vmatmul.msk.bf16.vlgmr.msra.gmra.mxu3 %vm403_vm1, %v589_v55 }
 0x32d   : > { %v467_v56 = vpop.f32.mrf.mxu2 }
 0x335   : > { %v469_v57 = vpop.f32.mrf.mxu2 }
 0x336   : > { %v472_v58 = vpack.c.bf16 %v469_v57, %v467_v56 }
 0x338   : > { %999 = vmatmul.msk.bf16.vlgmr.msra.gmra.mxu1 %vm403_vm1, %v472_v58 }
 0x33a   : > { %v493_v59 = vpop.f32.mrf.mxu3 }
 0x33b   : > { %v498_v60 = vmul.f32 0.35355338, %v493_v59 }
 0x33d   : > { %v500_v61 = vadd.f32 %v498_v60, %v1199_v18 }
 0x33f   : > { %v502_v62 = vsel %vm428_vm2, %v500_v61, -inf }
 0x340   : > { %503 = vmax.xlane.f32.xlu0 %v502_v62 }
 0x342   : > { %v495_v63 = vpop.f32.mrf.mxu3 }
 0x343   : > { %v499_v0 = vmul.f32 0.35355338, %v495_v63 }
 0x345   : > { %v501_v1 = vadd.f32 %v499_v0, %v1206_v23 }
 0x347   : > { %v505_v3 = vsel %vm428_vm2, %v501_v1, -inf }
 0x348   : > { %506 = vmax.xlane.f32.xlu2 %v505_v3  ;;  %1003 = vmatmul.msk.bf16.vlgmr.msrb.gmra.mxu1 %vm403_vm1, %v684_v2 }
 0x34a   : > { %v607_v4 = vpop.f32.mrf.mxu3 }
 0x34b   : > { %v612_v5 = vmul.f32 0.35355338, %v607_v4 }
 0x34d   : > { %v614_v8 = vadd.f32 %v612_v5, %v1199_v18 }
 0x34f   : > { %v616_v9 = vsel %vm428_vm2, %v614_v8, -inf }
 0x350   : > { %617 = vmax.xlane.f32.xlu0 %v616_v9 }
 0x352   : > { %v609_v10 = vpop.f32.mrf.mxu3 }
 0x353   : > { %v613_v11 = vmul.f32 0.35355338, %v609_v10 }
 0x355   : > { %v615_v12 = vadd.f32 %v613_v11, %v1206_v23 }
 0x357   : > { %v619_v13 = vsel %vm428_vm2, %v615_v12, -inf }
 0x358   : > { %620 = vmax.xlane.f32.xlu0 %v619_v13 }
 0x360   : > { %525 = vrot.lane.b32.xlu2 %v1190_v14, %s1093_s26 }
 0x3b3   : > { %v504_v15 = vpop.xlane.xlu0 %503 }
 0x3b4   : > { %v508_v16 = vsub.f32 %v500_v61, %v504_v15 }
 0x3b5   : > { %v1240_v17 = vpop.f32.mrf.mxu1 }
 0x3b6   : > { %v510_v19 = vmul.f32 1.442695, %v508_v16 }
 0x3b8   : > { %1043 = vpow2.f32 %v510_v19 }
 0x3bb   : > { %v507_v20 = vpop.xlane.xlu2 %506 }
 0x3bc   : > { %v509_v30 = vsub.f32 %v501_v1, %v507_v20  ;;  %v371_v1 = vld [vmem:[%s1376_s4 + $0x8] sm:$0xff] }
 0x3bd   : > { %v1242_v21 = vpop.f32.mrf.mxu1  ;;  %v546_v2 = vpack.c.bf16 %v371_v1, %v371_v1 }
 0x3be   : > { %v1044_v22 = vpop.eup %1043  ;;  %v512_v34 = vmul.f32 1.442695, %v509_v30  ;;  %v372_v30 = vld [vmem:[%s1376_s4 + $0x10] sm:$0xff] }
 0x3bf   : > { %v514_v24 = vsel %vm428_vm2, %v1044_v22, 0.0  ;;  %v552_v3 = vsel %vm550_vm3, %v546_v2, 0 }
 0x3c0   : > { %515 = vadd.xlane.f32.xlu0 %v514_v24  ;;  %561 = vmatpush.bf16.msrb.mxu0 %v552_v3 }
 0x3c3   : > { %v618_v25 = vpop.xlane.xlu0 %617  ;;  %v526_v26 = vpop.permute.xlu2 %525 }
 0x3c4   : > { %538 = vmatpush.bf16.msrb.mxu2 %v526_v26  ;;  %v622_v39 = vsub.f32 %v614_v8, %v618_v25 }
 0x3c5   : > { %v702_v27 = vpop.f32.mrf.mxu1 }
 0x3c6   : > { %v707_v28 = vmul.f32 0.35355338, %v702_v27  ;;  %v624_v41 = vmul.f32 1.442695, %v622_v39  ;;  %v373_v27 = vld [vmem:[%s1376_s4 + $0x18] sm:$0xff] }
 0x3c8   : > { %v709_v29 = vadd.f32 %v707_v28, %v1199_v18  ;;  %v755_v28 = vpack.c.bf16 %v373_v27, %v373_v27 }
 0x3ca   : > { %v711_v31 = vsel %vm428_vm2, %v709_v29, -inf }
 0x3cb   : > { %v621_v32 = vpop.xlane.xlu0 %620  ;;  %712 = vmax.xlane.f32.xlu1 %v711_v31  ;;  %v660_v31 = vpack.c.bf16 %v372_v30, %v372_v30 }
 0x3cc   : > { %v623_v33 = vsub.f32 %v615_v12, %v621_v32 }
 0x3cd   : > { %v704_v35 = vpop.f32.mrf.mxu1  ;;  %v665_v32 = vsel %vm550_vm3, %v660_v31, 0 }
 0x3ce   : > { %v626_v36 = vmul.f32 1.442695, %v623_v33  ;;  %v708_v37 = vmul.f32 0.35355338, %v704_v35  ;;  %674 = vmatpush.bf16.msra.mxu0 %v665_v32 }
 0x3d0   : > { %1045 = vpow2.f32 %v626_v36  ;;  %v710_v38 = vadd.f32 %v708_v37, %v1206_v23 }
 0x3d1   : > { %1047 = vpow2.f32 %v512_v34 }
 0x3d2   : > { %v714_v40 = vsel %vm428_vm2, %v710_v38, -inf  ;;  %1049 = vpow2.f32 %v624_v41 }
 0x3d3   : > { %715 = vmax.xlane.f32.xlu0 %v714_v40 }
 0x3d6   : > { %v1046_v18 = vpop.eup %1045 }
 0x3d7   : > { %v1048_v42 = vpop.eup %1047  ;;  %v631_v43 = vsel %vm428_vm2, %v1046_v18, 0.0 }
 0x3d8   : > { %632 = vadd.xlane.f32.xlu1 %v631_v43  ;;  %v517_v44 = vsel %vm428_vm2, %v1048_v42, 0.0  ;;  %v1050_v45 = vpop.eup %1049 }
 0x3d9   : > { %v628_v46 = vsel %vm428_vm2, %v1050_v45, 0.0 }
 0x3db   : > { %518 = vadd.xlane.f32.xlu0 %v517_v44  ;;  %v1032_v44 = vld [vmem:[%s1377_s5] ss:$0 sm:$0xff] }
 0x3e3   : > { %629 = vadd.xlane.f32.xlu0 %v628_v46 }
 0x433   : > { %v516_v23 = vpop.xlane.xlu0 %515 }
 0x43e   : > { %v713_v47 = vpop.xlane.xlu1 %712 }
 0x43f   : > { %v717_v48 = vsub.f32 %v709_v29, %v713_v47  ;;  %v760_v29 = vsel %vm550_vm3, %v755_v28, 0 }
 0x441   : > { %v719_v49 = vmul.f32 1.442695, %v717_v48 }
 0x443   : > { %1051 = vpow2.f32 %v719_v49 }
 0x446   : > { %v716_v50 = vpop.xlane.xlu0 %715 }
 0x447   : > { %v718_v51 = vsub.f32 %v710_v38, %v716_v50 }
 0x449   : > { %v1052_v52 = vpop.eup %1051  ;;  %v721_v53 = vmul.f32 1.442695, %v718_v51 }
 0x44a   : > { %v723_v54 = vsel %vm428_vm2, %v1052_v52, 0.0 }
 0x44b   : > { %1053 = vpow2.f32 %v721_v53  ;;  %724 = vadd.xlane.f32.xlu0 %v723_v54  ;;  %v633_v0 = vpop.xlane.xlu1 %632 }
 0x44c   : > { %1055 = vrcp.f32 %v516_v23 }
 0x44e   : > { %v519_v55 = vpop.xlane.xlu0 %518 }
 0x44f   : > { %1057 = vrcp.f32 %v519_v55 }
 0x451   : > { %v1054_v56 = vpop.eup %1053 }
 0x452   : > { %v726_v57 = vsel %vm428_vm2, %v1054_v56, 0.0  ;;  %v1056_v58 = vpop.eup %1055 }
 0x453   : > { %727 = vadd.xlane.f32.xlu1 %v726_v57  ;;  %v522_v60 = vmul.f32 %v1056_v58, %v1044_v22 }
 0x455   : > { %v1058_v59 = vpop.eup %1057 }
 0x456   : > { %v523_v61 = vmul.f32 %v1058_v59, %v1048_v42  ;;  %v630_v63 = vpop.xlane.xlu0 %629 }
 0x458   : > { %v524_v62 = vpack.c.bf16 %v523_v61, %v522_v60 }
 0x45a   : > { %997 = vmatmul.msk.bf16.vlgmr.msrb.gmra.mxu2 %vm428_vm2, %v524_v62 }
 0x45f   : > { %734 = vrot.lane.b32.xlu0 %v1190_v14, %s1094_s27 }
 0x46c   : > { %639 = vrot.lane.b32.xlu1 %v1190_v14, %s1095_s28 }
 0x4be   : > { %v725_v4 = vpop.xlane.xlu0 %724 }
 0x4c6   : > { %v728_v5 = vpop.xlane.xlu1 %727 }
 0x4c7   : > { %1059 = vrcp.f32 %v728_v5  ;;  %v838_v5 = vld [vmem:[%s1378_s6 + $0x10] sm:$0xff] }
 0x4c8   : > { %1061 = vrcp.f32 %v725_v4 }
 0x4c9   : > { %1063 = vrcp.f32 %v630_v63 }
 0x4ca   : > { %1065 = vrcp.f32 %v633_v0 }
 0x4cd   : > { %v1060_v8 = vpop.eup %1059 }
 0x4ce   : > { %v1062_v9 = vpop.eup %1061  ;;  %v732_v10 = vmul.f32 %v1060_v8, %v1054_v56  ;;  %v839_v8 = vld [vmem:[%s1378_s6 + $0x18] sm:$0xff] }
 0x4cf   : > { %v731_v11 = vmul.f32 %v1062_v9, %v1052_v52  ;;  %v1064_v13 = vpop.eup %1063  ;;  %v860_v9 = vpack.c.bf16 %v839_v8, %v838_v5 }
 0x4d0   : > { %v1066_v15 = vpop.eup %1065  ;;  %v636_v16 = vmul.f32 %v1064_v13, %v1050_v45 }
 0x4d1   : > { %v735_v12 = vpop.permute.xlu0 %734  ;;  %v733_v14 = vpack.c.bf16 %v732_v10, %v731_v11  ;;  %v637_v20 = vmul.f32 %v1066_v15, %v1046_v18  ;;  %v836_v10 = vld [vmem:[%s1378_s6] sm:$0xff]  ;;  %v837_v11 = vld [vmem:[%s1378_s6 + $0x8] sm:$0xff] }
 0x4d2   : > { %747 = vmatpush.bf16.msrb.mxu3 %v735_v12  ;;  %v859_v12 = vpack.c.bf16 %v837_v11, %v836_v10 }
 0x4d3   : > { %v638_v24 = vpack.c.bf16 %v637_v20, %v636_v16 }
 0x4d5   : > { %1004 = vmatmul.msk.bf16.vlgmr.msrb.gmra.mxu3 %vm428_vm2, %v733_v14 }
 0x4dd   : > { %v540_v19 = vpop.f32.mrf.mxu2 }
 0x4de   : > { %v640_v22 = vpop.permute.xlu1 %639 }
 0x4df   : > { %652 = vmatpush.bf16.msra.mxu2 %v640_v22 }
 0x4e2   : > { %1001 = vmatmul.msk.bf16.vlgmr.msra.gmra.mxu2 %vm428_vm2, %v638_v24 }
 0x4e3   : > { %769 = vmatpush.bf16.msrb.mxu2 %v760_v29 }
 0x4e5   : > { %v542_v25 = vpop.f32.mrf.mxu2 }
 0x4e6   : > { %v545_v26 = vpack.c.bf16 %v542_v25, %v540_v19 }
 0x4e8   : > { %998 = vmatmul.msk.bf16.vlgmr.msrb.gmra.mxu0 %vm403_vm1, %v545_v26 }
 0x4e9   : > { %873 = vmatpush.bf16.msrb.mxu0 %v860_v9 }
 0x4ed   : > { %874 = vmatpush.bf16.msrb.mxu0 %v859_v12 }
 0x558   : > { %v749_v33 = vpop.f32.mrf.mxu3 }
 0x560   : > { %v751_v34 = vpop.f32.mrf.mxu3 }
 0x561   : > { %v754_v35 = vpack.c.bf16 %v751_v34, %v749_v33 }
 0x563   : > { %1005 = vmatmul.msk.bf16.vlgmr.msrb.gmra.mxu2 %vm403_vm1, %v754_v35 }
 0x565   : > { %v654_v36 = vpop.f32.mrf.mxu2  ;;  %v563_v39 = vpop.f32.mrf.mxu0 }
 0x566   : > { %v584_v41 = vadd.f32 %v1240_v17, %v563_v39 }
 0x56d   : > { %v656_v37 = vpop.f32.mrf.mxu2  ;;  %v565_v40 = vpop.f32.mrf.mxu0 }
 0x56e   : > { %v659_v38 = vpack.c.bf16 %v656_v37, %v654_v36  ;;  %v586_v23 = vadd.f32 %v1242_v21, %v565_v40  ;;  %v1096_v21 = vmov 32.0   ;;  %v855_v40 = vld [vmem:[%s1380_s8 + $0x70] sm:$0xff] }
 0x56f   : > { %1067 = vrcp.f32 %v1096_v21  ;;  %v846_v21 = vld [vmem:[%s1380_s8 + $0x28] sm:$0xff] }
 0x570   : > { %1002 = vmatmul.msk.bf16.vlgmr.msra.gmra.mxu0 %vm403_vm1, %v659_v38 }
 0x5e6   : > { %v771_v18 = vpop.f32.mrf.mxu2 }
 0x5ed   : > { %v676_v42 = vpop.f32.mrf.mxu0 }
 0x5ee   : > { %v681_v43 = vadd.f32 %v676_v42, %v584_v41  ;;  %v773_v17 = vpop.f32.mrf.mxu2  ;;  %v856_v41 = vld [vmem:[%s1380_s8 + $0x78] sm:$0xff]  ;;  %v853_v42 = vld [vmem:[%s1380_s8 + $0x60] sm:$0xff] }
 0x5f0   : > { %v776_v45 = vadd.f32 %v771_v18, %v681_v43  ;;  %v907_v18 = vpack.c.bf16 %v856_v41, %v855_v40  ;;  %v854_v43 = vld [vmem:[%s1380_s8 + $0x68] sm:$0xff] }
 0x5f2   : > { %v781_v46 = vadd.f32 %v1032_v44, %v776_v45  ;;  %911 = vmatpush.bf16.msra.mxu1 %v907_v18  ;;  %v851_v45 = vld [vmem:[%s1380_s8 + $0x50] sm:$0xff] }
 0x5f4   : > { %v1280_v47 = vadd.f32 %v781_v46, %v1180_v6  ;;  %v1068_v6 = vpop.eup %1067  ;;  %v852_v46 = vld [vmem:[%s1380_s8 + $0x58] sm:$0xff] }
 0x5f5   : > { %v678_v48 = vpop.f32.mrf.mxu0  ;;  %v792_v55 = vmul.f32 32.0, %v1068_v6  ;;  %vm796_vm4 = vweird.f32 %v1068_v6 }
 0x5f6   : > { %v682_v49 = vadd.f32 %v678_v48, %v586_v23  ;;  %v785_v50 = vsel %vm381_vm0, %v1280_v47, 0.0  ;;  %v905_v23 = vpack.c.bf16 %v852_v46, %v851_v45  ;;  %v849_v48 = vld [vmem:[%s1380_s8 + $0x40] sm:$0xff] }
 0x5f7   : > { %786 = vadd.xlane.f32.xlu2 %v785_v50  ;;  %v793_v56 = vsub.f32 1.0, %v792_v55  ;;  %v843_v55 = vld [vmem:[%s1380_s8 + $0x10] sm:$0xff] }
 0x5f8   : > { %v777_v51 = vadd.f32 %v773_v17, %v682_v49  ;;  %v850_v49 = vld [vmem:[%s1380_s8 + $0x48] sm:$0xff]  ;;  %v847_v17 = vld [vmem:[%s1380_s8 + $0x30] sm:$0xff] }
 0x5f9   : > { %v794_v57 = vmul.f32 %v1068_v6, %v793_v56  ;;  %v904_v50 = vpack.c.bf16 %v850_v49, %v849_v48  ;;  %v844_v56 = vld [vmem:[%s1380_s8 + $0x18] sm:$0xff] }
 0x5fa   : > { %v782_v52 = vadd.f32 %v1032_v44, %v777_v51  ;;  %v906_v44 = vpack.c.bf16 %v854_v43, %v853_v42  ;;  %v848_v51 = vld [vmem:[%s1380_s8 + $0x38] sm:$0xff] }
 0x5fb   : > { %v795_v58 = vadd.f32 %v1068_v6, %v794_v57  ;;  %v901_v57 = vpack.c.bf16 %v844_v56, %v843_v55 }
 0x5fc   : > { %v1285_v53 = vadd.f32 %v782_v52, %v1182_v7  ;;  %912 = vmatpush.bf16.msra.mxu1 %v906_v44  ;;  %v903_v52 = vpack.c.bf16 %v848_v51, %v847_v17 }
 0x5fd   : > { %v797_v59 = vsel %vm796_vm4, %v1068_v6, %v795_v58  ;;  %v841_v58 = vld [vmem:[%s1380_s8] sm:$0xff] }
 0x5fe   : > { %v788_v54 = vsel %vm381_vm0, %v1285_v53, 0.0 }
 0x5ff   : > { %789 = vadd.xlane.f32.xlu0 %v788_v54  ;;  %v845_v54 = vld [vmem:[%s1380_s8 + $0x20] sm:$0xff] }
 0x600   : > { %913 = vmatpush.bf16.msra.mxu1 %v905_v23  ;;  %v902_v6 = vpack.c.bf16 %v846_v21, %v845_v54 }
 0x604   : > { %914 = vmatpush.bf16.msra.mxu1 %v904_v50 }
 0x608   : > { %915 = vmatpush.bf16.msra.mxu1 %v903_v52 }
 0x60c   : > { %916 = vmatpush.bf16.msra.mxu1 %v902_v6 }
 0x610   : > { %917 = vmatpush.bf16.msra.mxu1 %v901_v57 }
 0x66a   : > { %v787_v60 = vpop.xlane.xlu2 %786 }
 0x66b   : > { %v798_v61 = vmul.f32 %v797_v59, %v787_v60 }
 0x66d   : > { %v800_v62 = vsub.f32 %v1280_v47, %v798_v61  ;;  %v1033_v61 = vld [vmem:[%s1379_s7] ss:$0 sm:$0xff] }
 0x66f   : > { %v802_v63 = vmul.f32 %v800_v62, %v800_v62 }
 0x671   : > { %v804_v7 = vsel %vm381_vm0, %v802_v63, 0.0 }
 0x672   : > { %805 = vadd.xlane.f32.xlu1 %v804_v7  ;;  %v790_v0 = vpop.xlane.xlu0 %789 }
 0x673   : > { %v799_v1 = vmul.f32 %v797_v59, %v790_v0 }
 0x675   : > { %v801_v2 = vsub.f32 %v1285_v53, %v799_v1 }
 0x677   : > { %v803_v3 = vmul.f32 %v801_v2, %v801_v2 }
 0x679   : > { %v807_v4 = vsel %vm381_vm0, %v803_v3, 0.0 }
 0x67a   : > { %808 = vadd.xlane.f32.xlu2 %v807_v4 }
 0x6e5   : > { %v806_v14 = vpop.xlane.xlu1 %805 }
 0x6e6   : > { %v810_v13 = vmul.f32 %v806_v14, %v797_v59 }
 0x6e8   : > { %v812_v15 = vadd.f32 1e-05, %v810_v13 }
 0x6ea   : > { %1069 = vrsqrt.f32 %v812_v15  ;;  %vm820_vm6 = vweird.f32 %v812_v15 }
 0x6ed   : > { %v809_v16 = vpop.xlane.xlu2 %808 }
 0x6ee   : > { %v811_v19 = vmul.f32 %v809_v16, %v797_v59  ;;  %v842_v59 = vld [vmem:[%s1380_s8 + $0x8] sm:$0xff] }
 0x6ef   : > { %v900_v60 = vpack.c.bf16 %v842_v59, %v841_v58 }
 0x6f0   : > { %v1070_v20 = vpop.eup %1069  ;;  %v813_v22 = vadd.f32 1e-05, %v811_v19 }
 0x6f1   : > { %v815_v24 = vmul.f32 %v1070_v20, %v812_v15  ;;  %vm821_vm5 = vweird.f32 %v1070_v20  ;;  %918 = vmatpush.bf16.msra.mxu1 %v900_v60 }
 0x6f2   : > { %1071 = vrsqrt.f32 %v813_v22  ;;  %vm822_vm8 = vmor %vm820_vm6, %vm821_vm5  ;;  %vm830_vm9 = vweird.f32 %v813_v22 }
 0x6f3   : > { %v816_v25 = vmul.f32 %v1070_v20, %v815_v24 }
 0x6f5   : > { %v817_v26 = vmul.f32 0.5, %v816_v25 }
 0x6f7   : > { %v818_v28 = vsub.f32 1.5, %v817_v26  ;;  %v1034_v26 = vld [vmem:[%s1381_s9] ss:$0 sm:$0xff] }
 0x6f8   : > { %v1072_v27 = vpop.eup %1071 }
 0x6f9   : > { %v825_v29 = vmul.f32 %v1072_v27, %v813_v22  ;;  %v819_v31 = vmul.f32 %v1070_v20, %v818_v28  ;;  %vm831_vm7 = vweird.f32 %v1072_v27 }
 0x6fa   : > { %vm832_vm10 = vmor %vm830_vm9, %vm831_vm7 }
 0x6fb   : > { %v826_v30 = vmul.f32 %v1072_v27, %v825_v29  ;;  %v823_v34 = vsel %vm822_vm8, %v1070_v20, %v819_v31 }
 0x6fc   : > { %v834_v37 = vmul.f32 %v823_v34, %v800_v62 }
 0x6fd   : > { %v827_v32 = vmul.f32 0.5, %v826_v30 }
 0x6ff   : > { %v828_v33 = vsub.f32 1.5, %v827_v32 }
 0x701   : > { %v829_v35 = vmul.f32 %v1072_v27, %v828_v33 }
 0x703   : > { %v833_v36 = vsel %vm832_vm10, %v1072_v27, %v829_v35 }
 0x704   : > { %v835_v38 = vmul.f32 %v833_v36, %v801_v2 }
 0x706   : > { %v858_v39 = vpack.c.bf16 %v835_v38, %v834_v37 }
 0x708   : > { %1006 = vmatmul.msk.bf16.vlgmr.msrb.gmra.mxu0 %vm381_vm0, %v858_v39 }
 0x785   : > { %v876_v62 = vpop.f32.mrf.mxu0 }
 0x786   : > { %v877_v63 = vadd.f32 %v1033_v61, %v876_v62 }
 0x788   : > { %v883_v7 = vmul.f32 0.044715, %v877_v63  ;;  %v881_v16 = vmul.f32 0.5, %v877_v63 }
 0x78a   : > { %v885_v0 = vmul.f32 %v883_v7, %v877_v63 }
 0x78c   : > { %v887_v1 = vmul.f32 %v885_v0, %v877_v63 }
 0x78d   : > { %v878_v2 = vpop.f32.mrf.mxu0 }
 0x78e   : > { %v889_v3 = vadd.f32 %v887_v1, %v877_v63  ;;  %v879_v4 = vadd.f32 %v1033_v61, %v878_v2 }
 0x790   : > { %v884_v5 = vmul.f32 0.044715, %v879_v4  ;;  %v891_v8 = vmul.f32 0.7978846, %v889_v3  ;;  %v882_v19 = vmul.f32 0.5, %v879_v4 }
 0x792   : > { %v886_v9 = vmul.f32 %v884_v5, %v879_v4  ;;  %1073 = vtanh.f32 %v891_v8 }
 0x794   : > { %v888_v10 = vmul.f32 %v886_v9, %v879_v4 }
 0x796   : > { %v890_v11 = vadd.f32 %v888_v10, %v879_v4 }
 0x798   : > { %v892_v12 = vmul.f32 0.7978846, %v890_v11  ;;  %v1074_v14 = vpop.eup %1073 }
 0x799   : > { %v895_v13 = vadd.f32 1.0, %v1074_v14 }
 0x79a   : > { %1075 = vtanh.f32 %v892_v12 }
 0x79b   : > { %v897_v22 = vmul.f32 %v895_v13, %v881_v16 }
 0x7a0   : > { %v1076_v15 = vpop.eup %1075 }
 0x7a1   : > { %v896_v20 = vadd.f32 1.0, %v1076_v15 }
 0x7a3   : > { %v898_v24 = vmul.f32 %v896_v20, %v882_v19 }
 0x7a5   : > { %v899_v25 = vpack.c.bf16 %v898_v24, %v897_v22 }
 0x7a7   : > { %919 = vmatmul.bf16.vlgmr.msra.gmra.mxu1 %v899_v25 }
 0x824   : > { %v920_v27 = vpop.f32.mrf.mxu1 }
 0x825   : > { %v921_v28 = vadd.f32 %v1034_v26, %v920_v27 }
 0x827   : > { %v925_v29 = vadd.f32 %v921_v28, %v1280_v47 }
 0x829   : > { %927 = vst.msk [vmem:[%s359_s12] sm:$0xff] %vm381_vm0, %v925_v29 }
 0x82c   : > { %v922_v30 = vpop.f32.mrf.mxu1 }
 0x82d   : > { %v923_v31 = vadd.f32 %v1034_v26, %v922_v30 }
 0x82f   : > { %v926_v32 = vadd.f32 %v923_v31, %v1285_v53 }
 0x831   : > { %928 = vst.msk [vmem:[%s359_s12 + $0x8] sm:$0xff] %vm381_vm0, %v926_v32 }
 0x832 PF: > { %s20_s13 = sadd.s32 1, %s1083_s13  }
 0x833   : > { %p17_p4 = scmp.ge.s32.totalorder %s20_s13, 4  }
 0x835   :  { %19 = sbr.rel (!%p17_p4) target bundleno = 1 (0x1), region = 90 }

// kernel: score_network_forward.5
= control target key start
LH: loop header
LB: loop body
LE: loop exit
PB: predicated region body
PF: predicated region fallthrough
CT: control target
= control target key end

     0   :  { %s976_s30 = smov 0   ;;  %s1203_s0 = inlined_call_operand.vmem [shape: f32[2,32,16], index: 0, kind: input, shape index: {}]   ;;  %s1204_s1 = inlined_call_operand.vmem [shape: f32[1,16,32], index: 1, kind: input, shape index: {}]   ;;  %s1205_s2 = inlined_call_operand.vmem [shape: f32[1,1,32], index: 2, kind: input, shape index: {}]   ;;  %s1206_s3 = inlined_call_operand.vmem [shape: f32[1,32,128], index: 3, kind: input, shape index: {}]   ;;  %s1207_s4 = inlined_call_operand.vmem [shape: f32[1,1,128], index: 4, kind: input, shape index: {}]   ;;  %s1208_s5 = inlined_call_operand.vmem [shape: f32[1,128,32], index: 5, kind: input, shape index: {}]   ;;  %s1209_s6 = inlined_call_operand.vmem [shape: f32[1,1,32], index: 6, kind: input, shape index: {}]   ;;  %s1210_s7 = inlined_call_operand.vmem [shape: f32[1,32,16], index: 7, kind: input, shape index: {}]   ;;  %s1211_s8 = inlined_call_operand.vmem [shape: f32[1,1,16], index: 8, kind: input, shape index: {}]   ;;  %s1212_s9 = inlined_call_operand.vmem [shape: f32[2,32,16], index: 9, kind: output, shape index: {}]  }
   0x1 LB: > { %s835_s10 = sadd.s32 4294967295, %s923_s30   ;;  %p839_p0 = scmp.ge.s32.totalorder %s923_s30, 1  ;;  %s923_s30 = sphi %s976_s30, %s19_s30  }
   0x2   : > { %p287_p1 = scmp.lt.s32.totalorder %s923_s30, 3 }
   0x4   : > { %p288_p2 = pnand %p839_p0, %p287_p1 }
   0x5   : > { %p323_p3 = scmp.lt.s32.totalorder (!%p288_p2), %s835_s10, 1 }
   0x6   : > { %291 = sbr.rel (%p288_p2) target bundleno = 958 (0x3be), region = 56 }
   0xb   : > { %s1214_s10 = smov (!%p323_p3, %s835_s10), 1  ;;  %vm338_vm0 = vcmask 130048   ;;  %v925_v8 = vmov 16.0   ;;  %v498_v35 = vld [vmem:[%s1204_s1] sm:$0xff]  ;;  %v499_v36 = vld [vmem:[%s1204_s1 + $0x8] sm:$0xff] }
   0xc   : > { %s852_s11 = sshll.u32 %s1214_s10, 5  ;;  %875 = vrcp.f32 %v925_v8  ;;  %v502_v37 = vpack.c.bf16 %v499_v36, %v498_v35 }
   0xd   : > { %s327_s14 = scalar_lea.vmem %s1203_s0, %s852_s11  ;;  %s332_s23 = scalar_lea.vmem %s1212_s9, %s852_s11 }
   0xe   : > { %v336_v0 = vld [vmem:[%s327_s14 + $0x10] sm:$0xff]  ;;  %v334_v1 = vld [vmem:[%s327_s14] sm:$0xff]  ;;  %v337_v4 = vld [vmem:[%s327_s14 + $0x18] sm:$0xff]  ;;  %520 = vmatpush.bf16.msra.mxu0 %v502_v37 }
   0xf   : > { %v345_v2 = vsel %vm338_vm0, %v336_v0, 0.0  ;;  %v339_v3 = vsel %vm338_vm0, %v334_v1, 0.0  ;;  %v335_v5 = vld [vmem:[%s327_s14 + $0x8] sm:$0xff]  ;;  %v348_v6 = vsel %vm338_vm0, %v337_v4, 0.0 }
  0x10   : > { %346 = vadd.xlane.f32.xlu1 %v345_v2  ;;  %340 = vadd.xlane.f32.xlu0 %v339_v3  ;;  %v342_v7 = vsel %vm338_vm0, %v335_v5, 0.0 }
  0x12   : > { %v876_v9 = vpop.eup %875 }
  0x13   : > { %v352_v10 = vmul.f32 16.0, %v876_v9  ;;  %vm356_vm1 = vweird.f32 %v876_v9 }
  0x15   : > { %v353_v11 = vsub.f32 1.0, %v352_v10 }
  0x17   : > { %v354_v12 = vmul.f32 %v876_v9, %v353_v11 }
  0x18   : > { %349 = vadd.xlane.f32.xlu1 %v348_v6  ;;  %343 = vadd.xlane.f32.xlu0 %v342_v7 }
  0x19   : > { %v355_v13 = vadd.f32 %v876_v9, %v354_v12 }
  0x1b   : > { %v357_v14 = vsel %vm356_vm1, %v876_v9, %v355_v13 }
  0x83   : > { %v347_v15 = vpop.xlane.xlu1 %346  ;;  %v341_v16 = vpop.xlane.xlu0 %340 }
  0x84   : > { %v996_v17 = vmul.f32 %v357_v14, %v347_v15  ;;  %v998_v18 = vmul.f32 %v357_v14, %v341_v16 }
  0x86   : > { %v1001_v19 = vsub.f32 %v336_v0, %v996_v17  ;;  %v1004_v20 = vsub.f32 %v334_v1, %v998_v18 }
  0x88   : > { %v368_v21 = vmul.f32 %v1001_v19, %v1001_v19  ;;  %v366_v22 = vmul.f32 %v1004_v20, %v1004_v20 }
  0x8a   : > { %v376_v23 = vsel %vm338_vm0, %v368_v21, 0.0  ;;  %v370_v24 = vsel %vm338_vm0, %v366_v22, 0.0 }
  0x8b   : > { %v350_v25 = vpop.xlane.xlu1 %349  ;;  %377 = vadd.xlane.f32.xlu0 %v376_v23  ;;  %371 = vadd.xlane.f32.xlu2 %v370_v24  ;;  %v344_v26 = vpop.xlane.xlu0 %343 }
  0x8c   : > { %v1012_v27 = vmul.f32 %v357_v14, %v350_v25  ;;  %v1014_v28 = vmul.f32 %v357_v14, %v344_v26 }
  0x8e   : > { %v1017_v29 = vsub.f32 %v337_v4, %v1012_v27  ;;  %v1020_v30 = vsub.f32 %v335_v5, %v1014_v28 }
  0x90   : > { %v369_v31 = vmul.f32 %v1017_v29, %v1017_v29  ;;  %v367_v32 = vmul.f32 %v1020_v30, %v1020_v30 }
  0x92   : > { %v379_v33 = vsel %vm338_vm0, %v369_v31, 0.0  ;;  %v373_v34 = vsel %vm338_vm0, %v367_v32, 0.0 }
  0x93   : > { %380 = vadd.xlane.f32.xlu1 %v379_v33  ;;  %374 = vadd.xlane.f32.xlu2 %v373_v34 }
  0xfe   : > { %v372_v38 = vpop.xlane.xlu2 %371  ;;  %v378_v39 = vpop.xlane.xlu0 %377 }
  0xff   : > { %v382_v40 = vmul.f32 %v372_v38, %v357_v14  ;;  %v384_v41 = vmul.f32 %v378_v39, %v357_v14 }
 0x101   : > { %v386_v42 = vadd.f32 1e-05, %v382_v40  ;;  %v1034_v43 = vadd.f32 1e-05, %v384_v41 }
 0x103   : > { %877 = vrsqrt.f32 %v386_v42  ;;  %vm397_vm2 = vcmp.eq.f32.partialorder %v386_v42, inf  ;;  %v400_v4 = vand.u32 2147483648, %v386_v42  ;;  %vm399_vm3 = vcmp.eq.f32.partialorder %v386_v42, 0.0 }
 0x104   : > { %879 = vrsqrt.f32 %v1034_v43  ;;  %vm421_vm4 = vcmp.eq.f32.partialorder %v1034_v43, inf  ;;  %vm423_vm5 = vcmp.eq.f32.partialorder %v1034_v43, 0.0  ;;  %v424_v15 = vand.u32 2147483648, %v1034_v43 }
 0x106   : > { %v381_v44 = vpop.xlane.xlu1 %380  ;;  %v375_v45 = vpop.xlane.xlu2 %374 }
 0x107   : > { %v385_v46 = vmul.f32 %v381_v44, %v357_v14  ;;  %v383_v47 = vmul.f32 %v375_v45, %v357_v14 }
 0x109   : > { %v878_v48 = vpop.eup %877  ;;  %v389_v49 = vadd.f32 1e-05, %v385_v46  ;;  %v387_v50 = vadd.f32 1e-05, %v383_v47 }
 0x10a   : > { %v880_v51 = vpop.eup %879  ;;  %v391_v52 = vmul.f32 %v878_v48, %v386_v42 }
 0x10b   : > { %v415_v53 = vmul.f32 %v880_v51, %v1034_v43  ;;  %881 = vrsqrt.f32 %v389_v49  ;;  %vm433_vm6 = vcmp.eq.f32.partialorder %v389_v49, inf  ;;  %v436_v23 = vand.u32 2147483648, %v389_v49 }
 0x10c   : > { %v392_v54 = vmul.f32 %v878_v48, %v391_v52  ;;  %883 = vrsqrt.f32 %v387_v50  ;;  %vm409_vm7 = vcmp.eq.f32.partialorder %v387_v50, inf  ;;  %v412_v25 = vand.u32 2147483648, %v387_v50 }
 0x10d   : > { %v416_v55 = vmul.f32 %v880_v51, %v415_v53  ;;  %vm435_vm8 = vcmp.eq.f32.partialorder %v389_v49, 0.0  ;;  %vm411_vm9 = vcmp.eq.f32.partialorder %v387_v50, 0.0 }
 0x10e   : > { %v393_v56 = vmul.f32 0.5, %v392_v54 }
 0x10f   : > { %v417_v57 = vmul.f32 0.5, %v416_v55 }
 0x110   : > { %v394_v58 = vsub.f32 1.5, %v393_v56 }
 0x111   : > { %v882_v59 = vpop.eup %881  ;;  %v418_v60 = vsub.f32 1.5, %v417_v57 }
 0x112   : > { %v884_v61 = vpop.eup %883  ;;  %v427_v62 = vmul.f32 %v882_v59, %v389_v49  ;;  %v395_v63 = vmul.f32 %v878_v48, %v394_v58 }
 0x113   : > { %v403_v0 = vmul.f32 %v884_v61, %v387_v50  ;;  %v419_v5 = vmul.f32 %v880_v51, %v418_v60 }
 0x114   : > { %v428_v1 = vmul.f32 %v882_v59, %v427_v62  ;;  %v396_v2 = vmul.f32 %v395_v63, %v386_v42 }
 0x115   : > { %v404_v3 = vmul.f32 %v884_v61, %v403_v0  ;;  %v420_v12 = vmul.f32 %v419_v5, %v1034_v43 }
 0x116   : > { %v429_v6 = vmul.f32 0.5, %v428_v1  ;;  %v398_v7 = vsel %vm397_vm2, %v386_v42, %v396_v2 }
 0x117   : > { %v405_v8 = vmul.f32 0.5, %v404_v3  ;;  %v1038_v9 = vsel %vm399_vm3, %v400_v4, %v398_v7  ;;  %v422_v22 = vsel %vm421_vm4, %v1034_v43, %v420_v12 }
 0x118   : > { %v430_v10 = vsub.f32 1.5, %v429_v6  ;;  %885 = vrcp.f32 %v1038_v9  ;;  %v1053_v35 = vsel %vm423_vm5, %v424_v15, %v422_v22  ;;  %v449_v44 = vand.u32 2147483648, %v1038_v9  ;;  %v570_v15 = vld [vmem:[%s1206_s3 + $0x10] sm:$0xff]  ;;  %v569_v22 = vld [vmem:[%s1206_s3 + $0x8] sm:$0xff] }
 0x119   : > { %v406_v11 = vsub.f32 1.5, %v405_v8  ;;  %vm443_vm11 = vweird.f32 %v1038_v9  ;;  %v447_v43 = vand.u32 2147483647, %v1038_v9  ;;  %v477_v4 = vand.u32 2147483647, %v1053_v35 }
 0x11a   : > { %v431_v13 = vmul.f32 %v882_v59, %v430_v10  ;;  %v450_v52 = vor.u32 1.1754944e-38, %v449_v44 }
 0x11b   : > { %v407_v14 = vmul.f32 %v884_v61, %v406_v11  ;;  %vm448_vm14 = vcmp.eq.f32.partialorder %v447_v43, 8.507059e+37 }
 0x11c   : > { %v432_v16 = vmul.f32 %v431_v13, %v389_v49 }
 0x11d   : > { %v408_v21 = vmul.f32 %v407_v14, %v387_v50 }
 0x11e   : > { %v886_v24 = vpop.eup %885  ;;  %v434_v26 = vsel %vm433_vm6, %v389_v49, %v432_v16  ;;  %v571_v16 = vld [vmem:[%s1206_s3 + $0x18] sm:$0xff] }
 0x11f   : > { %v410_v31 = vsel %vm409_vm7, %v387_v50, %v408_v21  ;;  %v439_v32 = vmul.f32 %v886_v24, %v1038_v9  ;;  %v1047_v33 = vsel %vm435_vm8, %v436_v23, %v434_v26  ;;  %vm444_vm10 = vweird.f32 %v886_v24 }
 0x120   : > { %v1049_v34 = vsel %vm411_vm9, %v412_v25, %v410_v31  ;;  %887 = vrcp.f32 %v1047_v33  ;;  %vm445_vm12 = vmor %vm443_vm11, %vm444_vm10  ;;  %v494_v2 = vand.u32 2147483648, %v1047_v33  ;;  %vm488_vm5 = vweird.f32 %v1047_v33 }
 0x121   : > { %v440_v36 = vsub.f32 1.0, %v439_v32  ;;  %889 = vrcp.f32 %v1049_v34  ;;  %v462_v47 = vand.u32 2147483647, %v1049_v34  ;;  %v464_v48 = vand.u32 2147483648, %v1049_v34 }
 0x122   : > { %891 = vrcp.f32 %v1053_v35  ;;  %vm458_vm15 = vweird.f32 %v1049_v34  ;;  %vm473_vm7 = vweird.f32 %v1053_v35  ;;  %v495_v6 = vor.u32 1.1754944e-38, %v494_v2 }
 0x123   : > { %v441_v37 = vmul.f32 %v886_v24, %v440_v36  ;;  %v465_v56 = vor.u32 1.1754944e-38, %v464_v48  ;;  %vm463_vm2 = vcmp.eq.f32.partialorder %v462_v47, 8.507059e+37  ;;  %vm478_vm10 = vcmp.eq.f32.partialorder %v477_v4, 8.507059e+37 }
 0x124   : > { %v575_v21 = vpack.c.bf16 %v571_v16, %v570_v15  ;;  %vm580_vm11 = vcmask 261120   ;;  %v656_v16 = vld [vmem:[%s1208_s5 + $0x70] sm:$0xff] }
 0x125   : > { %v442_v40 = vadd.f32 %v886_v24, %v441_v37 }
 0x126   : > { %v888_v38 = vpop.eup %887  ;;  %593 = vmatpush.bf16.msra.mxu1 %v575_v21  ;;  %v657_v21 = vld [vmem:[%s1208_s5 + $0x78] sm:$0xff] }
 0x127   : > { %v890_v39 = vpop.eup %889  ;;  %v484_v46 = vmul.f32 %v888_v38, %v1047_v33  ;;  %v446_v49 = vsel %vm445_vm12, %v886_v24, %v442_v40  ;;  %vm489_vm3 = vweird.f32 %v888_v38 }
 0x128   : > { %v454_v41 = vmul.f32 %v890_v39, %v1049_v34  ;;  %v892_v42 = vpop.eup %891  ;;  %vm459_vm13 = vweird.f32 %v890_v39  ;;  %v451_v55 = vsel %vm448_vm14, %v450_v52, %v446_v49  ;;  %vm490_vm6 = vmor %vm488_vm5, %vm489_vm3 }
 0x129   : > { %v469_v51 = vmul.f32 %v892_v42, %v1053_v35  ;;  %v485_v54 = vsub.f32 1.0, %v484_v46  ;;  %vm460_vm1 = vmor %vm458_vm15, %vm459_vm13  ;;  %v1068_v60 = vmul.f32 %v451_v55, %v1004_v20  ;;  %vm474_vm4 = vweird.f32 %v892_v42 }
 0x12a   : > { %v455_v45 = vsub.f32 1.0, %v454_v41  ;;  %v492_v20 = vand.u32 2147483647, %v1047_v33  ;;  %vm475_vm8 = vmor %vm473_vm7, %vm474_vm4 }
 0x12b   : > { %v470_v58 = vsub.f32 1.0, %v469_v51  ;;  %v486_v62 = vmul.f32 %v888_v38, %v485_v54 }
 0x12c   : > { %v456_v50 = vmul.f32 %v890_v39, %v455_v45  ;;  %vm493_vm9 = vcmp.eq.f32.partialorder %v492_v20, 8.507059e+37 }
 0x12d   : > { %v471_v0 = vmul.f32 %v892_v42, %v470_v58  ;;  %v487_v1 = vadd.f32 %v888_v38, %v486_v62 }
 0x12e   : > { %v457_v53 = vadd.f32 %v890_v39, %v456_v50 }
 0x12f   : > { %v472_v3 = vadd.f32 %v892_v42, %v471_v0  ;;  %v491_v5 = vsel %vm490_vm6, %v888_v38, %v487_v1 }
 0x130   : > { %v461_v57 = vsel %vm460_vm1, %v890_v39, %v457_v53  ;;  %v496_v10 = vsel %vm493_vm9, %v495_v6, %v491_v5 }
 0x131   : > { %v466_v59 = vsel %vm463_vm2, %v465_v56, %v461_v57  ;;  %v476_v7 = vsel %vm475_vm8, %v892_v42, %v472_v3  ;;  %v1083_v12 = vmul.f32 %v496_v10, %v1017_v29  ;;  %v871_v29 = vld [vmem:[%s1205_s2] ss:$0 sm:$0xff] }
 0x132   : > { %v1071_v61 = vmul.f32 %v466_v59, %v1020_v30  ;;  %v479_v30 = vand.u32 2147483648, %v1053_v35 }
 0x134   : > { %v500_v63 = vpack.c.bf16 %v1071_v61, %v1068_v60  ;;  %v480_v8 = vor.u32 1.1754944e-38, %v479_v30 }
 0x136   : > { %844 = vmatmul.msk.bf16.vlgmr.msra.gmra.mxu0 %vm338_vm0, %v500_v63  ;;  %v481_v11 = vsel %vm478_vm10, %v480_v8, %v476_v7 }
 0x137   : > { %v1086_v13 = vmul.f32 %v481_v11, %v1001_v19  ;;  %v568_v19 = vld [vmem:[%s1206_s3] sm:$0xff] }
 0x138   : > { %v574_v23 = vpack.c.bf16 %v569_v22, %v568_v19  ;;  %v654_v19 = vld [vmem:[%s1208_s5 + $0x60] sm:$0xff]  ;;  %v655_v22 = vld [vmem:[%s1208_s5 + $0x68] sm:$0xff] }
 0x139   : > { %v501_v14 = vpack.c.bf16 %v1083_v12, %v1086_v13 }
 0x13a   : > { %594 = vmatpush.bf16.msra.mxu1 %v574_v23  ;;  %v666_v23 = vpack.c.bf16 %v655_v22, %v654_v19 }
 0x146   : > { %845 = vmatmul.msk.bf16.gmra.mxu0 %vm338_vm0, %v501_v14 }
 0x1b3   : > { %v522_v24 = vpop.f32.mrf.mxu0 }
 0x1b4   : > { %v523_v25 = vadd.f32 %v871_v29, %v522_v24  ;;  %v652_v24 = vld [vmem:[%s1208_s5 + $0x50] sm:$0xff] }
 0x1b6   : > { %v536_v26 = vmul.f32 0.044715, %v523_v25  ;;  %v532_v57 = vmul.f32 0.5, %v523_v25 }
 0x1b8   : > { %v540_v31 = vmul.f32 %v536_v26, %v523_v25 }
 0x1ba   : > { %v544_v32 = vmul.f32 %v540_v31, %v523_v25  ;;  %v650_v31 = vld [vmem:[%s1208_s5 + $0x40] sm:$0xff] }
 0x1bb   : > { %v524_v36 = vpop.f32.mrf.mxu0 }
 0x1bc   : > { %v525_v37 = vadd.f32 %v871_v29, %v524_v36  ;;  %v548_v38 = vadd.f32 %v544_v32, %v523_v25  ;;  %v653_v25 = vld [vmem:[%s1208_s5 + $0x58] sm:$0xff]  ;;  %v651_v32 = vld [vmem:[%s1208_s5 + $0x48] sm:$0xff] }
 0x1bd   : > { %v665_v26 = vpack.c.bf16 %v653_v25, %v652_v24  ;;  %v664_v36 = vpack.c.bf16 %v651_v32, %v650_v31 }
 0x1be   : > { %v537_v39 = vmul.f32 0.044715, %v525_v37  ;;  %v552_v41 = vmul.f32 0.7978846, %v548_v38  ;;  %v533_v58 = vmul.f32 0.5, %v525_v37  ;;  %v649_v38 = vld [vmem:[%s1208_s5 + $0x38] sm:$0xff] }
 0x1c0   : > { %v541_v40 = vmul.f32 %v537_v39, %v525_v37  ;;  %893 = vtanh.f32 %v552_v41  ;;  %v647_v41 = vld [vmem:[%s1208_s5 + $0x28] sm:$0xff] }
 0x1c2   : > { %v545_v42 = vmul.f32 %v541_v40, %v525_v37  ;;  %v646_v40 = vld [vmem:[%s1208_s5 + $0x20] sm:$0xff] }
 0x1c3   : > { %v527_v44 = vpop.f32.mrf.mxu0 }
 0x1c4   : > { %v528_v43 = vadd.f32 %v871_v29, %v527_v44  ;;  %v549_v45 = vadd.f32 %v545_v42, %v525_v37  ;;  %v648_v37 = vld [vmem:[%s1208_s5 + $0x30] sm:$0xff]  ;;  %v662_v42 = vpack.c.bf16 %v647_v41, %v646_v40 }
 0x1c5   : > { %v663_v39 = vpack.c.bf16 %v649_v38, %v648_v37  ;;  %v644_v44 = vld [vmem:[%s1208_s5 + $0x10] sm:$0xff] }
 0x1c6   : > { %v538_v46 = vmul.f32 0.044715, %v528_v43  ;;  %v553_v47 = vmul.f32 0.7978846, %v549_v45  ;;  %v894_v49 = vpop.eup %893  ;;  %v534_v7 = vmul.f32 0.5, %v528_v43 }
 0x1c7   : > { %v560_v54 = vadd.f32 1.0, %v894_v49 }
 0x1c8   : > { %v542_v48 = vmul.f32 %v538_v46, %v528_v43  ;;  %895 = vtanh.f32 %v553_v47  ;;  %v642_v46 = vld [vmem:[%s1208_s5] sm:$0xff]  ;;  %v643_v47 = vld [vmem:[%s1208_s5 + $0x8] sm:$0xff] }
 0x1c9   : > { %v564_v0 = vmul.f32 %v560_v54, %v532_v57  ;;  %v660_v49 = vpack.c.bf16 %v643_v47, %v642_v46  ;;  %v873_v47 = vld [vmem:[%s1209_s6] ss:$0 sm:$0xff] }
 0x1ca   : > { %v546_v50 = vmul.f32 %v542_v48, %v528_v43  ;;  %v872_v48 = vld [vmem:[%s1207_s4] ss:$0 sm:$0xff] }
 0x1cb   : > { %v529_v51 = vpop.f32.mrf.mxu0 }
 0x1cc   : > { %v530_v52 = vadd.f32 %v871_v29, %v529_v51  ;;  %v550_v53 = vadd.f32 %v546_v50, %v528_v43  ;;  %v667_v29 = vpack.c.bf16 %v657_v21, %v656_v16  ;;  %v645_v43 = vld [vmem:[%s1208_s5 + $0x18] sm:$0xff] }
 0x1cd   : > { %v661_v45 = vpack.c.bf16 %v645_v43, %v644_v44  ;;  %v729_v43 = vld [vmem:[%s1210_s7 + $0x10] sm:$0xff] }
 0x1ce   : > { %v896_v55 = vpop.eup %895  ;;  %v539_v56 = vmul.f32 0.044715, %v530_v52  ;;  %v554_v63 = vmul.f32 0.7978846, %v550_v53  ;;  %v535_v8 = vmul.f32 0.5, %v530_v52  ;;  %672 = vmatpush.bf16.msrb.mxu0 %v667_v29  ;;  %854 = vmatpush.bf16.msra.mxu2 %v667_v29 }
 0x1cf   : > { %v561_v59 = vadd.f32 1.0, %v896_v55 }
 0x1d0   : > { %v543_v62 = vmul.f32 %v539_v56, %v530_v52  ;;  %897 = vtanh.f32 %v554_v63 }
 0x1d1   : > { %v565_v1 = vmul.f32 %v561_v59, %v533_v58 }
 0x1d2   : > { %v547_v2 = vmul.f32 %v543_v62, %v530_v52  ;;  %673 = vmatpush.bf16.msrb.mxu0 %v666_v23  ;;  %855 = vmatpush.bf16.msra.mxu2 %v666_v23 }
 0x1d3   : > { %v572_v3 = vpack.c.bf16 %v565_v1, %v564_v0 }
 0x1d4   : > { %v551_v20 = vadd.f32 %v547_v2, %v530_v52 }
 0x1d5   : > { %846 = vmatmul.msk.bf16.vlgmr.msra.gmra.mxu1 %vm580_vm11, %v572_v3 }
 0x1d6   : > { %v555_v30 = vmul.f32 0.7978846, %v551_v20  ;;  %v898_v4 = vpop.eup %897  ;;  %674 = vmatpush.bf16.msrb.mxu0 %v665_v26  ;;  %856 = vmatpush.bf16.msra.mxu2 %v665_v26 }
 0x1d7   : > { %v562_v5 = vadd.f32 1.0, %v898_v4 }
 0x1d8   : > { %899 = vtanh.f32 %v555_v30 }
 0x1d9   : > { %v566_v11 = vmul.f32 %v562_v5, %v534_v7 }
 0x1da   : > { %675 = vmatpush.bf16.msrb.mxu0 %v664_v36  ;;  %857 = vmatpush.bf16.msra.mxu2 %v664_v36 }
 0x1de   : > { %v900_v6 = vpop.eup %899  ;;  %676 = vmatpush.bf16.msrb.mxu0 %v663_v39  ;;  %858 = vmatpush.bf16.msra.mxu2 %v663_v39 }
 0x1df   : > { %v563_v10 = vadd.f32 1.0, %v900_v6 }
 0x1e1   : > { %v567_v14 = vmul.f32 %v563_v10, %v535_v8 }
 0x1e2   : > { %677 = vmatpush.bf16.msrb.mxu0 %v662_v42  ;;  %859 = vmatpush.bf16.msra.mxu2 %v662_v42 }
 0x1e3   : > { %v573_v15 = vpack.c.bf16 %v567_v14, %v566_v11 }
 0x1e5   : > { %847 = vmatmul.msk.bf16.gmra.mxu1 %vm580_vm11, %v573_v15 }
 0x1e6   : > { %678 = vmatpush.bf16.msrb.mxu0 %v661_v45  ;;  %860 = vmatpush.bf16.msra.mxu2 %v661_v45  ;;  %v730_v45 = vld [vmem:[%s1210_s7 + $0x18] sm:$0xff] }
 0x1e7   : > { %v734_v46 = vpack.c.bf16 %v730_v45, %v729_v43  ;;  %v874_v45 = vld [vmem:[%s1211_s8] ss:$0 sm:$0xff] }
 0x1e9   : > { %751 = vmatpush.bf16.msra.mxu3 %v734_v46 }
 0x1ea   : > { %679 = vmatpush.bf16.msrb.mxu0 %v660_v49  ;;  %861 = vmatpush.bf16.msra.mxu2 %v660_v49  ;;  %v728_v49 = vld [vmem:[%s1210_s7 + $0x8] sm:$0xff] }
 0x252   : > { %v596_v50 = vpop.f32.mrf.mxu1 }
 0x253   : > { %v597_v51 = vadd.f32 %v872_v48, %v596_v50 }
 0x255   : > { %v610_v52 = vmul.f32 0.044715, %v597_v51  ;;  %v606_v15 = vmul.f32 0.5, %v597_v51 }
 0x257   : > { %v614_v53 = vmul.f32 %v610_v52, %v597_v51 }
 0x259   : > { %v618_v54 = vmul.f32 %v614_v53, %v597_v51 }
 0x25a   : > { %v598_v55 = vpop.f32.mrf.mxu1 }
 0x25b   : > { %v599_v56 = vadd.f32 %v872_v48, %v598_v55  ;;  %v622_v57 = vadd.f32 %v618_v54, %v597_v51 }
 0x25d   : > { %v611_v58 = vmul.f32 0.044715, %v599_v56  ;;  %v626_v62 = vmul.f32 0.7978846, %v622_v57  ;;  %v607_v16 = vmul.f32 0.5, %v599_v56 }
 0x25f   : > { %v615_v59 = vmul.f32 %v611_v58, %v599_v56  ;;  %901 = vtanh.f32 %v626_v62 }
 0x261   : > { %v619_v63 = vmul.f32 %v615_v59, %v599_v56 }
 0x262   : > { %v601_v0 = vpop.f32.mrf.mxu1 }
 0x263   : > { %v602_v1 = vadd.f32 %v872_v48, %v601_v0  ;;  %v623_v2 = vadd.f32 %v619_v63, %v599_v56 }
 0x265   : > { %v612_v3 = vmul.f32 0.044715, %v602_v1  ;;  %v627_v20 = vmul.f32 0.7978846, %v623_v2  ;;  %v902_v4 = vpop.eup %901  ;;  %v608_v38 = vmul.f32 0.5, %v602_v1 }
 0x266   : > { %v634_v10 = vadd.f32 1.0, %v902_v4 }
 0x267   : > { %903 = vtanh.f32 %v627_v20  ;;  %v616_v30 = vmul.f32 %v612_v3, %v602_v1 }
 0x268   : > { %v638_v22 = vmul.f32 %v634_v10, %v606_v15 }
 0x269   : > { %v620_v5 = vmul.f32 %v616_v30, %v602_v1 }
 0x26a   : > { %v603_v6 = vpop.f32.mrf.mxu1 }
 0x26b   : > { %v604_v7 = vadd.f32 %v872_v48, %v603_v6  ;;  %v624_v8 = vadd.f32 %v620_v5, %v602_v1  ;;  %v727_v48 = vld [vmem:[%s1210_s7] sm:$0xff] }
 0x26c   : > { %v733_v50 = vpack.c.bf16 %v728_v49, %v727_v48 }
 0x26d   : > { %v904_v11 = vpop.eup %903  ;;  %v613_v14 = vmul.f32 0.044715, %v604_v7  ;;  %v628_v19 = vmul.f32 0.7978846, %v624_v8  ;;  %v609_v39 = vmul.f32 0.5, %v604_v7 }
 0x26e   : > { %v635_v21 = vadd.f32 1.0, %v904_v11  ;;  %752 = vmatpush.bf16.msra.mxu3 %v733_v50 }
 0x26f   : > { %v617_v29 = vmul.f32 %v613_v14, %v604_v7  ;;  %905 = vtanh.f32 %v628_v19 }
 0x270   : > { %v639_v23 = vmul.f32 %v635_v21, %v607_v16 }
 0x271   : > { %v621_v24 = vmul.f32 %v617_v29, %v604_v7 }
 0x272   : > { %v658_v25 = vpack.c.bf16 %v639_v23, %v638_v22 }
 0x273   : > { %v625_v26 = vadd.f32 %v621_v24, %v604_v7 }
 0x274   : > { %680 = vmatmul.bf16.vlgmr.msrb.gmra.mxu0 %v658_v25 }
 0x275   : > { %v629_v31 = vmul.f32 0.7978846, %v625_v26  ;;  %v906_v32 = vpop.eup %905 }
 0x276   : > { %v636_v36 = vadd.f32 1.0, %v906_v32 }
 0x277   : > { %907 = vtanh.f32 %v629_v31 }
 0x278   : > { %v640_v41 = vmul.f32 %v636_v36, %v608_v38 }
 0x27d   : > { %v908_v37 = vpop.eup %907 }
 0x27e   : > { %v637_v40 = vadd.f32 1.0, %v908_v37 }
 0x280   : > { %v641_v42 = vmul.f32 %v637_v40, %v609_v39 }
 0x282   : > { %v659_v44 = vpack.c.bf16 %v641_v42, %v640_v41 }
 0x284   : > { %685 = vmatmul.bf16.vlgmr.msra.gmra.mxu2 %v659_v44 }
 0x2f1   : > { %v681_v51 = vpop.f32.mrf.mxu0 }
 0x2f2   : > { %v682_v52 = vadd.f32 %v873_v47, %v681_v51 }
 0x2f4   : > { %v695_v53 = vmul.f32 0.044715, %v682_v52  ;;  %v691_v8 = vmul.f32 0.5, %v682_v52 }
 0x2f6   : > { %v699_v54 = vmul.f32 %v695_v53, %v682_v52 }
 0x2f8   : > { %v703_v55 = vmul.f32 %v699_v54, %v682_v52 }
 0x2f9   : > { %v683_v56 = vpop.f32.mrf.mxu0 }
 0x2fa   : > { %v684_v57 = vadd.f32 %v873_v47, %v683_v56  ;;  %v707_v58 = vadd.f32 %v703_v55, %v682_v52 }
 0x2fc   : > { %v696_v59 = vmul.f32 0.044715, %v684_v57  ;;  %v711_v63 = vmul.f32 0.7978846, %v707_v58  ;;  %v692_v10 = vmul.f32 0.5, %v684_v57 }
 0x2fe   : > { %v700_v62 = vmul.f32 %v696_v59, %v684_v57  ;;  %909 = vtanh.f32 %v711_v63 }
 0x300   : > { %v704_v0 = vmul.f32 %v700_v62, %v684_v57 }
 0x302   : > { %v708_v1 = vadd.f32 %v704_v0, %v684_v57 }
 0x304   : > { %v712_v2 = vmul.f32 0.7978846, %v708_v1  ;;  %v910_v20 = vpop.eup %909 }
 0x305   : > { %v719_v5 = vadd.f32 1.0, %v910_v20 }
 0x306   : > { %911 = vtanh.f32 %v712_v2 }
 0x307   : > { %v686_v3 = vpop.f32.mrf.mxu2  ;;  %v723_v16 = vmul.f32 %v719_v5, %v691_v8 }
 0x308   : > { %v687_v30 = vadd.f32 %v873_v47, %v686_v3 }
 0x30a   : > { %v697_v4 = vmul.f32 0.044715, %v687_v30  ;;  %v693_v39 = vmul.f32 0.5, %v687_v30 }
 0x30c   : > { %v912_v6 = vpop.eup %911  ;;  %v701_v7 = vmul.f32 %v697_v4, %v687_v30 }
 0x30d   : > { %v720_v11 = vadd.f32 1.0, %v912_v6 }
 0x30e   : > { %v705_v14 = vmul.f32 %v701_v7, %v687_v30 }
 0x30f   : > { %v688_v15 = vpop.f32.mrf.mxu2  ;;  %v724_v21 = vmul.f32 %v720_v11, %v692_v10 }
 0x310   : > { %v689_v29 = vadd.f32 %v873_v47, %v688_v15  ;;  %v709_v19 = vadd.f32 %v705_v14, %v687_v30 }
 0x311   : > { %v731_v22 = vpack.c.bf16 %v724_v21, %v723_v16 }
 0x312   : > { %v698_v23 = vmul.f32 0.044715, %v689_v29  ;;  %v713_v25 = vmul.f32 0.7978846, %v709_v19  ;;  %v694_v40 = vmul.f32 0.5, %v689_v29 }
 0x313   : > { %848 = vmatmul.msk.bf16.vlgmr.msra.gmra.mxu3 %vm580_vm11, %v731_v22 }
 0x314   : > { %v702_v24 = vmul.f32 %v698_v23, %v689_v29  ;;  %913 = vtanh.f32 %v713_v25 }
 0x316   : > { %v706_v26 = vmul.f32 %v702_v24, %v689_v29 }
 0x318   : > { %v710_v31 = vadd.f32 %v706_v26, %v689_v29 }
 0x31a   : > { %v714_v32 = vmul.f32 0.7978846, %v710_v31  ;;  %v914_v36 = vpop.eup %913 }
 0x31b   : > { %v721_v37 = vadd.f32 1.0, %v914_v36 }
 0x31c   : > { %915 = vtanh.f32 %v714_v32 }
 0x31d   : > { %v725_v42 = vmul.f32 %v721_v37, %v693_v39 }
 0x322   : > { %v916_v38 = vpop.eup %915 }
 0x323   : > { %v722_v41 = vadd.f32 1.0, %v916_v38 }
 0x325   : > { %v726_v44 = vmul.f32 %v722_v41, %v694_v40 }
 0x327   : > { %v732_v43 = vpack.c.bf16 %v726_v44, %v725_v42 }
 0x329   : > { %849 = vmatmul.msk.bf16.gmra.mxu3 %vm580_vm11, %v732_v43 }
 0x396   : > { %v754_v46 = vpop.f32.mrf.mxu3 }
 0x397   : > { %v755_v47 = vadd.f32 %v874_v45, %v754_v46 }
 0x399   : > { %v764_v48 = vadd.f32 %v755_v47, %v1068_v60 }
 0x39b   : > { %v768_v49 = vmul.f32 %v764_v48, %v1038_v9 }
 0x39d   : > { %v772_v50 = vadd.f32 %v768_v49, %v998_v18 }
 0x39e   : > { %v756_v51 = vpop.f32.mrf.mxu3 }
 0x39f   : > { %776 = vst.msk [vmem:[%s332_s23] sm:$0xff] %vm338_vm0, %v772_v50  ;;  %v757_v52 = vadd.f32 %v874_v45, %v756_v51 }
 0x3a1   : > { %v765_v53 = vadd.f32 %v757_v52, %v1071_v61 }
 0x3a3   : > { %v769_v54 = vmul.f32 %v765_v53, %v1049_v34 }
 0x3a5   : > { %v773_v55 = vadd.f32 %v769_v54, %v1014_v28 }
 0x3a7   : > { %777 = vst.msk [vmem:[%s332_s23 + $0x8] sm:$0xff] %vm338_vm0, %v773_v55 }
 0x3ac   : > { %v759_v9 = vpop.f32.mrf.mxu3 }
 0x3ad   : > { %v760_v60 = vadd.f32 %v874_v45, %v759_v9 }
 0x3af   : > { %v766_v56 = vadd.f32 %v760_v60, %v1086_v13 }
 0x3b1   : > { %v770_v57 = vmul.f32 %v766_v56, %v1053_v35 }
 0x3b3   : > { %v774_v18 = vadd.f32 %v770_v57, %v996_v17 }
 0x3b4   : > { %v761_v58 = vpop.f32.mrf.mxu3 }
 0x3b5   : > { %778 = vst.msk [vmem:[%s332_s23 + $0x10] sm:$0xff] %vm338_vm0, %v774_v18  ;;  %v762_v59 = vadd.f32 %v874_v45, %v761_v58 }
 0x3b7   : > { %v767_v61 = vadd.f32 %v762_v59, %v1083_v12 }
 0x3b9   : > { %v771_v34 = vmul.f32 %v767_v61, %v1047_v33 }
 0x3bb   : > { %v775_v28 = vadd.f32 %v771_v34, %v1012_v27 }
 0x3bd   : > { %779 = vst.msk [vmem:[%s332_s23 + $0x18] sm:$0xff] %vm338_vm0, %v775_v28 }
 0x3be PF: > { %s19_s30 = sadd.s32 1, %s923_s30  }
 0x3bf   : > { %p16_p4 = scmp.ge.s32.totalorder %s19_s30, 4  }
 0x3c1   :  { %18 = sbr.rel (!%p16_p4) target bundleno = 1 (0x1), region = 86 }

// kernel: score_network_forward.7
= control target key start
LH: loop header
LB: loop body
LE: loop exit
PB: predicated region body
PF: predicated region fallthrough
CT: control target
= control target key end

     0   :  { %s2650_s6 = smov 1   ;;  %s2651_s10 = smov 2   ;;  %s3185_s0 = inlined_call_operand.smem [shape: u32[32], index: -1, kind: input, shape index: {}] }
   0x1   :  { %s2697_s5 = sld [smem:[%s3185_s0]]   ;;  %s2652_s14 = smov 3  }
   0x2   :  { %s2702_s9 = sld [smem:[%s3185_s0 + %s2650_s6]]   ;;  %s2653_s18 = smov 4  }
   0x3   :  { %s2707_s13 = sld [smem:[%s3185_s0 + %s2651_s10]]   ;;  %s2654_s22 = smov 5  }
   0x4   :  { %s2712_s17 = sld [smem:[%s3185_s0 + %s2652_s14]]   ;;  %s2655_s26 = smov 6  }
   0x5   :  { %s2717_s21 = sld [smem:[%s3185_s0 + %s2653_s18]]   ;;  %s2656_s30 = smov 7  }
   0x6   :  { %s2722_s25 = sld [smem:[%s3185_s0 + %s2654_s22]]   ;;  %s2657_s4 = smov 8  }
   0x7   :  { %s2727_s29 = sld [smem:[%s3185_s0 + %s2655_s26]]   ;;  %s2658_s10 = smov 9  }
   0x8   :  { %s2732_s3 = sld [smem:[%s3185_s0 + %s2656_s30]]   ;;  %s2659_s15 = smov 10  }
   0x9   :  { %s2737_s8 = sld [smem:[%s3185_s0 + %s2657_s4]]   ;;  %s2660_s20 = smov 11  }
   0xa   :  { %s2742_s14 = sld [smem:[%s3185_s0 + %s2658_s10]]   ;;  %s2661_s26 = smov 12  }
   0xb   :  { %s2747_s19 = sld [smem:[%s3185_s0 + %s2659_s15]]   ;;  %s2662_s1 = smov 13  }
   0xc   :  { %s2752_s24 = sld [smem:[%s3185_s0 + %s2660_s20]]   ;;  %s2663_s7 = smov 14  }
   0xd   :  { %s2757_s30 = sld [smem:[%s3185_s0 + %s2661_s26]]   ;;  %s2664_s15 = smov 15  }
   0xe   :  { %s2762_s6 = sld [smem:[%s3185_s0 + %s2662_s1]]   ;;  %s2665_s22 = smov 16  }
   0xf   :  { %s2767_s12 = sld [smem:[%s3185_s0 + %s2663_s7]]   ;;  %s2666_s28 = smov 17  }
  0x10   :  { %s2772_s20 = sld [smem:[%s3185_s0 + %s2664_s15]]   ;;  %s2667_s7 = smov 18  }
  0x11   :  { %s2777_s27 = sld [smem:[%s3185_s0 + %s2665_s22]]   ;;  %s2668_s15 = smov 19  }
  0x12   :  { %3191 = sst [smem:[#allocation2_spill]] %s2752_s24  ;;  %s2669_s22 = smov 20  }
  0x13   :  { %s2782_s4 = sld [smem:[%s3185_s0 + %s2666_s28]]   ;;  %s2670_s28 = smov 21  }
  0x14   :  { %3192 = sst [smem:[#allocation3_spill]] %s2762_s6 }
  0x15   :  { %s2787_s6 = sld [smem:[%s3185_s0 + %s2667_s7]]   ;;  %s2671_s7 = smov 22  }
  0x16   :  { %3193 = sst [smem:[#allocation4_spill]] %s2772_s20 }
  0x17   :  { %3194 = sst [smem:[#allocation5_spill]] %s2777_s27 }
  0x18   :  { %s2792_s20 = sld [smem:[%s3185_s0 + %s2668_s15]]   ;;  %s2672_s15 = smov 23  }
  0x19   :  { %3195 = sst [smem:[#allocation6_spill]] %s2782_s4 }
  0x1a   :  { %s2797_s27 = sld [smem:[%s3185_s0 + %s2669_s22]]   ;;  %s2673_s22 = smov 24  }
  0x1b   :  { %s2802_s4 = sld [smem:[%s3185_s0 + %s2670_s28]]   ;;  %s2674_s28 = smov 25  }
  0x1c   :  { %s2807_s24 = sld [smem:[%s3185_s0 + %s2671_s7]]   ;;  %s2675_s7 = smov 26  }
  0x1e   :  { %3196 = sst [smem:[#allocation7_spill]] %s2792_s20 }
  0x1f   :  { %s2812_s20 = sld [smem:[%s3185_s0 + %s2672_s15]]   ;;  %s2676_s15 = smov 27  }
  0x20   :  { %3197 = sst [smem:[#allocation8_spill]] %s2797_s27 }
  0x21   :  { %3198 = sst [smem:[#allocation9_spill]] %s2802_s4 }
  0x22   :  { %3199 = sst [smem:[#allocation10_spill]] %s2807_s24 }
  0x23   :  { %s2817_s27 = sld [smem:[%s3185_s0 + %s2673_s22]]   ;;  %s2677_s22 = smov 28  }
  0x24   :  { %s2822_s4 = sld [smem:[%s3185_s0 + %s2674_s28]]   ;;  %s2678_s28 = smov 29  }
  0x25   :  { %3200 = sst [smem:[#allocation11_spill]] %s2812_s20 }
  0x26   :  { %s2827_s24 = sld [smem:[%s3185_s0 + %s2675_s7]]   ;;  %s2679_s7 = smov 30  }
  0x27   :  { %s2832_s20 = sld [smem:[%s3185_s0 + %s2676_s15]]   ;;  %s2680_s15 = smov 31  }
  0x29   :  { %3201 = sst [smem:[#allocation12_spill]] %s2817_s27 }
  0x2a   :  { %3202 = sst [smem:[#allocation13_spill]] %s2822_s4 }
  0x2b   :  { %s2837_s27 = sld [smem:[%s3185_s0 + %s2677_s22]]   ;;  %s2854_s22 = smov 0  }
  0x2c   :  { %3203 = sst [smem:[#allocation14_spill]] %s2827_s24 }
  0x2d   :  { %3204 = sst [smem:[#allocation15_spill]] %s2832_s20 }
  0x2e   :  { %s2842_s4 = sld [smem:[%s3185_s0 + %s2678_s28]]  }
  0x2f   :  { %s2847_s24 = sld [smem:[%s3185_s0 + %s2679_s7]]  }
  0x30   :  { %s2852_s20 = sld [smem:[%s3185_s0 + %s2680_s15]]  }
  0x31 LB: > { %s2438_s23 = sadd.s32 4294967295, %s2648_s22   ;;  %p2442_p0 = scmp.ge.s32.totalorder %s2648_s22, 1  ;;  %s2648_s22 = sphi %s2854_s22, %s74_s22  }
  0x32   : > { %p882_p1 = scmp.lt.s32.totalorder %s2648_s22, 3 }
  0x34   : > { %p883_p2 = pnand %p2442_p0, %p882_p1 }
  0x35   : > { %p972_p3 = scmp.lt.s32.totalorder (!%p883_p2), %s2438_s23, 1  ;;  %s2681_s1 = smov (!%p883_p2), 96  }
  0x36   : > { %886 = sbr.rel (%p883_p2) target bundleno = 3971 (0xf83), region = 140  ;;  %s2682_s2 = smov (!%p883_p2), 120  }
  0x37   : > { %s2683_s7 = smov (!%p883_p2), 104   ;;  %s2684_s10 = smov (!%p883_p2), 112  }
  0x38   : > { %s2685_s11 = smov (!%p883_p2), 88   ;;  %s2686_s15 = smov (!%p883_p2), 72  }
  0x39   : > { %s2687_s16 = smov (!%p883_p2), 80   ;;  %s3205_s18 = sld [smem:[#allocation2_spill]] (!%p883_p2) }
  0x3b   : > { %v1046_v0 = vld [vmem:[%s2717_s21 + $0x10] sm:$0xff]  ;;  %v1047_v1 = vld [vmem:[%s2717_s21 + $0x18] sm:$0xff]  ;;  %v1044_v2 = vld [vmem:[%s2717_s21] sm:$0xff]  ;;  %s3220_s23 = smov (!%p972_p3, %s2438_s23), 1  ;;  %vm1006_vm0 = vcmask 261120   ;;  %vm1156_vm1 = vcmask 64512  }
  0x3c   : > { %v1050_v3 = vpack.c.bf16 %v1047_v1, %v1046_v0  ;;  %v1045_v4 = vld [vmem:[%s2717_s21 + $0x8] sm:$0xff]  ;;  %v997_v5 = vld [vmem:[%s2707_s13 + $0x10] sm:$0xff]  ;;  %v998_v6 = vld [vmem:[%s2707_s13 + $0x18] sm:$0xff]  ;;  %s2870_s0 = sshll.u32 %s3220_s23, 4  ;;  %vm1179_vm2 = vcmask 130048   ;;  %vm1301_vm3 = vcmask 1043456  }
  0x3d   : > { %v1001_v7 = vpack.c.bf16 %v998_v6, %v997_v5  ;;  %v995_v8 = vld [vmem:[%s2707_s13] sm:$0xff]  ;;  %v996_v9 = vld [vmem:[%s2707_s13 + $0x8] sm:$0xff]  ;;  %v1049_v10 = vpack.c.bf16 %v1045_v4, %v1044_v2  ;;  %s981_s26 = scalar_lea.vmem %s2702_s9, %s2870_s0  ;;  %s976_s28 = scalar_lea.vmem %s2697_s5, %s2870_s0  ;;  %v1092_v23 = vld [vmem:[%s2727_s29 + $0x10] sm:$0xff]  ;;  %vm2274_vm11 = vcmask 31744  }
  0x3e   : > { %1064 = vmatpush.bf16.msra.mxu1 %v1050_v3  ;;  %v1000_v11 = vpack.c.bf16 %v996_v9, %v995_v8  ;;  %v1042_v12 = vld [vmem:[%s981_s26] sm:$0xff]  ;;  %v1043_v13 = vld [vmem:[%s981_s26 + $0x8] sm:$0xff]  ;;  %v1093_v24 = vld [vmem:[%s2727_s29 + $0x18] sm:$0xff]  ;;  %s3206_s23 = sld [smem:[#allocation4_spill]] }
  0x3f   : > { %1016 = vmatpush.bf16.msra.mxu0 %v1001_v7  ;;  %v993_v14 = vld [vmem:[%s976_s28] sm:$0xff]  ;;  %v1048_v15 = vpack.c.bf16 %v1043_v13, %v1042_v12  ;;  %v994_v16 = vld [vmem:[%s976_s28 + $0x8] sm:$0xff]  ;;  %v1107_v26 = vpack.c.bf16 %v1093_v24, %v1092_v23  ;;  %v1097_v30 = vld [vmem:[%s2737_s8 + $0x10] sm:$0xff]  ;;  %s3207_s26 = sld [smem:[#allocation3_spill]] }
  0x40   : > { %v999_v17 = vpack.c.bf16 %v994_v16, %v993_v14  ;;  %v2538_v18 = vld [vmem:[%s2722_s25] ss:$0 sm:$0xff]  ;;  %v1091_v28 = vld [vmem:[%s2727_s29 + $0x8] sm:$0xff]  ;;  %v1098_v31 = vld [vmem:[%s2737_s8 + $0x18] sm:$0xff]  ;;  %s3208_s28 = sld [smem:[#allocation8_spill]] }
  0x41   : > { %v2539_v21 = vld [vmem:[%s2712_s17] ss:$0 sm:$0xff]  ;;  %1120 = vmatpush.bf16.msra.mxu2 %v1107_v26  ;;  %v1130_v35 = vpack.c.bf16 %v1098_v31, %v1097_v30  ;;  %v1096_v36 = vld [vmem:[%s2737_s8 + $0x8] sm:$0xff] }
  0x42   : > { %1065 = vmatpush.bf16.msra.mxu1 %v1049_v10  ;;  %v1090_v27 = vld [vmem:[%s2727_s29] sm:$0xff] }
  0x43   : > { %1017 = vmatpush.bf16.msra.mxu0 %v1000_v11  ;;  %v1095_v32 = vld [vmem:[%s2737_s8] sm:$0xff]  ;;  %v1106_v34 = vpack.c.bf16 %v1091_v28, %v1090_v27  ;;  %1146 = vmatpush.bf16.msra.mxu3 %v1130_v35 }
  0x44   : > { %v1129_v39 = vpack.c.bf16 %v1096_v36, %v1095_v32 }
  0x45   : > { %2452 = vmatmul.msk.bf16.vlgmr.msra.gmra.mxu1 %vm1006_vm0, %v1048_v15  ;;  %1121 = vmatpush.bf16.msra.mxu2 %v1106_v34 }
  0x46   : > { %2451 = vmatmul.msk.bf16.vlgmr.msra.gmra.mxu0 %vm1006_vm0, %v999_v17  ;;  %v2541_v17 = vld [vmem:[%s2742_s14] ss:$0 sm:$0xff] }
  0x47   : > { %1147 = vmatpush.bf16.msra.mxu3 %v1129_v39 }
  0xc2   : > { %v1067_v19 = vpop.f32.mrf.mxu1 }
  0xc3   : > { %v1068_v20 = vadd.f32 %v2538_v18, %v1067_v19  ;;  %v1019_v22 = vpop.f32.mrf.mxu0 }
  0xc4   : > { %v1020_v29 = vadd.f32 %v2539_v21, %v1019_v22 }
  0xc5   : > { %v1074_v25 = vmul.f32 0.044715, %v1068_v20  ;;  %v1072_v2 = vmul.f32 0.5, %v1068_v20 }
  0xc6   : > { %v1026_v37 = vmul.f32 0.044715, %v1020_v29  ;;  %v1024_v63 = vmul.f32 0.5, %v1020_v29 }
  0xc7   : > { %v1076_v33 = vmul.f32 %v1074_v25, %v1068_v20 }
  0xc8   : > { %v1028_v41 = vmul.f32 %v1026_v37, %v1020_v29 }
  0xc9   : > { %v1078_v38 = vmul.f32 %v1076_v33, %v1068_v20 }
  0xca   : > { %v1069_v40 = vpop.f32.mrf.mxu1  ;;  %v1030_v45 = vmul.f32 %v1028_v41, %v1020_v29 }
  0xcb   : > { %v1070_v42 = vadd.f32 %v2538_v18, %v1069_v40  ;;  %v1080_v43 = vadd.f32 %v1078_v38, %v1068_v20  ;;  %v1021_v44 = vpop.f32.mrf.mxu0 }
  0xcc   : > { %v1022_v47 = vadd.f32 %v2539_v21, %v1021_v44  ;;  %v1032_v49 = vadd.f32 %v1030_v45, %v1020_v29  ;;  %v2540_v21 = vld [vmem:[%s2732_s3] ss:$0 sm:$0xff] }
  0xcd   : > { %v1075_v46 = vmul.f32 0.044715, %v1070_v42  ;;  %v1082_v48 = vmul.f32 0.7978846, %v1080_v43  ;;  %v1073_v3 = vmul.f32 0.5, %v1070_v42 }
  0xce   : > { %v1027_v51 = vmul.f32 0.044715, %v1022_v47  ;;  %v1034_v52 = vmul.f32 0.7978846, %v1032_v49  ;;  %v1025_v5 = vmul.f32 0.5, %v1022_v47 }
  0xcf   : > { %v1077_v50 = vmul.f32 %v1075_v46, %v1070_v42  ;;  %2552 = vtanh.f32 %v1082_v48  ;;  %v1100_v46 = vld [vmem:[%s2747_s19] sm:$0xff] }
  0xd0   : > { %v1029_v54 = vmul.f32 %v1027_v51, %v1022_v47  ;;  %2554 = vtanh.f32 %v1034_v52 }
  0xd1   : > { %v1079_v53 = vmul.f32 %v1077_v50, %v1070_v42 }
  0xd2   : > { %v1031_v56 = vmul.f32 %v1029_v54, %v1022_v47 }
  0xd3   : > { %v1081_v55 = vadd.f32 %v1079_v53, %v1070_v42 }
  0xd4   : > { %v1033_v58 = vadd.f32 %v1031_v56, %v1022_v47  ;;  %v1225_v47 = vpack.c.bf16 %v1100_v46, %v1100_v46 }
  0xd5   : > { %v1083_v57 = vmul.f32 0.7978846, %v1081_v55  ;;  %v2553_v60 = vpop.eup %2552 }
  0xd6   : > { %v1035_v59 = vmul.f32 0.7978846, %v1033_v58  ;;  %v2555_v61 = vpop.eup %2554  ;;  %v1086_v62 = vadd.f32 1.0, %v2553_v60  ;;  %v1323_v50 = vsel %vm1301_vm3, %v1225_v47, 0 }
  0xd7   : > { %2556 = vtanh.f32 %v1083_v57  ;;  %v1038_v0 = vadd.f32 1.0, %v2555_v61 }
  0xd8   : > { %2558 = vtanh.f32 %v1035_v59  ;;  %v2888_v7 = vmul.f32 %v1086_v62, %v1072_v2 }
  0xd9   : > { %v2892_v10 = vmul.f32 %v1038_v0, %v1024_v63 }
  0xdd   : > { %v2557_v1 = vpop.eup %2556 }
  0xde   : > { %v1087_v4 = vadd.f32 1.0, %v2557_v1  ;;  %v2559_v6 = vpop.eup %2558 }
  0xdf   : > { %v1039_v9 = vadd.f32 1.0, %v2559_v6 }
  0xe0   : > { %v2890_v8 = vmul.f32 %v1087_v4, %v1073_v3 }
  0xe1   : > { %v2898_v12 = vmul.f32 %v1039_v9, %v1025_v5 }
  0xe2   : > { %v2896_v11 = vpack.c.bf16 %v2890_v8, %v2888_v7 }
  0xe3   : > { %v2904_v13 = vpack.c.bf16 %v2898_v12, %v2892_v10 }
  0xe4   : > { %1135 = vrot.lane.b32.xlu0 %v2896_v11, %s2681_s1 }
  0xe5   : > { %2453 = vmatmul.msk.bf16.vlgmr.msra.gmra.mxu2 %vm1006_vm0, %v2904_v13 }
 0x156   : > { %v1136_v14 = vpop.permute.xlu0 %1135 }
 0x157   : > { %2454 = vmatmul.msk.bf16.vlgmr.msra.gmra.mxu3 %vm1006_vm0, %v1136_v14 }
 0x168   : > { %v1123_v16 = vpop.f32.mrf.mxu2 }
 0x169   : > { %v1124_v25 = vadd.f32 %v2540_v21, %v1123_v16 }
 0x170   : > { %v1125_v23 = vpop.f32.mrf.mxu2 }
 0x171   : > { %v1126_v26 = vadd.f32 %v2540_v21, %v1125_v23 }
 0x173   : > { %v1154_v27 = vpack.c.bf16 %v1126_v26, %v1124_v25 }
 0x1da   : > { %v1149_v15 = vpop.f32.mrf.mxu3 }
 0x1db   : > { %v1150_v19 = vadd.f32 %v2541_v17, %v1149_v15 }
 0x1e2   : > { %v1151_v18 = vpop.f32.mrf.mxu3 }
 0x1e3   : > { %v1152_v20 = vadd.f32 %v2541_v17, %v1151_v18 }
 0x1e5   : > { %v2911_v22 = vpack.c.bf16 %v1152_v20, %v1150_v19 }
 0x1e7   : > { %v1161_v24 = vsel %vm1156_vm1, %v2911_v22, 0 }
 0x1e8   : > { %1170 = vmatpush.bf16.xpose.msrb.mxu0 %v1161_v24 }
 0x1ef   : > { %2455 = vmatmul.msk.bf16.vlgmr.msrb.gmra.mxu0 %vm1156_vm1, %v1154_v27 }
 0x26c   : > { %v1172_v28 = vpop.f32.mrf.mxu0 }
 0x26d   : > { %v1177_v29 = vmul.f32 0.35355338, %v1172_v28 }
 0x26f   : > { %v1180_v30 = vsel %vm1179_vm2, %v1177_v29, -inf }
 0x270   : > { %1181 = vmax.xlane.f32.xlu0 %v1180_v30 }
 0x274   : > { %v1174_v31 = vpop.f32.mrf.mxu0 }
 0x275   : > { %v1178_v32 = vmul.f32 0.35355338, %v1174_v31 }
 0x277   : > { %v1183_v33 = vsel %vm1179_vm2, %v1178_v32, -inf }
 0x278   : > { %1184 = vmax.xlane.f32.xlu1 %v1183_v33 }
 0x2e3   : > { %v1182_v34 = vpop.xlane.xlu0 %1181 }
 0x2e4   : > { %v1186_v35 = vsub.f32 %v1177_v29, %v1182_v34 }
 0x2e6   : > { %v1188_v36 = vmul.f32 1.442695, %v1186_v35 }
 0x2e8   : > { %2560 = vpow2.f32 %v1188_v36 }
 0x2eb   : > { %v1185_v37 = vpop.xlane.xlu1 %1184 }
 0x2ec   : > { %v1187_v38 = vsub.f32 %v1178_v32, %v1185_v37 }
 0x2ee   : > { %v2561_v39 = vpop.eup %2560  ;;  %v1190_v40 = vmul.f32 1.442695, %v1187_v38 }
 0x2ef   : > { %v1192_v41 = vsel %vm1179_vm2, %v2561_v39, 0.0 }
 0x2f0   : > { %2562 = vpow2.f32 %v1190_v40  ;;  %1193 = vadd.xlane.f32.xlu1 %v1192_v41 }
 0x2f6   : > { %v2563_v42 = vpop.eup %2562 }
 0x2f7   : > { %v1195_v43 = vsel %vm1179_vm2, %v2563_v42, 0.0 }
 0x2f8   : > { %1196 = vadd.xlane.f32.xlu2 %v1195_v43 }
 0x309   : > { %1229 = vrot.lane.b32.xlu1 %v2911_v22, %s2682_s2 }
 0x310   : > { %1204 = vrot.lane.b32.xlu2 %v2911_v22, %s2681_s1 }
 0x311   : > { %1434 = vrot.lane.b32.xlu1 %v2911_v22, %s2683_s7 }
 0x318   : > { %1227 = vrot.lane.b32.xlu2 %v1154_v27, %s2682_s2 }
 0x319   : > { %1432 = vrot.lane.b32.xlu1 %v1154_v27, %s2683_s7 }
 0x320   : > { %1341 = vrot.lane.b32.xlu2 %v2911_v22, %s2684_s10 }
 0x328   : > { %1339 = vrot.lane.b32.xlu2 %v1154_v27, %s2684_s10 }
 0x363   : > { %v1194_v44 = vpop.xlane.xlu1 %1193 }
 0x364   : > { %2564 = vrcp.f32 %v1194_v44 }
 0x36a   : > { %v2565_v48 = vpop.eup %2564 }
 0x36b   : > { %v1197_v45 = vpop.xlane.xlu2 %1196  ;;  %v1200_v51 = vmul.f32 %v2565_v48, %v2561_v39 }
 0x36c   : > { %2566 = vrcp.f32 %v1197_v45 }
 0x372   : > { %v2567_v49 = vpop.eup %2566 }
 0x373   : > { %v1201_v52 = vmul.f32 %v2567_v49, %v2563_v42  ;;  %v1205_v53 = vpop.permute.xlu2 %1204 }
 0x374   : > { %1217 = vmatpush.bf16.msrb.mxu1 %v1205_v53 }
 0x375   : > { %v1202_v54 = vpack.c.bf16 %v1201_v52, %v1200_v51 }
 0x377   : > { %2456 = vmatmul.msk.bf16.vlgmr.msrb.gmra.mxu1 %vm1179_vm2, %v1202_v54 }
 0x378   : > { %1332 = vmatpush.bf16.msra.mxu1 %v1323_v50 }
 0x37b   : > { %v1228_v55 = vpop.permute.xlu2 %1227  ;;  %v1230_v56 = vpop.permute.xlu1 %1229 }
 0x37c   : > { %v1235_v57 = vsel %vm1156_vm1, %v1230_v56, 0 }
 0x37d   : > { %1244 = vmatpush.bf16.xpose.msrb.mxu2 %v1235_v57 }
 0x383   : > { %v1342_v58 = vpop.permute.xlu2 %1341  ;;  %v1435_v59 = vpop.permute.xlu1 %1434 }
 0x384   : > { %v1347_v60 = vsel %vm1156_vm1, %v1342_v58, 0  ;;  %v1440_v61 = vsel %vm1156_vm1, %v1435_v59, 0  ;;  %2457 = vmatmul.msk.bf16.vlgmr.msrb.gmra.mxu2 %vm1156_vm1, %v1228_v55 }
 0x385   : > { %1356 = vmatpush.bf16.xpose.msra.mxu2 %v1347_v60  ;;  %1449 = vmatpush.bf16.xpose.msrb.mxu1 %v1440_v61 }
 0x38b   : > { %v1340_v62 = vpop.permute.xlu2 %1339  ;;  %v1433_v5 = vpop.permute.xlu1 %1432 }
 0x394   : > { %2461 = vmatmul.msk.bf16.vlgmr.msra.gmra.mxu2 %vm1156_vm1, %v1340_v62 }
 0x3f4   : > { %v1219_v63 = vpop.f32.mrf.mxu1 }
 0x3fc   : > { %v1221_v0 = vpop.f32.mrf.mxu1 }
 0x3fd   : > { %v1224_v1 = vpack.c.bf16 %v1221_v0, %v1219_v63 }
 0x3ff   : > { %2460 = vmatmul.msk.bf16.vlgmr.msra.gmra.mxu1 %vm1156_vm1, %v1224_v1 }
 0x407   : > { %v1246_v2 = vpop.f32.mrf.mxu2 }
 0x408   : > { %v1251_v3 = vmul.f32 0.35355338, %v1246_v2 }
 0x40a   : > { %v1253_v4 = vsel %vm1179_vm2, %v1251_v3, -inf }
 0x40b   : > { %1254 = vmax.xlane.f32.xlu0 %v1253_v4 }
 0x40f   : > { %v1248_v6 = vpop.f32.mrf.mxu2  ;;  %2464 = vmatmul.msk.bf16.vlgmr.msrb.gmra.mxu1 %vm1156_vm1, %v1433_v5  ;;  %v1101_v5 = vld [vmem:[%s2747_s19 + $0x8] sm:$0xff] }
 0x410   : > { %v1252_v9 = vmul.f32 0.35355338, %v1248_v6  ;;  %v1297_v6 = vpack.c.bf16 %v1101_v5, %v1101_v5 }
 0x412   : > { %v1256_v14 = vsel %vm1179_vm2, %v1252_v9, -inf }
 0x413   : > { %1257 = vmax.xlane.f32.xlu2 %v1256_v14 }
 0x417   : > { %v1358_v15 = vpop.f32.mrf.mxu2 }
 0x418   : > { %v1363_v16 = vmul.f32 0.35355338, %v1358_v15 }
 0x41a   : > { %v1365_v17 = vsel %vm1179_vm2, %v1363_v16, -inf }
 0x41b   : > { %1366 = vmax.xlane.f32.xlu0 %v1365_v17  ;;  %v1677_v17 = vld [vmem:[%s2757_s30 + $0x18] sm:$0xff] }
 0x41f   : > { %v1360_v18 = vpop.f32.mrf.mxu2 }
 0x420   : > { %v1364_v19 = vmul.f32 0.35355338, %v1360_v18 }
 0x422   : > { %v1368_v20 = vsel %vm1179_vm2, %v1364_v19, -inf }
 0x423   : > { %1369 = vmax.xlane.f32.xlu0 %v1368_v20 }
 0x42b   : > { %1276 = vrot.lane.b32.xlu2 %v2911_v22, %s2685_s11 }
 0x433   : > { %1717 = vrot.lane.b32.xlu2 %v2904_v13, %s2681_s1 }
 0x47c   : > { %v2949_v21 = vpop.f32.mrf.mxu1 }
 0x47e   : > { %v1255_v23 = vpop.xlane.xlu0 %1254 }
 0x47f   : > { %v1259_v24 = vsub.f32 %v1251_v3, %v1255_v23 }
 0x481   : > { %v1261_v25 = vmul.f32 1.442695, %v1259_v24  ;;  %v1675_v24 = vld [vmem:[%s2757_s30 + $0x8] sm:$0xff] }
 0x483   : > { %2568 = vpow2.f32 %v1261_v25 }
 0x484   : > { %v2951_v26 = vpop.f32.mrf.mxu1 }
 0x486   : > { %v1258_v27 = vpop.xlane.xlu2 %1257 }
 0x487   : > { %v1260_v32 = vsub.f32 %v1252_v9, %v1258_v27  ;;  %v1303_v9 = vsel %vm1301_vm3, %v1297_v6, 0 }
 0x488   : > { %1312 = vmatpush.bf16.msra.mxu0 %v1303_v9 }
 0x489   : > { %v2569_v28 = vpop.eup %2568  ;;  %v1263_v35 = vmul.f32 1.442695, %v1260_v32 }
 0x48a   : > { %v1265_v29 = vsel %vm1179_vm2, %v2569_v28, 0.0 }
 0x48b   : > { %1266 = vadd.xlane.f32.xlu0 %v1265_v29  ;;  %2570 = vpow2.f32 %v1263_v35 }
 0x48c   : > { %v1451_v30 = vpop.f32.mrf.mxu1 }
 0x48d   : > { %v1456_v31 = vmul.f32 0.35355338, %v1451_v30 }
 0x48e   : > { %v1367_v33 = vpop.xlane.xlu0 %1366  ;;  %v1277_v34 = vpop.permute.xlu2 %1276 }
 0x48f   : > { %1289 = vmatpush.bf16.msrb.mxu3 %v1277_v34  ;;  %v1458_v13 = vsel %vm1179_vm2, %v1456_v31, -inf  ;;  %v1371_v38 = vsub.f32 %v1363_v16, %v1367_v33  ;;  %v1676_v16 = vld [vmem:[%s2757_s30 + $0x10] sm:$0xff] }
 0x490   : > { %1459 = vmax.xlane.f32.xlu1 %v1458_v13  ;;  %v1690_v23 = vpack.c.bf16 %v1677_v17, %v1676_v16 }
 0x491   : > { %v1373_v43 = vmul.f32 1.442695, %v1371_v38  ;;  %v2571_v44 = vpop.eup %2570  ;;  %v1103_v38 = vld [vmem:[%s2747_s19 + $0x18] sm:$0xff] }
 0x492   : > { %v1268_v45 = vsel %vm1179_vm2, %v2571_v44, 0.0 }
 0x494   : > { %v1453_v36 = vpop.f32.mrf.mxu1 }
 0x495   : > { %v1457_v37 = vmul.f32 0.35355338, %v1453_v36 }
 0x496   : > { %v1370_v39 = vpop.xlane.xlu0 %1369 }
 0x497   : > { %v1372_v40 = vsub.f32 %v1364_v19, %v1370_v39  ;;  %v1461_v41 = vsel %vm1179_vm2, %v1457_v37, -inf  ;;  %v1502_v39 = vpack.c.bf16 %v1103_v38, %v1103_v38 }
 0x498   : > { %1462 = vmax.xlane.f32.xlu0 %v1461_v41  ;;  %v1681_v41 = vld [vmem:[%s2767_s12 + $0x10] sm:$0xff] }
 0x499   : > { %v1375_v42 = vmul.f32 1.442695, %v1372_v40  ;;  %v1507_v40 = vsel %vm1301_vm3, %v1502_v39, 0 }
 0x49b   : > { %2572 = vpow2.f32 %v1375_v42  ;;  %v1682_v42 = vld [vmem:[%s2767_s12 + $0x18] sm:$0xff] }
 0x49c   : > { %2574 = vpow2.f32 %v1373_v43  ;;  %v1102_v43 = vld [vmem:[%s2747_s19 + $0x10] sm:$0xff] }
 0x4a0   : > { %1269 = vadd.xlane.f32.xlu0 %v1268_v45  ;;  %v1409_v45 = vpack.c.bf16 %v1102_v43, %v1102_v43 }
 0x4a1   : > { %v2957_v46 = vpop.eup %2572 }
 0x4a2   : > { %v1380_v47 = vsel %vm1179_vm2, %v2957_v46, 0.0  ;;  %v2575_v48 = vpop.eup %2574 }
 0x4a3   : > { %1381 = vadd.xlane.f32.xlu1 %v1380_v47  ;;  %v1377_v49 = vsel %vm1179_vm2, %v2575_v48, 0.0  ;;  %v1680_v47 = vld [vmem:[%s2767_s12 + $0x8] sm:$0xff] }
 0x4a8   : > { %1378 = vadd.xlane.f32.xlu0 %v1377_v49 }
 0x4fe   : > { %v1267_v50 = vpop.xlane.xlu0 %1266 }
 0x503   : > { %v1460_v51 = vpop.xlane.xlu1 %1459 }
 0x504   : > { %v1464_v52 = vsub.f32 %v1456_v31, %v1460_v51 }
 0x506   : > { %v1466_v53 = vmul.f32 1.442695, %v1464_v52 }
 0x508   : > { %2576 = vpow2.f32 %v1466_v53 }
 0x50b   : > { %v1463_v54 = vpop.xlane.xlu0 %1462 }
 0x50c   : > { %v1465_v55 = vsub.f32 %v1457_v37, %v1463_v54 }
 0x50e   : > { %v2577_v56 = vpop.eup %2576  ;;  %v1468_v57 = vmul.f32 1.442695, %v1465_v55  ;;  %v1718_v55 = vpop.permute.xlu2 %1717 }
 0x50f   : > { %v1470_v58 = vsel %vm1179_vm2, %v2577_v56, 0.0 }
 0x510   : > { %2578 = vpow2.f32 %v1468_v57  ;;  %1471 = vadd.xlane.f32.xlu0 %v1470_v58  ;;  %v1585_v57 = vld [vmem:[%s2787_s6 + $0x10] sm:$0xff]  ;;  %v1586_v58 = vld [vmem:[%s2787_s6 + $0x18] sm:$0xff] }
 0x511   : > { %2580 = vrcp.f32 %v1267_v50 }
 0x513   : > { %v1270_v59 = vpop.xlane.xlu0 %1269 }
 0x514   : > { %2582 = vrcp.f32 %v1270_v59  ;;  %v1607_v59 = vpack.c.bf16 %v1586_v58, %v1585_v57 }
 0x516   : > { %v2579_v60 = vpop.eup %2578  ;;  %v1382_v4 = vpop.xlane.xlu1 %1381 }
 0x517   : > { %v1473_v61 = vsel %vm1179_vm2, %v2579_v60, 0.0  ;;  %v2581_v62 = vpop.eup %2580 }
 0x518   : > { %1474 = vadd.xlane.f32.xlu1 %v1473_v61  ;;  %v1273_v0 = vmul.f32 %v2581_v62, %v2569_v28  ;;  %v1584_v61 = vld [vmem:[%s2787_s6 + $0x8] sm:$0xff] }
 0x51a   : > { %v2583_v63 = vpop.eup %2582 }
 0x51b   : > { %v1274_v1 = vmul.f32 %v2583_v63, %v2571_v44  ;;  %v1379_v3 = vpop.xlane.xlu0 %1378  ;;  %v1712_v44 = vpack.c.bf16 %v1682_v42, %v1681_v41 }
 0x51d   : > { %v1275_v2 = vpack.c.bf16 %v1274_v1, %v1273_v0 }
 0x51f   : > { %2458 = vmatmul.msk.bf16.vlgmr.msrb.gmra.mxu3 %vm1179_vm2, %v1275_v2 }
 0x524   : > { %1481 = vrot.lane.b32.xlu0 %v2911_v22, %s2686_s15 }
 0x531   : > { %1388 = vrot.lane.b32.xlu1 %v2911_v22, %s2687_s16  ;;  %v1674_v22 = vld [vmem:[%s2757_s30] sm:$0xff] }
 0x532   : > { %v1689_v29 = vpack.c.bf16 %v1675_v24, %v1674_v22 }
 0x583   : > { %v1472_v14 = vpop.xlane.xlu0 %1471 }
 0x58b   : > { %v1475_v15 = vpop.xlane.xlu1 %1474 }
 0x58c   : > { %2584 = vrcp.f32 %v1475_v15 }
 0x58d   : > { %2586 = vrcp.f32 %v1472_v14 }
 0x58e   : > { %2588 = vrcp.f32 %v1379_v3 }
 0x58f   : > { %2590 = vrcp.f32 %v1382_v4  ;;  %v2543_v4 = vld [vmem:[%s3205_s18] ss:$0 sm:$0xff]  ;;  %s3209_s18 = sld [smem:[#allocation7_spill]] }
 0x592   : > { %v2585_v18 = vpop.eup %2584 }
 0x593   : > { %v2587_v19 = vpop.eup %2586  ;;  %v1479_v20 = vmul.f32 %v2585_v18, %v2579_v60  ;;  %v1583_v60 = vld [vmem:[%s2787_s6] sm:$0xff] }
 0x594   : > { %v1478_v25 = vmul.f32 %v2587_v19, %v2577_v56  ;;  %v2589_v30 = vpop.eup %2588  ;;  %v1606_v62 = vpack.c.bf16 %v1584_v61, %v1583_v60 }
 0x595   : > { %v2591_v31 = vpop.eup %2590  ;;  %v1385_v32 = vmul.f32 %v2589_v30, %v2575_v48 }
 0x596   : > { %v1482_v27 = vpop.permute.xlu0 %1481  ;;  %v1480_v28 = vpack.c.bf16 %v1479_v20, %v1478_v25  ;;  %v1386_v34 = vmul.f32 %v2591_v31, %v2957_v46  ;;  %v1414_v46 = vsel %vm1301_vm3, %v1409_v45, 0 }
 0x597   : > { %1494 = vmatpush.bf16.msrb.mxu2 %v1482_v27  ;;  %1423 = vmatpush.bf16.msrb.mxu0 %v1414_v46 }
 0x598   : > { %v1387_v35 = vpack.c.bf16 %v1386_v34, %v1385_v32 }
 0x59a   : > { %2465 = vmatmul.msk.bf16.vlgmr.msrb.gmra.mxu2 %vm1179_vm2, %v1480_v28 }
 0x59b   : > { %1703 = vmatpush.bf16.msra.mxu2 %v1690_v23  ;;  %v2544_v23 = vld [vmem:[%s3206_s23] ss:$0 sm:$0xff]  ;;  %s3210_s23 = sld [smem:[#allocation5_spill]] }
 0x59f   : > { %1704 = vmatpush.bf16.msra.mxu2 %v1689_v29  ;;  %v2688_v29 = vmov 32.0  }
 0x5a0   : > { %2592 = vrcp.f32 %v2688_v29  ;;  %v1595_v29 = vld [vmem:[%s3208_s28 + $0x38] sm:$0xff] }
 0x5a2   : > { %v1291_v33 = vpop.f32.mrf.mxu3 }
 0x5a3   : > { %v1389_v13 = vpop.permute.xlu1 %1388 }
 0x5a4   : > { %1401 = vmatpush.bf16.msra.mxu3 %v1389_v13 }
 0x5a6   : > { %v2593_v30 = vpop.eup %2592 }
 0x5a7   : > { %2462 = vmatmul.msk.bf16.vlgmr.msra.gmra.mxu3 %vm1179_vm2, %v1387_v35  ;;  %v1539_v31 = vmul.f32 32.0, %v2593_v30  ;;  %vm1543_vm4 = vweird.f32 %v2593_v30 }
 0x5a8   : > { %1516 = vmatpush.bf16.msrb.mxu3 %v1507_v40 }
 0x5a9   : > { %v1540_v32 = vsub.f32 1.0, %v1539_v31  ;;  %v1592_v31 = vld [vmem:[%s3208_s28 + $0x20] sm:$0xff] }
 0x5aa   : > { %v1293_v36 = vpop.f32.mrf.mxu3  ;;  %2468 = vmatmul.msk.bf16.vlgmr.msra.gmra.mxu2 %vm1006_vm0, %v2896_v11  ;;  %v1679_v11 = vld [vmem:[%s2767_s12] sm:$0xff] }
 0x5ab   : > { %v1296_v37 = vpack.c.bf16 %v1293_v36, %v1291_v33  ;;  %v1711_v48 = vpack.c.bf16 %v1680_v47, %v1679_v11 }
 0x5ac   : > { %1728 = vmatpush.bf16.msra.mxu3 %v1712_v44 }
 0x5ad   : > { %2459 = vmatmul.msk.bf16.vlgmr.msra.gmra.mxu0 %vm1156_vm1, %v1296_v37 }
 0x5ae   : > { %1620 = vmatpush.bf16.msra.mxu0 %v1607_v59 }
 0x5b0   : > { %1729 = vmatpush.bf16.msra.mxu3 %v1711_v48 }
 0x5b2   : > { %1621 = vmatpush.bf16.msra.mxu0 %v1606_v62 }
 0x61d   : > { %v1496_v49 = vpop.f32.mrf.mxu2 }
 0x625   : > { %v1498_v50 = vpop.f32.mrf.mxu2 }
 0x626   : > { %v1501_v51 = vpack.c.bf16 %v1498_v50, %v1496_v49 }
 0x628   : > { %2466 = vmatmul.msk.bf16.vlgmr.msrb.gmra.mxu3 %vm1156_vm1, %v1501_v51 }
 0x62a   : > { %v1403_v52 = vpop.f32.mrf.mxu3  ;;  %v1314_v56 = vpop.f32.mrf.mxu0 }
 0x62b   : > { %v1335_v1 = vadd.f32 %v2949_v21, %v1314_v56 }
 0x632   : > { %v1405_v53 = vpop.f32.mrf.mxu3  ;;  %v1316_v63 = vpop.f32.mrf.mxu0 }
 0x633   : > { %v1408_v54 = vpack.c.bf16 %v1405_v53, %v1403_v52  ;;  %v1337_v14 = vadd.f32 %v2951_v26, %v1316_v63 }
 0x635   : > { %2463 = vmatmul.msk.bf16.vlgmr.msrb.gmra.mxu0 %vm1156_vm1, %v1408_v54 }
 0x638   : > { %2469 = vmatmul.msk.bf16.vlgmr.msra.gmra.mxu3 %vm1006_vm0, %v1718_v55 }
 0x6ab   : > { %v1518_v0 = vpop.f32.mrf.mxu3 }
 0x6b2   : > { %v1425_v2 = vpop.f32.mrf.mxu0 }
 0x6b3   : > { %v1430_v3 = vadd.f32 %v1425_v2, %v1335_v1  ;;  %v1520_v5 = vpop.f32.mrf.mxu3  ;;  %v1706_v1 = vpop.f32.mrf.mxu2 }
 0x6b5   : > { %v1523_v6 = vadd.f32 %v1518_v0, %v1430_v3 }
 0x6b7   : > { %v1528_v9 = vadd.f32 %v2543_v4, %v1523_v6 }
 0x6b9   : > { %v3000_v15 = vadd.f32 %v1528_v9, %v2892_v10 }
 0x6ba   : > { %v1427_v16 = vpop.f32.mrf.mxu0 }
 0x6bb   : > { %v1431_v17 = vadd.f32 %v1427_v16, %v1337_v14  ;;  %v1731_v18 = vpop.f32.mrf.mxu3  ;;  %v1532_v19 = vsel %vm1006_vm0, %v3000_v15, 0.0  ;;  %v1708_v3 = vpop.f32.mrf.mxu2  ;;  %v1602_v14 = vld [vmem:[%s3208_s28 + $0x70] sm:$0xff]  ;;  %v1603_v16 = vld [vmem:[%s3208_s28 + $0x78] sm:$0xff] }
 0x6bc   : > { %1533 = vadd.xlane.f32.xlu2 %v1532_v19  ;;  %v1732_v25 = vadd.f32 %v2544_v23, %v1731_v18  ;;  %v1600_v18 = vld [vmem:[%s3208_s28 + $0x60] sm:$0xff]  ;;  %v1601_v19 = vld [vmem:[%s3208_s28 + $0x68] sm:$0xff] }
 0x6bd   : > { %v1524_v21 = vadd.f32 %v1520_v5, %v1431_v17  ;;  %v1654_v17 = vpack.c.bf16 %v1603_v16, %v1602_v14 }
 0x6bf   : > { %v1529_v20 = vadd.f32 %v2543_v4, %v1524_v21  ;;  %v2542_v4 = vld [vmem:[%s3207_s26] ss:$0 sm:$0xff]  ;;  %1658 = vmatpush.bf16.msra.mxu1 %v1654_v17  ;;  %v1653_v21 = vpack.c.bf16 %v1601_v19, %v1600_v18  ;;  %s3217_s26 = sld [smem:[#allocation11_spill]] }
 0x6c0   : > { %v1709_v5 = vadd.f32 %v2542_v4, %v1708_v3  ;;  %v1707_v6 = vadd.f32 %v2542_v4, %v1706_v1 }
 0x6c1   : > { %v3006_v22 = vadd.f32 %v1529_v20, %v2898_v12  ;;  %v1541_v12 = vmul.f32 %v2593_v30, %v1540_v32  ;;  %v1598_v20 = vld [vmem:[%s3208_s28 + $0x50] sm:$0xff]  ;;  %v1593_v32 = vld [vmem:[%s3208_s28 + $0x28] sm:$0xff] }
 0x6c2   : > { %v3026_v9 = vpack.c.bf16 %v1709_v5, %v1707_v6 }
 0x6c3   : > { %v1733_v24 = vpop.f32.mrf.mxu3  ;;  %v1535_v26 = vsel %vm1006_vm0, %v3006_v22, 0.0  ;;  %v1542_v33 = vadd.f32 %v2593_v30, %v1541_v12  ;;  %1659 = vmatpush.bf16.msra.mxu1 %v1653_v21  ;;  %v1649_v12 = vpack.c.bf16 %v1593_v32, %v1592_v31 }
 0x6c4   : > { %v1734_v10 = vadd.f32 %v2544_v23, %v1733_v24  ;;  %1536 = vadd.xlane.f32.xlu0 %v1535_v26  ;;  %v1599_v23 = vld [vmem:[%s3208_s28 + $0x58] sm:$0xff]  ;;  %v1596_v26 = vld [vmem:[%s3208_s28 + $0x40] sm:$0xff] }
 0x6c5   : > { %v3014_v34 = vsel %vm1543_vm4, %v2593_v30, %v1542_v33  ;;  %v1652_v24 = vpack.c.bf16 %v1599_v23, %v1598_v20  ;;  %v1590_v33 = vld [vmem:[%s3208_s28 + $0x10] sm:$0xff] }
 0x6c6   : > { %v3010_v27 = vpack.c.bf16 %v1734_v10, %v1732_v25  ;;  %v1597_v25 = vld [vmem:[%s3208_s28 + $0x48] sm:$0xff] }
 0x6c7   : > { %1660 = vmatpush.bf16.msra.mxu1 %v1652_v24  ;;  %v1651_v10 = vpack.c.bf16 %v1597_v25, %v1596_v26  ;;  %v1684_v24 = vld [vmem:[%s3210_s23] sm:$0xff] }
 0x6c8   : > { %v1742_v28 = vsel %vm1156_vm1, %v3010_v27, 0  ;;  %v1805_v26 = vpack.c.bf16 %v1684_v24, %v1684_v24 }
 0x6c9   : > { %1751 = vmatpush.bf16.xpose.msrb.mxu0 %v1742_v28  ;;  %v1594_v28 = vld [vmem:[%s3208_s28 + $0x30] sm:$0xff] }
 0x6ca   : > { %v1650_v30 = vpack.c.bf16 %v1595_v29, %v1594_v28  ;;  %v1902_v25 = vsel %vm1301_vm3, %v1805_v26, 0 }
 0x6cb   : > { %1661 = vmatpush.bf16.msra.mxu1 %v1651_v10 }
 0x6cf   : > { %1662 = vmatpush.bf16.msra.mxu1 %v1650_v30 }
 0x6d3   : > { %1663 = vmatpush.bf16.msra.mxu1 %v1649_v12 }
 0x72f   : > { %v1534_v13 = vpop.xlane.xlu2 %1533 }
 0x730   : > { %v1545_v35 = vmul.f32 %v3014_v34, %v1534_v13  ;;  %v1591_v13 = vld [vmem:[%s3208_s28 + $0x18] sm:$0xff] }
 0x732   : > { %v1547_v36 = vsub.f32 %v3000_v15, %v1545_v35  ;;  %v1648_v35 = vpack.c.bf16 %v1591_v13, %v1590_v33 }
 0x734   : > { %v1549_v37 = vmul.f32 %v1547_v36, %v1547_v36  ;;  %1664 = vmatpush.bf16.msra.mxu1 %v1648_v35 }
 0x736   : > { %v1551_v38 = vsel %vm1006_vm0, %v1549_v37, 0.0  ;;  %v1589_v37 = vld [vmem:[%s3208_s28 + $0x8] sm:$0xff] }
 0x737   : > { %1552 = vadd.xlane.f32.xlu1 %v1551_v38  ;;  %v1537_v39 = vpop.xlane.xlu0 %1536  ;;  %v2545_v38 = vld [vmem:[%s3209_s18] ss:$0 sm:$0xff]  ;;  %s3218_s18 = sld [smem:[#allocation13_spill]] }
 0x738   : > { %v1546_v40 = vmul.f32 %v3014_v34, %v1537_v39 }
 0x73a   : > { %v1548_v41 = vsub.f32 %v3006_v22, %v1546_v40 }
 0x73c   : > { %v1550_v42 = vmul.f32 %v1548_v41, %v1548_v41 }
 0x73e   : > { %v1554_v43 = vsel %vm1006_vm0, %v1550_v42, 0.0 }
 0x73f   : > { %1555 = vadd.xlane.f32.xlu2 %v1554_v43 }
 0x7aa   : > { %v1553_v44 = vpop.xlane.xlu1 %1552 }
 0x7ab   : > { %v1557_v45 = vmul.f32 %v1553_v44, %v3014_v34 }
 0x7ad   : > { %v1559_v46 = vadd.f32 1e-05, %v1557_v45 }
 0x7af   : > { %2594 = vrsqrt.f32 %v1559_v46  ;;  %vm1567_vm6 = vweird.f32 %v1559_v46 }
 0x7b2   : > { %v1556_v11 = vpop.xlane.xlu2 %1555 }
 0x7b3   : > { %v1558_v47 = vmul.f32 %v1556_v11, %v3014_v34 }
 0x7b5   : > { %v2595_v48 = vpop.eup %2594  ;;  %v1560_v49 = vadd.f32 1e-05, %v1558_v47 }
 0x7b6   : > { %v1562_v50 = vmul.f32 %v2595_v48, %v1559_v46  ;;  %vm1568_vm5 = vweird.f32 %v2595_v48 }
 0x7b7   : > { %2596 = vrsqrt.f32 %v1560_v49  ;;  %vm1569_vm8 = vmor %vm1567_vm6, %vm1568_vm5  ;;  %vm1577_vm9 = vweird.f32 %v1560_v49 }
 0x7b8   : > { %v1563_v51 = vmul.f32 %v2595_v48, %v1562_v50 }
 0x7ba   : > { %v1564_v52 = vmul.f32 0.5, %v1563_v51 }
 0x7bc   : > { %v1565_v54 = vsub.f32 1.5, %v1564_v52 }
 0x7bd   : > { %v2597_v53 = vpop.eup %2596 }
 0x7be   : > { %v1572_v55 = vmul.f32 %v2597_v53, %v1560_v49  ;;  %v1566_v57 = vmul.f32 %v2595_v48, %v1565_v54  ;;  %vm1578_vm7 = vweird.f32 %v2597_v53 }
 0x7bf   : > { %vm1579_vm10 = vmor %vm1577_vm9, %vm1578_vm7 }
 0x7c0   : > { %v1573_v56 = vmul.f32 %v2597_v53, %v1572_v55  ;;  %v1570_v60 = vsel %vm1569_vm8, %v2595_v48, %v1566_v57 }
 0x7c1   : > { %v1581_v63 = vmul.f32 %v1570_v60, %v1547_v36  ;;  %v1588_v36 = vld [vmem:[%s3208_s28] sm:$0xff] }
 0x7c2   : > { %v1574_v58 = vmul.f32 0.5, %v1573_v56  ;;  %v1647_v39 = vpack.c.bf16 %v1589_v37, %v1588_v36 }
 0x7c4   : > { %v1575_v59 = vsub.f32 1.5, %v1574_v58  ;;  %1665 = vmatpush.bf16.msra.mxu1 %v1647_v39 }
 0x7c6   : > { %v1576_v61 = vmul.f32 %v2597_v53, %v1575_v59 }
 0x7c8   : > { %v1580_v62 = vsel %vm1579_vm10, %v2597_v53, %v1576_v61 }
 0x7c9   : > { %v1582_v0 = vmul.f32 %v1580_v62, %v1548_v41 }
 0x7cb   : > { %v1605_v2 = vpack.c.bf16 %v1582_v0, %v1581_v63 }
 0x7cd   : > { %2467 = vmatmul.msk.bf16.vlgmr.msra.gmra.mxu0 %vm1006_vm0, %v1605_v2 }
 0x7dd   : > { %2470 = vmatmul.msk.bf16.vlgmr.msrb.gmra.mxu0 %vm1156_vm1, %v3026_v9 }
 0x84a   : > { %v1623_v40 = vpop.f32.mrf.mxu0 }
 0x84b   : > { %v1624_v41 = vadd.f32 %v2545_v38, %v1623_v40 }
 0x84d   : > { %v1630_v42 = vmul.f32 0.044715, %v1624_v41  ;;  %v1628_v62 = vmul.f32 0.5, %v1624_v41 }
 0x84f   : > { %v1632_v43 = vmul.f32 %v1630_v42, %v1624_v41 }
 0x851   : > { %v1634_v44 = vmul.f32 %v1632_v43, %v1624_v41 }
 0x852   : > { %v1625_v45 = vpop.f32.mrf.mxu0 }
 0x853   : > { %v1636_v46 = vadd.f32 %v1634_v44, %v1624_v41  ;;  %v1626_v11 = vadd.f32 %v2545_v38, %v1625_v45 }
 0x855   : > { %v1631_v47 = vmul.f32 0.044715, %v1626_v11  ;;  %v1638_v48 = vmul.f32 0.7978846, %v1636_v46  ;;  %v1629_v63 = vmul.f32 0.5, %v1626_v11 }
 0x857   : > { %v1633_v49 = vmul.f32 %v1631_v47, %v1626_v11  ;;  %2598 = vtanh.f32 %v1638_v48 }
 0x859   : > { %v1635_v50 = vmul.f32 %v1633_v49, %v1626_v11 }
 0x85a   : > { %v1753_v51 = vpop.f32.mrf.mxu0 }
 0x85b   : > { %v1637_v52 = vadd.f32 %v1635_v50, %v1626_v11  ;;  %v1758_v53 = vmul.f32 0.35355338, %v1753_v51 }
 0x85d   : > { %v1639_v54 = vmul.f32 0.7978846, %v1637_v52  ;;  %v1760_v55 = vsel %vm1179_vm2, %v1758_v53, -inf  ;;  %v2599_v56 = vpop.eup %2598 }
 0x85e   : > { %1761 = vmax.xlane.f32.xlu0 %v1760_v55  ;;  %v1642_v59 = vadd.f32 1.0, %v2599_v56 }
 0x85f   : > { %2600 = vtanh.f32 %v1639_v54 }
 0x860   : > { %v1644_v1 = vmul.f32 %v1642_v59, %v1628_v62 }
 0x862   : > { %v1755_v57 = vpop.f32.mrf.mxu0 }
 0x863   : > { %v1759_v58 = vmul.f32 0.35355338, %v1755_v57 }
 0x865   : > { %v2601_v60 = vpop.eup %2600  ;;  %v1763_v61 = vsel %vm1179_vm2, %v1759_v58, -inf }
 0x866   : > { %1764 = vmax.xlane.f32.xlu2 %v1763_v61  ;;  %v1643_v0 = vadd.f32 1.0, %v2601_v60 }
 0x868   : > { %v1645_v2 = vmul.f32 %v1643_v0, %v1629_v63 }
 0x86a   : > { %v1646_v3 = vpack.c.bf16 %v1645_v2, %v1644_v1 }
 0x86c   : > { %1666 = vmatmul.bf16.vlgmr.msra.gmra.mxu1 %v1646_v3 }
 0x87e   : > { %1784 = vrot.lane.b32.xlu2 %v3010_v27, %s2681_s1  ;;  %s3211_s1 = sld [smem:[#allocation14_spill]] }
 0x886   : > { %2013 = vrot.lane.b32.xlu2 %v3010_v27, %s2683_s7 }
 0x88e   : > { %1918 = vrot.lane.b32.xlu2 %v3026_v9, %s2684_s10 }
 0x8d1   : > { %v1762_v4 = vpop.xlane.xlu0 %1761 }
 0x8d2   : > { %v1766_v5 = vsub.f32 %v1758_v53, %v1762_v4 }
 0x8d4   : > { %v1768_v6 = vmul.f32 1.442695, %v1766_v5 }
 0x8d6   : > { %2602 = vpow2.f32 %v1768_v6 }
 0x8d9   : > { %v1765_v14 = vpop.xlane.xlu2 %1764 }
 0x8da   : > { %v1767_v16 = vsub.f32 %v1759_v58, %v1765_v14 }
 0x8dc   : > { %v2603_v17 = vpop.eup %2602  ;;  %v1770_v18 = vmul.f32 1.442695, %v1767_v16 }
 0x8dd   : > { %v1772_v19 = vsel %vm1179_vm2, %v2603_v17, 0.0 }
 0x8de   : > { %2604 = vpow2.f32 %v1770_v18  ;;  %1773 = vadd.xlane.f32.xlu1 %v1772_v19 }
 0x8e1   : > { %v1785_v21 = vpop.permute.xlu2 %1784 }
 0x8e2   : > { %1797 = vmatpush.bf16.msrb.mxu2 %v1785_v21 }
 0x8e4   : > { %v2605_v20 = vpop.eup %2604 }
 0x8e5   : > { %v1775_v23 = vsel %vm1179_vm2, %v2605_v20, 0.0 }
 0x8e6   : > { %1776 = vadd.xlane.f32.xlu0 %v1775_v23  ;;  %1911 = vmatpush.bf16.msra.mxu2 %v1902_v25 }
 0x8e9   : > { %v2014_v12 = vpop.permute.xlu2 %2013 }
 0x8f1   : > { %v1919_v39 = vpop.permute.xlu2 %1918 }
 0x8f7   : > { %1809 = vrot.lane.b32.xlu1 %v3010_v27, %s2682_s2 }
 0x8fa   : > { %1807 = vrot.lane.b32.xlu0 %v3026_v9, %s2682_s2  ;;  %s3212_s2 = sld [smem:[#allocation9_spill]] }
 0x8ff   : > { %2011 = vrot.lane.b32.xlu1 %v3026_v9, %s2683_s7  ;;  %v2019_v9 = vsel %vm1156_vm1, %v2014_v12, 0  ;;  %s3213_s7 = sld [smem:[#allocation15_spill]] }
 0x902   : > { %1920 = vrot.lane.b32.xlu0 %v3010_v27, %s2684_s10  ;;  %s986_s10 = scalar_lea.vmem %s2847_s24, %s2870_s0 }
 0x951   : > { %v1774_v10 = vpop.xlane.xlu1 %1773 }
 0x952   : > { %2606 = vrcp.f32 %v1774_v10 }
 0x958   : > { %v2607_v29 = vpop.eup %2606 }
 0x959   : > { %v1777_v28 = vpop.xlane.xlu0 %1776  ;;  %v1780_v31 = vmul.f32 %v2607_v29, %v2603_v17 }
 0x95a   : > { %2608 = vrcp.f32 %v1777_v28 }
 0x960   : > { %v2609_v30 = vpop.eup %2608 }
 0x961   : > { %v1781_v32 = vmul.f32 %v2609_v30, %v2605_v20 }
 0x963   : > { %v1782_v33 = vpack.c.bf16 %v1781_v32, %v1780_v31 }
 0x965   : > { %2471 = vmatmul.msk.bf16.vlgmr.msrb.gmra.mxu2 %vm1179_vm2, %v1782_v33 }
 0x966   : > { %2028 = vmatpush.bf16.xpose.msrb.mxu2 %v2019_v9 }
 0x969   : > { %v1810_v13 = vpop.permute.xlu1 %1809 }
 0x96a   : > { %v1815_v35 = vsel %vm1156_vm1, %v1810_v13, 0 }
 0x96b   : > { %1824 = vmatpush.bf16.xpose.msrb.mxu3 %v1815_v35 }
 0x96c   : > { %v1808_v36 = vpop.permute.xlu0 %1807 }
 0x971   : > { %v2012_v48 = vpop.permute.xlu1 %2011 }
 0x972   : > { %2472 = vmatmul.msk.bf16.vlgmr.msrb.gmra.mxu3 %vm1156_vm1, %v1808_v36 }
 0x974   : > { %v1921_v37 = vpop.permute.xlu0 %1920 }
 0x975   : > { %v1926_v38 = vsel %vm1156_vm1, %v1921_v37, 0 }
 0x976   : > { %1935 = vmatpush.bf16.xpose.msra.mxu3 %v1926_v38 }
 0x982   : > { %2476 = vmatmul.msk.bf16.vlgmr.msra.gmra.mxu3 %vm1156_vm1, %v1919_v39 }
 0x9e8   : > { %v1799_v40 = vpop.f32.mrf.mxu2 }
 0x9f0   : > { %v1801_v41 = vpop.f32.mrf.mxu2 }
 0x9f1   : > { %v1804_v42 = vpack.c.bf16 %v1801_v41, %v1799_v40 }
 0x9f3   : > { %2475 = vmatmul.msk.bf16.vlgmr.msra.gmra.mxu2 %vm1156_vm1, %v1804_v42 }
 0x9f5   : > { %v1826_v43 = vpop.f32.mrf.mxu3 }
 0x9f6   : > { %v1831_v44 = vmul.f32 0.35355338, %v1826_v43 }
 0x9f8   : > { %v1833_v45 = vsel %vm1179_vm2, %v1831_v44, -inf }
 0x9f9   : > { %1834 = vmax.xlane.f32.xlu0 %v1833_v45 }
 0x9fd   : > { %v1828_v46 = vpop.f32.mrf.mxu3 }
 0x9fe   : > { %v1832_v11 = vmul.f32 0.35355338, %v1828_v46 }
 0xa00   : > { %v1836_v47 = vsel %vm1179_vm2, %v1832_v11, -inf }
 0xa01   : > { %1837 = vmax.xlane.f32.xlu1 %v1836_v47 }
 0xa03   : > { %2479 = vmatmul.msk.bf16.vlgmr.msrb.gmra.mxu2 %vm1156_vm1, %v2012_v48 }
 0xa05   : > { %v1937_v49 = vpop.f32.mrf.mxu3 }
 0xa06   : > { %v1942_v50 = vmul.f32 0.35355338, %v1937_v49  ;;  %v2248_v49 = vld [vmem:[%s3211_s1 + $0x10] sm:$0xff] }
 0xa08   : > { %v1944_v51 = vsel %vm1179_vm2, %v1942_v50, -inf }
 0xa09   : > { %1945 = vmax.xlane.f32.xlu1 %v1944_v51 }
 0xa0d   : > { %v1939_v0 = vpop.f32.mrf.mxu3 }
 0xa0e   : > { %v1943_v2 = vmul.f32 0.35355338, %v1939_v0 }
 0xa10   : > { %v1947_v16 = vsel %vm1179_vm2, %v1943_v2, -inf }
 0xa6c   : > { %v1835_v59 = vpop.xlane.xlu0 %1834 }
 0xa6d   : > { %v1839_v62 = vsub.f32 %v1831_v44, %v1835_v59  ;;  %v1685_v44 = vld [vmem:[%s3210_s23 + $0x8] sm:$0xff]  ;;  %v1667_v59 = vpop.f32.mrf.mxu1 }
 0xa6e   : > { %v1877_v45 = vpack.c.bf16 %v1685_v44, %v1685_v44 }
 0xa6f   : > { %v1841_v1 = vmul.f32 1.442695, %v1839_v62 }
 0xa70   : > { %v1882_v46 = vsel %vm1301_vm3, %v1877_v45, 0 }
 0xa71   : > { %1891 = vmatpush.bf16.msrb.mxu1 %v1882_v46 }
 0xa74   : > { %v1838_v52 = vpop.xlane.xlu1 %1837 }
 0xa75   : > { %v1840_v53 = vsub.f32 %v1832_v11, %v1838_v52 }
 0xa76   : > { %v3078_v54 = vpop.f32.mrf.mxu2 }
 0xa77   : > { %v1843_v55 = vmul.f32 1.442695, %v1840_v53  ;;  %v2246_v53 = vld [vmem:[%s3211_s1] sm:$0xff] }
 0xa79   : > { %2610 = vpow2.f32 %v1843_v55  ;;  %v2247_v55 = vld [vmem:[%s3211_s1 + $0x8] sm:$0xff] }
 0xa7a   : > { %2612 = vpow2.f32 %v1841_v1  ;;  %v1669_v1 = vpop.f32.mrf.mxu1 }
 0xa7c   : > { %v1946_v3 = vpop.xlane.xlu1 %1945 }
 0xa7d   : > { %v1950_v6 = vsub.f32 %v1942_v50, %v1946_v3  ;;  %v2249_v50 = vld [vmem:[%s3211_s1 + $0x18] sm:$0xff] }
 0xa7e   : > { %v3080_v56 = vpop.f32.mrf.mxu2  ;;  %v2252_v52 = vpack.c.bf16 %v2249_v50, %v2248_v49 }
 0xa7f   : > { %v2611_v57 = vpop.eup %2610  ;;  %v1952_v17 = vmul.f32 1.442695, %v1950_v6 }
 0xa80   : > { %v1848_v58 = vsel %vm1179_vm2, %v2611_v57, 0.0  ;;  %v2613_v18 = vpop.eup %2612 }
 0xa81   : > { %1849 = vadd.xlane.f32.xlu1 %v1848_v58  ;;  %2614 = vpow2.f32 %v1952_v17  ;;  %v1845_v19 = vsel %vm1179_vm2, %v2613_v18, 0.0 }
 0xa86   : > { %v2030_v60 = vpop.f32.mrf.mxu2 }
 0xa87   : > { %v2035_v61 = vmul.f32 0.35355338, %v2030_v60  ;;  %v3087_v21 = vpop.eup %2614 }
 0xa88   : > { %v1956_v20 = vsel %vm1179_vm2, %v3087_v21, 0.0 }
 0xa89   : > { %v2037_v63 = vsel %vm1179_vm2, %v2035_v61, -inf }
 0xa8a   : > { %2038 = vmax.xlane.f32.xlu2 %v2037_v63 }
 0xa8e   : > { %v2032_v4 = vpop.f32.mrf.mxu2 }
 0xa8f   : > { %v2036_v5 = vmul.f32 0.35355338, %v2032_v4 }
 0xa91   : > { %v2040_v14 = vsel %vm1179_vm2, %v2036_v5, -inf }
 0xa92   : > { %2041 = vmax.xlane.f32.xlu0 %v2040_v14  ;;  %1948 = vmax.xlane.f32.xlu2 %v1947_v16 }
 0xa9a   : > { %1846 = vadd.xlane.f32.xlu0 %v1845_v19 }
 0xaa2   : > { %1957 = vadd.xlane.f32.xlu0 %v1956_v20 }
 0xaaa   : > { %1856 = vrot.lane.b32.xlu2 %v3010_v27, %s2685_s11  ;;  %s3214_s11 = sld [smem:[#allocation6_spill]] }
 0xab0   : > { %v2548_v44 = vld [vmem:[%s3214_s11] ss:$0 sm:$0xff] }
 0xaf4   : > { %v1850_v31 = vpop.xlane.xlu1 %1849 }
 0xafd   : > { %v2039_v23 = vpop.xlane.xlu2 %2038 }
 0xafe   : > { %v2043_v24 = vsub.f32 %v2035_v61, %v2039_v23 }
 0xb00   : > { %v2045_v26 = vmul.f32 1.442695, %v2043_v24 }
 0xb02   : > { %2616 = vpow2.f32 %v2045_v26 }
 0xb05   : > { %v2042_v25 = vpop.xlane.xlu0 %2041  ;;  %v1949_v10 = vpop.xlane.xlu2 %1948 }
 0xb06   : > { %v1951_v28 = vsub.f32 %v1943_v2, %v1949_v10  ;;  %v2044_v32 = vsub.f32 %v2036_v5, %v2042_v25  ;;  %v2546_v2 = vld [vmem:[%s3212_s2] ss:$0 sm:$0xff]  ;;  %v1687_v25 = vld [vmem:[%s3210_s23 + $0x18] sm:$0xff]  ;;  %s991_s2 = scalar_lea.vmem %s2852_s20, %s2870_s0 }
 0xb07   : > { %v1670_v5 = vadd.f32 %v2546_v2, %v1669_v1  ;;  %v1668_v14 = vadd.f32 %v2546_v2, %v1667_v59  ;;  %v2081_v10 = vpack.c.bf16 %v1687_v25, %v1687_v25 }
 0xb08   : > { %v2617_v29 = vpop.eup %2616  ;;  %v1954_v30 = vmul.f32 1.442695, %v1951_v28  ;;  %v2047_v33 = vmul.f32 1.442695, %v2044_v32  ;;  %v1686_v28 = vld [vmem:[%s3210_s23 + $0x10] sm:$0xff] }
 0xb09   : > { %v2049_v12 = vsel %vm1179_vm2, %v2617_v29, 0.0  ;;  %v1673_v17 = vadd.f32 %v1670_v5, %v3006_v22  ;;  %v1672_v19 = vadd.f32 %v1668_v14, %v3000_v15  ;;  %v2086_v22 = vsel %vm1301_vm3, %v2081_v10, 0 }
 0xb0a   : > { %2050 = vadd.xlane.f32.xlu0 %v2049_v12  ;;  %2618 = vpow2.f32 %v1954_v30  ;;  %v1988_v15 = vpack.c.bf16 %v1686_v28, %v1686_v28  ;;  %v2547_v12 = vld [vmem:[%s3213_s7] ss:$0 sm:$0xff] }
 0xb0b   : > { %2620 = vrcp.f32 %v1850_v31  ;;  %v2250_v24 = vpack.c.bf16 %v1673_v17, %v1672_v19 }
 0xb0d   : > { %v1847_v9 = vpop.xlane.xlu0 %1846  ;;  %v1857_v13 = vpop.permute.xlu2 %1856 }
 0xb0e   : > { %2622 = vrcp.f32 %v1847_v9  ;;  %1869 = vmatpush.bf16.msra.mxu0 %v1857_v13 }
 0xb0f   : > { %2624 = vpow2.f32 %v2047_v33 }
 0xb10   : > { %v2619_v35 = vpop.eup %2618 }
 0xb11   : > { %v2621_v36 = vpop.eup %2620  ;;  %v1959_v37 = vsel %vm1179_vm2, %v2619_v35, 0.0 }
 0xb12   : > { %1960 = vadd.xlane.f32.xlu1 %v1959_v37  ;;  %v1854_v39 = vmul.f32 %v2621_v36, %v2611_v57 }
 0xb14   : > { %v2623_v38 = vpop.eup %2622 }
 0xb15   : > { %v1853_v40 = vmul.f32 %v2623_v38, %v2613_v18  ;;  %v2625_v41 = vpop.eup %2624  ;;  %v1958_v11 = vpop.xlane.xlu0 %1957 }
 0xb16   : > { %v2052_v43 = vsel %vm1179_vm2, %v2625_v41, 0.0 }
 0xb17   : > { %v1855_v42 = vpack.c.bf16 %v1854_v39, %v1853_v40 }
 0xb19   : > { %2473 = vmatmul.msk.bf16.vlgmr.msra.gmra.mxu0 %vm1179_vm2, %v1855_v42 }
 0xb1a   : > { %2053 = vadd.xlane.f32.xlu1 %v2052_v43 }
 0xb1e   : > { %2060 = vrot.lane.b32.xlu0 %v3010_v27, %s2686_s15  ;;  %s3215_s15 = sld [smem:[#allocation10_spill]] }
 0xb24   : > { %v2155_v2 = vld [vmem:[%s3215_s15] sm:$0xff] }
 0xb33   : > { %1967 = vrot.lane.b32.xlu1 %v3010_v27, %s2687_s16  ;;  %v2251_v27 = vpack.c.bf16 %v2247_v55, %v2246_v53  ;;  %s3216_s16 = sld [smem:[#allocation12_spill]] }
 0xb7d   : > { %v2051_v48 = vpop.xlane.xlu0 %2050 }
 0xb7e   : > { %2626 = vrcp.f32 %v2051_v48 }
 0xb84   : > { %v2627_v58 = vpop.eup %2626 }
 0xb85   : > { %v1961_v47 = vpop.xlane.xlu1 %1960  ;;  %v2057_v61 = vmul.f32 %v2627_v58, %v2617_v29 }
 0xb8d   : > { %v2054_v51 = vpop.xlane.xlu1 %2053 }
 0xb8e   : > { %2628 = vrcp.f32 %v2054_v51 }
 0xb8f   : > { %2630 = vrcp.f32 %v1961_v47 }
 0xb90   : > { %v2061_v57 = vpop.permute.xlu0 %2060  ;;  %2632 = vrcp.f32 %v1958_v11 }
 0xb91   : > { %2073 = vmatpush.bf16.msrb.mxu3 %v2061_v57 }
 0xb94   : > { %v2629_v60 = vpop.eup %2628 }
 0xb95   : > { %2266 = vmatpush.bf16.msra.mxu3 %v2252_v52  ;;  %v2058_v62 = vmul.f32 %v2629_v60, %v2625_v41  ;;  %v2631_v6 = vpop.eup %2630 }
 0xb96   : > { %v1871_v63 = vpop.f32.mrf.mxu0  ;;  %v2633_v16 = vpop.eup %2632  ;;  %v1965_v18 = vmul.f32 %v2631_v6, %v2619_v35 }
 0xb97   : > { %v2059_v0 = vpack.c.bf16 %v2058_v62, %v2057_v61  ;;  %v1964_v20 = vmul.f32 %v2633_v16, %v3087_v21  ;;  %v1993_v21 = vsel %vm1301_vm3, %v1988_v15, 0 }
 0xb98   : > { %2002 = vmatpush.bf16.msra.mxu1 %v1993_v21 }
 0xb99   : > { %2267 = vmatpush.bf16.msra.mxu3 %v2251_v27  ;;  %v1966_v26 = vpack.c.bf16 %v1965_v18, %v1964_v20 }
 0xb9a   : > { %2480 = vmatmul.msk.bf16.vlgmr.msrb.gmra.mxu3 %vm1179_vm2, %v2059_v0  ;;  %v2158_v0 = vld [vmem:[%s3215_s15 + $0x18] sm:$0xff] }
 0xb9e   : > { %v1873_v3 = vpop.f32.mrf.mxu0 }
 0xb9f   : > { %v1876_v4 = vpack.c.bf16 %v1873_v3, %v1871_v63  ;;  %v2157_v63 = vld [vmem:[%s3215_s15 + $0x10] sm:$0xff]  ;;  %v2156_v3 = vld [vmem:[%s3215_s15 + $0x8] sm:$0xff] }
 0xba0   : > { %v2179_v1 = vpack.c.bf16 %v2158_v0, %v2157_v63 }
 0xba1   : > { %2474 = vmatmul.msk.bf16.vlgmr.msrb.gmra.mxu1 %vm1156_vm1, %v1876_v4  ;;  %v2178_v4 = vpack.c.bf16 %v2156_v3, %v2155_v2 }
 0xba2   : > { %2192 = vmatpush.bf16.msrb.mxu1 %v2179_v1 }
 0xba5   : > { %v1968_v23 = vpop.permute.xlu1 %1967 }
 0xba6   : > { %1980 = vmatpush.bf16.msrb.mxu0 %v1968_v23  ;;  %2193 = vmatpush.bf16.msrb.mxu1 %v2178_v4 }
 0xba9   : > { %2477 = vmatmul.msk.bf16.vlgmr.msrb.gmra.mxu0 %vm1179_vm2, %v1966_v26 }
 0xbaa   : > { %2483 = vmatmul.msk.bf16.vlgmr.msra.gmra.mxu3 %vm1006_vm0, %v2250_v24  ;;  %2095 = vmatpush.bf16.msra.mxu0 %v2086_v22 }
 0xc1d   : > { %v2075_v29 = vpop.f32.mrf.mxu3 }
 0xc1e   : > { %v1893_v38 = vpop.f32.mrf.mxu1 }
 0xc1f   : > { %v1914_v40 = vadd.f32 %v3078_v54, %v1893_v38  ;;  %v2170_v38 = vld [vmem:[%s3216_s16 + $0x50] sm:$0xff] }
 0xc25   : > { %v2077_v30 = vpop.f32.mrf.mxu3 }
 0xc26   : > { %v2080_v31 = vpack.c.bf16 %v2077_v30, %v2075_v29  ;;  %v1982_v32 = vpop.f32.mrf.mxu0  ;;  %v1895_v39 = vpop.f32.mrf.mxu1 }
 0xc27   : > { %v1916_v11 = vadd.f32 %v3080_v56, %v1895_v39  ;;  %v2171_v39 = vld [vmem:[%s3216_s16 + $0x58] sm:$0xff] }
 0xc28   : > { %2481 = vmatmul.msk.bf16.vlgmr.msra.gmra.mxu0 %vm1156_vm1, %v2080_v31 }
 0xc2d   : > { %v2269_v33 = vpop.f32.mrf.mxu3 }
 0xc2e   : > { %v2270_v9 = vadd.f32 %v2547_v12, %v2269_v33  ;;  %v1984_v13 = vpop.f32.mrf.mxu0  ;;  %v2174_v33 = vld [vmem:[%s3216_s16 + $0x70] sm:$0xff] }
 0xc2f   : > { %v1987_v35 = vpack.c.bf16 %v1984_v13, %v1982_v32 }
 0xc30   : > { %2275 = vst.msk [vmem:[%s986_s10] sm:$0xff] %vm2274_vm11, %v2270_v9  ;;  %v2175_v9 = vld [vmem:[%s3216_s16 + $0x78] sm:$0xff] }
 0xc31   : > { %2478 = vmatmul.msk.bf16.vlgmr.msra.gmra.mxu1 %vm1156_vm1, %v1987_v35  ;;  %v2226_v13 = vpack.c.bf16 %v2175_v9, %v2174_v33  ;;  %v2172_v35 = vld [vmem:[%s3216_s16 + $0x60] sm:$0xff] }
 0xc32   : > { %v2551_v33 = vld [vmem:[%s2842_s4] ss:$0 sm:$0xff] }
 0xc33   : > { %2230 = vmatpush.bf16.msra.mxu2 %v2226_v13 }
 0xc35   : > { %v2271_v36 = vpop.f32.mrf.mxu3 }
 0xc36   : > { %v2272_v37 = vadd.f32 %v2547_v12, %v2271_v36  ;;  %v2173_v36 = vld [vmem:[%s3216_s16 + $0x68] sm:$0xff] }
 0xc38   : > { %2276 = vst.msk [vmem:[%s986_s10 + $0x8] sm:$0xff] %vm2274_vm11, %v2272_v37  ;;  %v2225_v37 = vpack.c.bf16 %v2173_v36, %v2172_v35 }
 0xc3a   : > { %2231 = vmatpush.bf16.msra.mxu2 %v2225_v37 }
 0xca5   : > { %v2097_v41 = vpop.f32.mrf.mxu0 }
 0xcad   : > { %v2099_v51 = vpop.f32.mrf.mxu0 }
 0xcae   : > { %v2004_v42 = vpop.f32.mrf.mxu1 }
 0xcaf   : > { %v2009_v43 = vadd.f32 %v2004_v42, %v1914_v40  ;;  %v2224_v40 = vpack.c.bf16 %v2171_v39, %v2170_v38  ;;  %v2169_v42 = vld [vmem:[%s3216_s16 + $0x48] sm:$0xff] }
 0xcb1   : > { %v2102_v45 = vadd.f32 %v2097_v41, %v2009_v43  ;;  %2232 = vmatpush.bf16.msra.mxu2 %v2224_v40  ;;  %v2168_v41 = vld [vmem:[%s3216_s16 + $0x40] sm:$0xff] }
 0xcb2   : > { %v2223_v43 = vpack.c.bf16 %v2169_v42, %v2168_v41 }
 0xcb3   : > { %v2107_v46 = vadd.f32 %v2548_v44, %v2102_v45  ;;  %v2167_v45 = vld [vmem:[%s3216_s16 + $0x38] sm:$0xff] }
 0xcb5   : > { %v3130_v47 = vadd.f32 %v2107_v46, %v2888_v7  ;;  %2233 = vmatpush.bf16.msra.mxu2 %v2223_v43 }
 0xcb6   : > { %v2006_v48 = vpop.f32.mrf.mxu1 }
 0xcb7   : > { %v2010_v49 = vadd.f32 %v2006_v48, %v1916_v11  ;;  %v2111_v50 = vsel %vm1006_vm0, %v3130_v47, 0.0  ;;  %v2164_v11 = vld [vmem:[%s3216_s16 + $0x20] sm:$0xff]  ;;  %v2165_v48 = vld [vmem:[%s3216_s16 + $0x28] sm:$0xff] }
 0xcb8   : > { %2112 = vadd.xlane.f32.xlu2 %v2111_v50  ;;  %v2162_v50 = vld [vmem:[%s3216_s16 + $0x10] sm:$0xff] }
 0xcb9   : > { %v2103_v52 = vadd.f32 %v2099_v51, %v2010_v49  ;;  %v2221_v49 = vpack.c.bf16 %v2165_v48, %v2164_v11  ;;  %v2163_v51 = vld [vmem:[%s3216_s16 + $0x18] sm:$0xff] }
 0xcbb   : > { %v2108_v54 = vadd.f32 %v2548_v44, %v2103_v52  ;;  %v2166_v44 = vld [vmem:[%s3216_s16 + $0x30] sm:$0xff]  ;;  %v2220_v52 = vpack.c.bf16 %v2163_v51, %v2162_v50 }
 0xcbc   : > { %v2222_v46 = vpack.c.bf16 %v2167_v45, %v2166_v44 }
 0xcbd   : > { %v3135_v53 = vadd.f32 %v2108_v54, %v2890_v8  ;;  %v2160_v54 = vld [vmem:[%s3216_s16] sm:$0xff] }
 0xcbe   : > { %2234 = vmatpush.bf16.msra.mxu2 %v2222_v46 }
 0xcbf   : > { %v2114_v56 = vsel %vm1006_vm0, %v3135_v53, 0.0 }
 0xcc0   : > { %2115 = vadd.xlane.f32.xlu0 %v2114_v56  ;;  %v2161_v56 = vld [vmem:[%s3216_s16 + $0x8] sm:$0xff] }
 0xcc2   : > { %2235 = vmatpush.bf16.msra.mxu2 %v2221_v49 }
 0xcc6   : > { %2236 = vmatpush.bf16.msra.mxu2 %v2220_v52 }
 0xd2b   : > { %v2113_v7 = vpop.xlane.xlu2 %2112 }
 0xd2c   : > { %v2117_v55 = vmul.f32 %v2113_v7, %v3014_v34  ;;  %v2219_v7 = vpack.c.bf16 %v2161_v56, %v2160_v54 }
 0xd2e   : > { %v2119_v57 = vsub.f32 %v3130_v47, %v2117_v55  ;;  %v2549_v55 = vld [vmem:[%s3217_s26] ss:$0 sm:$0xff]  ;;  %2237 = vmatpush.bf16.msra.mxu2 %v2219_v7 }
 0xd30   : > { %v2121_v27 = vmul.f32 %v2119_v57, %v2119_v57 }
 0xd32   : > { %v2123_v58 = vsel %vm1006_vm0, %v2121_v27, 0.0 }
 0xd33   : > { %2124 = vadd.xlane.f32.xlu1 %v2123_v58  ;;  %v2116_v59 = vpop.xlane.xlu0 %2115 }
 0xd34   : > { %v2118_v8 = vmul.f32 %v2116_v59, %v3014_v34 }
 0xd36   : > { %v2120_v60 = vsub.f32 %v3135_v53, %v2118_v8 }
 0xd38   : > { %v2122_v61 = vmul.f32 %v2120_v60, %v2120_v60 }
 0xd3a   : > { %v2126_v62 = vsel %vm1006_vm0, %v2122_v61, 0.0 }
 0xd3b   : > { %2127 = vadd.xlane.f32.xlu2 %v2126_v62 }
 0xda6   : > { %v2125_v5 = vpop.xlane.xlu1 %2124 }
 0xda7   : > { %v2129_v6 = vmul.f32 %v2125_v5, %v3014_v34 }
 0xda9   : > { %v2131_v14 = vadd.f32 1e-05, %v2129_v6 }
 0xdab   : > { %2634 = vrsqrt.f32 %v2131_v14  ;;  %vm2139_vm13 = vweird.f32 %v2131_v14 }
 0xdae   : > { %v2128_v16 = vpop.xlane.xlu2 %2127 }
 0xdaf   : > { %v2130_v17 = vmul.f32 %v2128_v16, %v3014_v34 }
 0xdb1   : > { %v2635_v18 = vpop.eup %2634  ;;  %v2132_v19 = vadd.f32 1e-05, %v2130_v17 }
 0xdb2   : > { %v2134_v20 = vmul.f32 %v2635_v18, %v2131_v14  ;;  %vm2140_vm12 = vweird.f32 %v2635_v18 }
 0xdb3   : > { %2636 = vrsqrt.f32 %v2132_v19  ;;  %vm2141_vm15 = vmor %vm2139_vm13, %vm2140_vm12  ;;  %vm2149_vm1 = vweird.f32 %v2132_v19 }
 0xdb4   : > { %v2135_v23 = vmul.f32 %v2635_v18, %v2134_v20 }
 0xdb6   : > { %v2136_v24 = vmul.f32 0.5, %v2135_v23 }
 0xdb8   : > { %v2137_v25 = vsub.f32 1.5, %v2136_v24  ;;  %v2279_v24 = vld [vmem:[%s2837_s27 + $0x10] sm:$0xff] }
 0xdb9   : > { %v2637_v26 = vpop.eup %2636 }
 0xdba   : > { %v2144_v10 = vmul.f32 %v2637_v26, %v2132_v19  ;;  %v2138_v28 = vmul.f32 %v2635_v18, %v2137_v25  ;;  %vm2150_vm14 = vweird.f32 %v2637_v26 }
 0xdbb   : > { %vm2151_vm2 = vmor %vm2149_vm1, %vm2150_vm14 }
 0xdbc   : > { %v2145_v22 = vmul.f32 %v2637_v26, %v2144_v10  ;;  %v2142_v34 = vsel %vm2141_vm15, %v2635_v18, %v2138_v28  ;;  %v2277_v10 = vld [vmem:[%s2837_s27] sm:$0xff] }
 0xdbd   : > { %v2153_v31 = vmul.f32 %v2142_v34, %v2119_v57 }
 0xdbe   : > { %v2146_v15 = vmul.f32 0.5, %v2145_v22  ;;  %v2278_v22 = vld [vmem:[%s2837_s27 + $0x8] sm:$0xff] }
 0xdbf   : > { %v2282_v28 = vpack.c.bf16 %v2278_v22, %v2277_v10 }
 0xdc0   : > { %v2147_v21 = vsub.f32 1.5, %v2146_v15 }
 0xdc2   : > { %v2148_v29 = vmul.f32 %v2637_v26, %v2147_v21  ;;  %v2550_v21 = vld [vmem:[%s3218_s18] ss:$0 sm:$0xff] }
 0xdc4   : > { %v2152_v30 = vsel %vm2151_vm2, %v2637_v26, %v2148_v29  ;;  %v2280_v26 = vld [vmem:[%s2837_s27 + $0x18] sm:$0xff] }
 0xdc5   : > { %v2154_v32 = vmul.f32 %v2152_v30, %v2120_v60  ;;  %v2283_v25 = vpack.c.bf16 %v2280_v26, %v2279_v24 }
 0xdc7   : > { %v2177_v12 = vpack.c.bf16 %v2154_v32, %v2153_v31  ;;  %2297 = vmatpush.bf16.msrb.mxu0 %v2283_v25 }
 0xdc9   : > { %2482 = vmatmul.msk.bf16.vlgmr.msrb.gmra.mxu1 %vm1006_vm0, %v2177_v12 }
 0xdcb   : > { %2298 = vmatpush.bf16.msrb.mxu0 %v2282_v28 }
 0xe46   : > { %v2195_v57 = vpop.f32.mrf.mxu1 }
 0xe47   : > { %v2196_v27 = vadd.f32 %v2549_v55, %v2195_v57 }
 0xe49   : > { %v2202_v58 = vmul.f32 0.044715, %v2196_v27  ;;  %v2200_v16 = vmul.f32 0.5, %v2196_v27 }
 0xe4b   : > { %v2204_v59 = vmul.f32 %v2202_v58, %v2196_v27 }
 0xe4d   : > { %v2206_v8 = vmul.f32 %v2204_v59, %v2196_v27 }
 0xe4e   : > { %v2197_v60 = vpop.f32.mrf.mxu1 }
 0xe4f   : > { %v2208_v61 = vadd.f32 %v2206_v8, %v2196_v27  ;;  %v2198_v62 = vadd.f32 %v2549_v55, %v2197_v60 }
 0xe51   : > { %v2203_v63 = vmul.f32 0.044715, %v2198_v62  ;;  %v2210_v0 = vmul.f32 0.7978846, %v2208_v61  ;;  %v2201_v17 = vmul.f32 0.5, %v2198_v62 }
 0xe53   : > { %v2205_v1 = vmul.f32 %v2203_v63, %v2198_v62  ;;  %2638 = vtanh.f32 %v2210_v0 }
 0xe55   : > { %v2207_v2 = vmul.f32 %v2205_v1, %v2198_v62 }
 0xe57   : > { %v2209_v3 = vadd.f32 %v2207_v2, %v2198_v62 }
 0xe59   : > { %v2211_v4 = vmul.f32 0.7978846, %v2209_v3  ;;  %v2639_v5 = vpop.eup %2638 }
 0xe5a   : > { %v2214_v6 = vadd.f32 1.0, %v2639_v5 }
 0xe5b   : > { %2640 = vtanh.f32 %v2211_v4 }
 0xe5c   : > { %v2216_v19 = vmul.f32 %v2214_v6, %v2200_v16 }
 0xe61   : > { %v2641_v14 = vpop.eup %2640 }
 0xe62   : > { %v2215_v18 = vadd.f32 1.0, %v2641_v14 }
 0xe64   : > { %v2217_v20 = vmul.f32 %v2215_v18, %v2201_v17 }
 0xe66   : > { %v2218_v23 = vpack.c.bf16 %v2217_v20, %v2216_v19 }
 0xe68   : > { %2238 = vmatmul.bf16.vlgmr.msra.gmra.mxu2 %v2218_v23 }
 0xeeb   : > { %v2239_v15 = vpop.f32.mrf.mxu2 }
 0xeec   : > { %v2240_v34 = vadd.f32 %v2550_v21, %v2239_v15 }
 0xeee   : > { %v2244_v31 = vadd.f32 %v2240_v34, %v3130_v47 }
 0xef3   : > { %v2241_v29 = vpop.f32.mrf.mxu2 }
 0xef4   : > { %v2242_v30 = vadd.f32 %v2550_v21, %v2241_v29 }
 0xef6   : > { %v2245_v32 = vadd.f32 %v2242_v30, %v3135_v53 }
 0xef8   : > { %v2281_v12 = vpack.c.bf16 %v2245_v32, %v2244_v31 }
 0xefa   : > { %2484 = vmatmul.msk.bf16.vlgmr.msrb.gmra.mxu0 %vm1006_vm0, %v2281_v12 }
 0xf77   : > { %v2300_v9 = vpop.f32.mrf.mxu0 }
 0xf78   : > { %v2301_v13 = vadd.f32 %v2551_v33, %v2300_v9 }
 0xf7a   : > { %2305 = vst.msk [vmem:[%s991_s2] sm:$0xff] %vm2274_vm11, %v2301_v13 }
 0xf7f   : > { %v2302_v35 = vpop.f32.mrf.mxu0 }
 0xf80   : > { %v2303_v36 = vadd.f32 %v2551_v33, %v2302_v35 }
 0xf82   : > { %2306 = vst.msk [vmem:[%s991_s2 + $0x8] sm:$0xff] %vm2274_vm11, %v2303_v36 }
 0xf83 PF: > { %s74_s22 = sadd.s32 1, %s2648_s22  }
 0xf84   : > { %p71_p4 = scmp.ge.s32.totalorder %s74_s22, 4  }
 0xf86   :  { %73 = sbr.rel (!%p71_p4) target bundleno = 49 (0x31), region = 216 }

</bundles_post_ra>
